<compile_context>
chip_gen: v6e
topology: v6e:2x2x1
jax: 0.10.0
libtpu: 0.0.40
codegen_flags: <defaults>
</compile_context>

<pallas_src>
import numpy as np
import jax
import jax.numpy as jnp
from jax.experimental import pallas as pl
from jax.experimental.pallas import tpu as pltpu

NUM_CLASSES = 10
_VMEM_LIMIT = 40 * 1024 * 1024   # explicit scoped-VMEM budget (ok on v5e/v6e/v7x)


# ---------------------------------------------------------------------------
# Small helpers
# ---------------------------------------------------------------------------

def _shift_rows(x, off):
    """result[r] = x[r + off] (zero fill at the end).  Static sublane shift."""
    if off == 0:
        return x
    pad = jnp.zeros((off, x.shape[1]), x.dtype)
    return jnp.concatenate([x[off:], pad], axis=0)


def _pick_block(batch, cap, multiple=1):
    """Largest divisor of `batch` <= cap that is a multiple of `multiple`;
    prefers >=2 grid steps so both v7x TensorCores get work."""
    cands = [d for d in range(1, min(batch, cap) + 1)
             if batch % d == 0 and d % multiple == 0]
    if not cands:
        return batch
    d = max(cands)
    if batch // d < 2:
        smaller = [c for c in cands if c < d]
        if smaller:
            d = max(smaller)
    return d


# ---------------------------------------------------------------------------
# Kernels
# ---------------------------------------------------------------------------

def _conv1_kernel(x_ref, s_ref, b_ref, o_ref):
    """conv1 + bias + ReLU + 2x2 maxpool for a block of Bt images.

    x_ref: (Bt*32, 32) bf16 - zero-padded 32x32 images, rows=(b, y), lanes=x.
    s_ref: (2, 32, 1536) bf16 - banded weights S[pw][x, (dy, j', co)] with the
           W pooling phase pw and the conv2 W zero-padding (j' in {0,15}) baked
           in (precomputed on the host).
    b_ref: (1, 512) f32 - bias per (j', co) column, zero on the padding cols.
    o_ref: (Bt*32, 512) bf16 - rows (b, y) (even y<28 valid), cols (j', co).
    """
    x = x_ref[...]
    pooled_w = None
    for pw in range(2):
        r = jnp.dot(x, s_ref[pw], preferred_element_type=jnp.float32)  # (M,1536)
        # Sum the three filter rows dy=0,1,2: column block dy uses input row y+dy.
        acc = (r[:, 0:512]
               + _shift_rows(r[:, 512:1024], 1)
               + _shift_rows(r[:, 1024:1536], 2))
        pooled_w = acc if pooled_w is None else jnp.maximum(pooled_w, acc)
    # H-direction 2x2 pooling: max of adjacent rows (valid at even rows).
    pooled = jnp.maximum(pooled_w, _shift_rows(pooled_w, 1))
    # Bias + ReLU after the pooling max (mathematically identical, 4x fewer ops).
    out = jnp.maximum(pooled + b_ref[...], 0.0)
    o_ref[...] = out.astype(o_ref.dtype)


def _conv2_kernel(p00_ref, p01_ref, p10_ref, p11_ref, w_ref, b_ref, o_ref):
    """conv2 + bias + ReLU + 2x2 maxpool on flat parity planes.

    p??_ref: (Bt*64, 32) bf16 - parity planes of the padded 16x16 conv1 output,
             flattened so a conv tap is a constant row offset (0/1/8/9).
    w_ref:   (9, 32, 64) bf16 tap-major weights.  b_ref: (1, 64) f32.
    o_ref:   (Bt*64, 64) bf16 on the per-image 8x8 grid; rows with i==7 or j==7
             are garbage and are nulled downstream by zero rows in fc1's weight.
    """
    phases = (p00_ref[...], p01_ref[...], p10_ref[...], p11_ref[...])
    w = w_ref[...]

    shifted = {}          # hoist/CSE the 12 distinct row shifts across phases
    def get(p_idx, off):
        key = (p_idx, off)
        if key not in shifted:
            shifted[key] = _shift_rows(phases[p_idx], off)
        return shifted[key]

    pooled = None
    for ph in range(2):
        for pw in range(2):
            acc = None
            for dy in range(3):
                for dx in range(3):
                    ry, qy = (ph + dy) % 2, (ph + dy) // 2
                    rx, qx = (pw + dx) % 2, (pw + dx) // 2
                    xs = get(ry * 2 + rx, qy * 8 + qx)        # (M, 32) bf16
                    t = jnp.dot(xs, w[dy * 3 + dx],
                                preferred_element_type=jnp.float32)  # MXU 2D
                    acc = t if acc is None else acc + t
            pooled = acc if pooled is None else jnp.maximum(pooled, acc)
    out = jnp.maximum(pooled + b_ref[...], 0.0)     # bias+ReLU after the max
    o_ref[...] = out.astype(o_ref.dtype)


def _mlp_kernel(x_ref, w1_ref, b1_ref, w2_ref, b2_ref, o_ref):
    """Fused fc1 + bias + ReLU + fc2 + bias (fc2 N padded to 128 lanes)."""
    h = jnp.dot(x_ref[...], w1_ref[...], preferred_element_type=jnp.float32)
    h = jnp.maximum(h + b1_ref[...], 0.0)
    out = jnp.dot(h.astype(w2_ref.dtype), w2_ref[...],
                  preferred_element_type=jnp.float32)
    o_ref[...] = out + b2_ref[...]


# ---------------------------------------------------------------------------
# Pallas wrappers
# ---------------------------------------------------------------------------

def conv1_pallas(x2d, s, bias_cols, bt):
    rows = x2d.shape[0]                 # B*32
    mblk = bt * 32
    return pl.pallas_call(
        _conv1_kernel,
        out_shape=jax.ShapeDtypeStruct((rows, 512), jnp.bfloat16),
        grid=(rows // mblk,),
        in_specs=[pl.BlockSpec((mblk, 32), lambda i: (i, 0)),
                  pl.BlockSpec((2, 32, 1536), lambda i: (0, 0, 0)),
                  pl.BlockSpec((1, 512), lambda i: (0, 0))],
        out_specs=pl.BlockSpec((mblk, 512), lambda i: (i, 0)),
        compiler_params=pltpu.CompilerParams(
            dimension_semantics=("parallel",),
            vmem_limit_bytes=_VMEM_LIMIT),
    )(x2d, s, bias_cols)


def conv2_pallas(phases, w, b, bt):
    rows = phases[0].shape[0]           # B*64
    mblk = bt * 64
    phase_spec = pl.BlockSpec((mblk, 32), lambda i: (i, 0))
    return pl.pallas_call(
        _conv2_kernel,
        out_shape=jax.ShapeDtypeStruct((rows, 64), jnp.bfloat16),
        grid=(rows // mblk,),
        in_specs=[phase_spec, phase_spec, phase_spec, phase_spec,
                  pl.BlockSpec((9, 32, 64), lambda i: (0, 0, 0)),
                  pl.BlockSpec((1, 64), lambda i: (0, 0))],
        out_specs=pl.BlockSpec((mblk, 64), lambda i: (i, 0)),
        compiler_params=pltpu.CompilerParams(
            dimension_semantics=("parallel",),
            vmem_limit_bytes=_VMEM_LIMIT),
    )(*phases, w, b)


def mlp_pallas(x, w1, b1, w2, b2, tm):
    B, K = x.shape
    H = w1.shape[1]
    N = w2.shape[1]
    return pl.pallas_call(
        _mlp_kernel,
        out_shape=jax.ShapeDtypeStruct((B, N), jnp.float32),
        grid=(B // tm,),
        in_specs=[pl.BlockSpec((tm, K), lambda i: (i, 0)),
                  pl.BlockSpec((K, H), lambda i: (0, 0)),
                  pl.BlockSpec((1, H), lambda i: (0, 0)),
                  pl.BlockSpec((H, N), lambda i: (0, 0)),
                  pl.BlockSpec((1, N), lambda i: (0, 0))],
        out_specs=pl.BlockSpec((tm, N), lambda i: (i, 0)),
        compiler_params=pltpu.CompilerParams(
            dimension_semantics=("parallel",),
            vmem_limit_bytes=_VMEM_LIMIT),
    )(x, w1, b1, w2, b2)


# ---------------------------------------------------------------------------
# Model
# ---------------------------------------------------------------------------

def init_params(key):
    ks = jax.random.split(key, 8)
    p = {}
    p["w1"] = jax.random.normal(ks[0], (32, 1, 3, 3), jnp.float32) * 0.1
    p["b1"] = jax.random.normal(ks[1], (32,), jnp.float32) * 0.01
    p["w2"] = jax.random.normal(ks[2], (64, 32, 3, 3), jnp.float32) * 0.05
    p["b2"] = jax.random.normal(ks[3], (64,), jnp.float32) * 0.01
    p["wf1"] = jax.random.normal(ks[4], (128, 64 * 7 * 7), jnp.float32) * 0.02
    p["bf1"] = jax.random.normal(ks[5], (128,), jnp.float32) * 0.01
    p["wf2"] = jax.random.normal(ks[6], (10, 128), jnp.float32) * 0.05
    p["bf2"] = jax.random.normal(ks[7], (10,), jnp.float32) * 0.01
    return p


def preprocess_params(p):
    """One-time conversion of PyTorch-layout params into kernel layouts."""
    pp = {}
    # conv1 -> banded matrices S[pw][x, (dy, j', co)]: column j' corresponds to
    # pooled W position j = j'-1 (j'=0,15 are conv2's W zero padding).
    w1 = np.asarray(p["w1"], np.float32).reshape(32, 3, 3)   # (co, dy, dx)
    s1 = np.zeros((2, 32, 3, 16, 32), np.float32)
    for pw in range(2):
        for dy in range(3):
            for jp in range(1, 15):
                for dx in range(3):
                    s1[pw, 2 * (jp - 1) + pw + dx, dy, jp, :] = w1[:, dy, dx]
    pp["s1"] = jnp.asarray(s1.reshape(2, 32, 1536), jnp.bfloat16)
    b1c = np.zeros((16, 32), np.float32)
    b1c[1:15, :] = np.asarray(p["b1"], np.float32)[None, :]
    pp["b1c"] = jnp.asarray(b1c.reshape(1, 512))
    # conv2: (C_out, C_in, 3, 3) -> (9, C_in, C_out), tap-major, bf16.
    pp["w2"] = jnp.transpose(p["w2"], (2, 3, 1, 0)).reshape(9, 32, 64).astype(jnp.bfloat16)
    pp["b2"] = p["b2"].reshape(1, 64).astype(jnp.float32)
    # fc1: reorder from PyTorch (C,H,W)-flatten to the conv2 kernel's flat
    # (i, j, c) layout on the 8x8 grid; garbage positions (i==7 or j==7) -> 0.
    wf1 = p["wf1"].reshape(128, 64, 7, 7)
    wf1 = jnp.transpose(wf1, (2, 3, 1, 0))                    # (7,7,64,128)
    wf1 = jnp.pad(wf1, ((0, 1), (0, 1), (0, 0), (0, 0)))      # (8,8,64,128)
    pp["wf1"] = wf1.reshape(4096, 128).astype(jnp.bfloat16)
    pp["bf1"] = p["bf1"].reshape(1, 128).astype(jnp.float32)
    # fc2: transpose + pad N 10 -> 128 for a lane-dense output store.
    wf2 = jnp.transpose(p["wf2"])                              # (128, 10)
    pp["wf2"] = jnp.pad(wf2, ((0, 0), (0, 128 - NUM_CLASSES))).astype(jnp.bfloat16)
    pp["bf2"] = jnp.pad(p["bf2"], (0, 128 - NUM_CLASSES)).reshape(1, 128).astype(jnp.float32)
    return pp


@jax.jit
def cnn_forward(pp, x_nchw):
    B = x_nchw.shape[0]

    # conv1 block: pad 28x28 -> 32x32, flatten rows, bf16 storage.
    x = x_nchw.reshape(B, 28, 28).astype(jnp.float32)
    xp = jnp.pad(x, ((0, 0), (1, 3), (1, 3))).astype(jnp.bfloat16)   # (B,32,32)
    x2d = xp.reshape(B * 32, 32)
    bt1 = _pick_block(B, 16)
    h1 = conv1_pallas(x2d, pp["s1"], pp["b1c"], bt1)                 # (B*32,512)

    # Layout glue (pure bf16 layout, no compute): rows 0:28:2 of h1 are the
    # pooled 14x14x32 map with W-padding already baked into its 16 columns;
    # add the H padding and build conv2's flat parity planes.
    h1r = h1.reshape(B, 32, 16, 32)
    rows = h1r[:, 0:28:2]                                            # (B,14,16,32)
    padded = jnp.pad(rows, ((0, 0), (1, 1), (0, 0), (0, 0)))          # (B,16,16,32)
    phases = [padded[:, a::2, c::2, :].reshape(B * 64, 32)
              for a in (0, 1) for c in (0, 1)]

    bt2 = _pick_block(B, 16)
    h2 = conv2_pallas(phases, pp["w2"], pp["b2"], bt2)               # (B*64,64)

    # MLP consumes the flat conv2 output directly (garbage rows hit zero
    # weight rows in fc1), no extra cast / extraction pass.
    xf = h2.reshape(B, 4096)
    tm = _pick_block(B, 512, multiple=16)
    logits = mlp_pallas(xf, pp["wf1"], pp["bf1"], pp["wf2"], pp["bf2"], tm)
    return logits[:, :NUM_CLASSES]                                   # (B,10)


if __name__ == "__main__":
    key = jax.random.PRNGKey(0)
    pkey, xkey = jax.random.split(key)
    params = init_params(pkey)
    pp = preprocess_params(params)
    # Input must be 28x28 (fc1 expects 64*7*7 after the two 2x2 pools).
    x = jax.random.normal(xkey, (2, 1, 28, 28), jnp.float32)

    out = cnn_forward(pp, x)
    jax.block_until_ready(out)
    assert out.shape == (2, NUM_CLASSES), out.shape
    print("KERNEL_OK")
</pallas_src>

<mosaic_0001>
module attributes {stable_mosaic.version = 11 : i64} {
  func.func @_conv1_kernel(%arg0: i32, %arg1: memref<32x32xbf16, #tpu.memory_space<vmem>>, %arg2: memref<2x32x1536xbf16, #tpu.memory_space<vmem>>, %arg3: memref<1x512xf32, #tpu.memory_space<vmem>>, %arg4: memref<32x512xbf16, #tpu.memory_space<vmem>>) attributes {dimension_semantics = [#tpu.dimension_semantics<parallel>], iteration_bounds = array<i64: 2>, scalar_prefetch = 0 : i64, scratch_operands = 0 : i64, tpu.core_type = #tpu.core_type<tc>, window_params = [{transform_indices = @transform_0, window_bounds = array<i64: 32, 32>}, {pipeline_mode = #tpu.pipeline_mode<synchronous>, transform_indices = @transform_1, window_bounds = array<i64: 2, 32, 1536>}, {pipeline_mode = #tpu.pipeline_mode<synchronous>, transform_indices = @transform_2, window_bounds = array<i64: 1, 512>}, {transform_indices = @transform_3, window_bounds = array<i64: 32, 512>}]} {
    %c0 = arith.constant 0 : index
    %c0_0 = arith.constant 0 : index
    %0 = vector.load %arg1[%c0, %c0_0] : memref<32x32xbf16, #tpu.memory_space<vmem>>, vector<32x32xbf16>
    %c0_1 = arith.constant 0 : index
    %c0_2 = arith.constant 0 : index
    %c0_3 = arith.constant 0 : index
    %1 = vector.load %arg2[%c0_1, %c0_2, %c0_3] : memref<2x32x1536xbf16, #tpu.memory_space<vmem>>, vector<1x32x1536xbf16>
    %2 = vector.shape_cast %1 : vector<1x32x1536xbf16> to vector<32x1536xbf16>
    %cst = arith.constant dense<0.000000e+00> : vector<32x1536xf32>
    %3 = tpu.matmul %0, %2, %cst {dimension_numbers = #tpu.dot_dimension_numbers<[1], [0], [0], [1], [0, 0, 1, 1], [], []>} : vector<32x32xbf16>, vector<32x1536xbf16>, vector<32x1536xf32> -> vector<32x1536xf32>
    %4 = vector.extract_strided_slice %3 {offsets = [0, 0], sizes = [32, 512], strides = [1, 1]} : vector<32x1536xf32> to vector<32x512xf32>
    %5 = vector.extract_strided_slice %3 {offsets = [0, 512], sizes = [32, 512], strides = [1, 1]} : vector<32x1536xf32> to vector<32x512xf32>
    %cst_4 = arith.constant 0.000000e+00 : f32
    %6 = vector.broadcast %cst_4 : f32 to vector<1x512xf32>
    %7 = vector.extract_strided_slice %5 {offsets = [1, 0], sizes = [31, 512], strides = [1, 1]} : vector<32x512xf32> to vector<31x512xf32>
    %8 = tpu.concatenate %7, %6 in 0 : vector<31x512xf32>, vector<1x512xf32> -> vector<32x512xf32>
    %9 = arith.addf %4, %8 : vector<32x512xf32>
    %10 = vector.extract_strided_slice %3 {offsets = [0, 1024], sizes = [32, 512], strides = [1, 1]} : vector<32x1536xf32> to vector<32x512xf32>
    %cst_5 = arith.constant 0.000000e+00 : f32
    %11 = vector.broadcast %cst_5 : f32 to vector<2x512xf32>
    %12 = vector.extract_strided_slice %10 {offsets = [2, 0], sizes = [30, 512], strides = [1, 1]} : vector<32x512xf32> to vector<30x512xf32>
    %13 = tpu.concatenate %12, %11 in 0 : vector<30x512xf32>, vector<2x512xf32> -> vector<32x512xf32>
    %14 = arith.addf %9, %13 : vector<32x512xf32>
    %c1 = arith.constant 1 : index
    %c0_6 = arith.constant 0 : index
    %c0_7 = arith.constant 0 : index
    %15 = vector.load %arg2[%c1, %c0_6, %c0_7] : memref<2x32x1536xbf16, #tpu.memory_space<vmem>>, vector<1x32x1536xbf16>
    %16 = vector.shape_cast %15 : vector<1x32x1536xbf16> to vector<32x1536xbf16>
    %cst_8 = arith.constant dense<0.000000e+00> : vector<32x1536xf32>
    %17 = tpu.matmul %0, %16, %cst_8 {dimension_numbers = #tpu.dot_dimension_numbers<[1], [0], [0], [1], [0, 0, 1, 1], [], []>} : vector<32x32xbf16>, vector<32x1536xbf16>, vector<32x1536xf32> -> vector<32x1536xf32>
    %18 = vector.extract_strided_slice %17 {offsets = [0, 0], sizes = [32, 512], strides = [1, 1]} : vector<32x1536xf32> to vector<32x512xf32>
    %19 = vector.extract_strided_slice %17 {offsets = [0, 512], sizes = [32, 512], strides = [1, 1]} : vector<32x1536xf32> to vector<32x512xf32>
    %cst_9 = arith.constant 0.000000e+00 : f32
    %20 = vector.broadcast %cst_9 : f32 to vector<1x512xf32>
    %21 = vector.extract_strided_slice %19 {offsets = [1, 0], sizes = [31, 512], strides = [1, 1]} : vector<32x512xf32> to vector<31x512xf32>
    %22 = tpu.concatenate %21, %20 in 0 : vector<31x512xf32>, vector<1x512xf32> -> vector<32x512xf32>
    %23 = arith.addf %18, %22 : vector<32x512xf32>
    %24 = vector.extract_strided_slice %17 {offsets = [0, 1024], sizes = [32, 512], strides = [1, 1]} : vector<32x1536xf32> to vector<32x512xf32>
    %cst_10 = arith.constant 0.000000e+00 : f32
    %25 = vector.broadcast %cst_10 : f32 to vector<2x512xf32>
    %26 = vector.extract_strided_slice %24 {offsets = [2, 0], sizes = [30, 512], strides = [1, 1]} : vector<32x512xf32> to vector<30x512xf32>
    %27 = tpu.concatenate %26, %25 in 0 : vector<30x512xf32>, vector<2x512xf32> -> vector<32x512xf32>
    %28 = arith.addf %23, %27 : vector<32x512xf32>
    %29 = arith.maximumf %14, %28 : vector<32x512xf32>
    %cst_11 = arith.constant 0.000000e+00 : f32
    %30 = vector.broadcast %cst_11 : f32 to vector<1x512xf32>
    %31 = vector.extract_strided_slice %29 {offsets = [1, 0], sizes = [31, 512], strides = [1, 1]} : vector<32x512xf32> to vector<31x512xf32>
    %32 = tpu.concatenate %31, %30 in 0 : vector<31x512xf32>, vector<1x512xf32> -> vector<32x512xf32>
    %33 = arith.maximumf %29, %32 : vector<32x512xf32>
    %c0_12 = arith.constant 0 : index
    %c0_13 = arith.constant 0 : index
    %34 = vector.load %arg3[%c0_12, %c0_13] : memref<1x512xf32, #tpu.memory_space<vmem>>, vector<1x512xf32>
    %35 = vector.broadcast %34 : vector<1x512xf32> to vector<32x512xf32>
    %36 = arith.addf %33, %35 : vector<32x512xf32>
    %cst_14 = arith.constant 0.000000e+00 : f32
    %37 = vector.broadcast %cst_14 : f32 to vector<32x512xf32>
    %38 = arith.maximumf %36, %37 : vector<32x512xf32>
    %39 = arith.truncf %38 : vector<32x512xf32> to vector<32x512xbf16>
    %c0_15 = arith.constant 0 : index
    %c0_16 = arith.constant 0 : index
    %40 = vector.load %arg4[%c0_15, %c0_16] : memref<32x512xbf16, #tpu.memory_space<vmem>>, vector<32x512xbf16>
    tpu.vector_store %arg4[%c0_15, %c0_16], %39 {strides = array<i32>} : memref<32x512xbf16, #tpu.memory_space<vmem>>, vector<32x512xbf16>,
    return
  }
  func.func @transform_0(%arg0: i32) -> (i32, i32) {
    %c0_i32 = arith.constant 0 : i32
    %c0_i32_0 = arith.constant 0 : i32
    return %arg0, %c0_i32 : i32, i32
  }
  func.func @transform_1(%arg0: i32) -> (i32, i32, i32) {
    %c0_i32 = arith.constant 0 : i32
    %c0_i32_0 = arith.constant 0 : i32
    %c0_i32_1 = arith.constant 0 : i32
    %c0_i32_2 = arith.constant 0 : i32
    return %c0_i32, %c0_i32_0, %c0_i32_1 : i32, i32, i32
  }
  func.func @transform_2(%arg0: i32) -> (i32, i32) {
    %c0_i32 = arith.constant 0 : i32
    %c0_i32_0 = arith.constant 0 : i32
    %c0_i32_1 = arith.constant 0 : i32
    return %c0_i32, %c0_i32_0 : i32, i32
  }
  func.func @transform_3(%arg0: i32) -> (i32, i32) {
    %c0_i32 = arith.constant 0 : i32
    %c0_i32_0 = arith.constant 0 : i32
    return %arg0, %c0_i32 : i32, i32
  }
}

module attributes {stable_mosaic.version = 11 : i64} {
  func.func @_mlp_kernel(%arg0: i32, %arg1: memref<2x4096xbf16, #tpu.memory_space<vmem>>, %arg2: memref<4096x128xbf16, #tpu.memory_space<vmem>>, %arg3: memref<1x128xf32, #tpu.memory_space<vmem>>, %arg4: memref<128x128xbf16, #tpu.memory_space<vmem>>, %arg5: memref<1x128xf32, #tpu.memory_space<vmem>>, %arg6: memref<2x128xf32, #tpu.memory_space<vmem>>) attributes {dimension_semantics = [#tpu.dimension_semantics<parallel>], iteration_bounds = array<i64: 1>, scalar_prefetch = 0 : i64, scratch_operands = 0 : i64, tpu.core_type = #tpu.core_type<tc>, window_params = [{transform_indices = @transform_0, window_bounds = array<i64: 2, 4096>}, {pipeline_mode = #tpu.pipeline_mode<synchronous>, transform_indices = @transform_1, window_bounds = array<i64: 4096, 128>}, {pipeline_mode = #tpu.pipeline_mode<synchronous>, transform_indices = @transform_2, window_bounds = array<i64: 1, 128>}, {pipeline_mode = #tpu.pipeline_mode<synchronous>, transform_indices = @transform_3, window_bounds = array<i64: 128, 128>}, {pipeline_mode = #tpu.pipeline_mode<synchronous>, transform_indices = @transform_4, window_bounds = array<i64: 1, 128>}, {transform_indices = @transform_5, window_bounds = array<i64: 2, 128>}]} {
    %c0 = arith.constant 0 : index
    %c0_0 = arith.constant 0 : index
    %0 = vector.load %arg1[%c0, %c0_0] : memref<2x4096xbf16, #tpu.memory_space<vmem>>, vector<2x4096xbf16>
    %c0_1 = arith.constant 0 : index
    %c0_2 = arith.constant 0 : index
    %1 = vector.load %arg2[%c0_1, %c0_2] : memref<4096x128xbf16, #tpu.memory_space<vmem>>, vector<4096x128xbf16>
    %cst = arith.constant dense<0.000000e+00> : vector<2x128xf32>
    %2 = tpu.matmul %0, %1, %cst {dimension_numbers = #tpu.dot_dimension_numbers<[1], [0], [0], [1], [0, 0, 1, 1], [], []>} : vector<2x4096xbf16>, vector<4096x128xbf16>, vector<2x128xf32> -> vector<2x128xf32>
    %c0_3 = arith.constant 0 : index
    %c0_4 = arith.constant 0 : index
    %3 = vector.load %arg3[%c0_3, %c0_4] : memref<1x128xf32, #tpu.memory_space<vmem>>, vector<1x128xf32>
    %4 = vector.broadcast %3 : vector<1x128xf32> to vector<2x128xf32>
    %5 = arith.addf %2, %4 : vector<2x128xf32>
    %cst_5 = arith.constant 0.000000e+00 : f32
    %6 = vector.broadcast %cst_5 : f32 to vector<2x128xf32>
    %7 = arith.maximumf %5, %6 : vector<2x128xf32>
    %8 = arith.truncf %7 : vector<2x128xf32> to vector<2x128xbf16>
    %c0_6 = arith.constant 0 : index
    %c0_7 = arith.constant 0 : index
    %9 = vector.load %arg4[%c0_6, %c0_7] : memref<128x128xbf16, #tpu.memory_space<vmem>>, vector<128x128xbf16>
    %cst_8 = arith.constant dense<0.000000e+00> : vector<2x128xf32>
    %10 = tpu.matmul %8, %9, %cst_8 {dimension_numbers = #tpu.dot_dimension_numbers<[1], [0], [0], [1], [0, 0, 1, 1], [], []>} : vector<2x128xbf16>, vector<128x128xbf16>, vector<2x128xf32> -> vector<2x128xf32>
    %c0_9 = arith.constant 0 : index
    %c0_10 = arith.constant 0 : index
    %11 = vector.load %arg5[%c0_9, %c0_10] : memref<1x128xf32, #tpu.memory_space<vmem>>, vector<1x128xf32>
    %12 = vector.broadcast %11 : vector<1x128xf32> to vector<2x128xf32>
    %13 = arith.addf %10, %12 : vector<2x128xf32>
    %c0_11 = arith.constant 0 : index
    %c0_12 = arith.constant 0 : index
    %14 = vector.load %arg6[%c0_11, %c0_12] : memref<2x128xf32, #tpu.memory_space<vmem>>, vector<2x128xf32>
    tpu.vector_store %arg6[%c0_11, %c0_12], %13 {strides = array<i32>} : memref<2x128xf32, #tpu.memory_space<vmem>>, vector<2x128xf32>,
    return
  }
  func.func @transform_0(%arg0: i32) -> (i32, i32) {
    %c0_i32 = arith.constant 0 : i32
    %c0_i32_0 = arith.constant 0 : i32
    return %arg0, %c0_i32 : i32, i32
  }
  func.func @transform_1(%arg0: i32) -> (i32, i32) {
    %c0_i32 = arith.constant 0 : i32
    %c0_i32_0 = arith.constant 0 : i32
    %c0_i32_1 = arith.constant 0 : i32
    return %c0_i32, %c0_i32_0 : i32, i32
  }
  func.func @transform_2(%arg0: i32) -> (i32, i32) {
    %c0_i32 = arith.constant 0 : i32
    %c0_i32_0 = arith.constant 0 : i32
    %c0_i32_1 = arith.constant 0 : i32
    return %c0_i32, %c0_i32_0 : i32, i32
  }
  func.func @transform_3(%arg0: i32) -> (i32, i32) {
    %c0_i32 = arith.constant 0 : i32
    %c0_i32_0 = arith.constant 0 : i32
    %c0_i32_1 = arith.constant 0 : i32
    return %c0_i32, %c0_i32_0 : i32, i32
  }
  func.func @transform_4(%arg0: i32) -> (i32, i32) {
    %c0_i32 = arith.constant 0 : i32
    %c0_i32_0 = arith.constant 0 : i32
    %c0_i32_1 = arith.constant 0 : i32
    return %c0_i32, %c0_i32_0 : i32, i32
  }
  func.func @transform_5(%arg0: i32) -> (i32, i32) {
    %c0_i32 = arith.constant 0 : i32
    %c0_i32_0 = arith.constant 0 : i32
    return %arg0, %c0_i32 : i32, i32
  }
}

module attributes {stable_mosaic.version = 11 : i64} {
  func.func @_conv2_kernel(%arg0: i32, %arg1: memref<64x32xbf16, #tpu.memory_space<vmem>>, %arg2: memref<64x32xbf16, #tpu.memory_space<vmem>>, %arg3: memref<64x32xbf16, #tpu.memory_space<vmem>>, %arg4: memref<64x32xbf16, #tpu.memory_space<vmem>>, %arg5: memref<9x32x64xbf16, #tpu.memory_space<vmem>>, %arg6: memref<1x64xf32, #tpu.memory_space<vmem>>, %arg7: memref<64x64xbf16, #tpu.memory_space<vmem>>) attributes {dimension_semantics = [#tpu.dimension_semantics<parallel>], iteration_bounds = array<i64: 2>, scalar_prefetch = 0 : i64, scratch_operands = 0 : i64, tpu.core_type = #tpu.core_type<tc>, window_params = [{transform_indices = @transform_0, window_bounds = array<i64: 64, 32>}, {transform_indices = @transform_1, window_bounds = array<i64: 64, 32>}, {transform_indices = @transform_2, window_bounds = array<i64: 64, 32>}, {transform_indices = @transform_3, window_bounds = array<i64: 64, 32>}, {pipeline_mode = #tpu.pipeline_mode<synchronous>, transform_indices = @transform_4, window_bounds = array<i64: 9, 32, 64>}, {pipeline_mode = #tpu.pipeline_mode<synchronous>, transform_indices = @transform_5, window_bounds = array<i64: 1, 64>}, {transform_indices = @transform_6, window_bounds = array<i64: 64, 64>}]} {
    %c0 = arith.constant 0 : index
    %c0_0 = arith.constant 0 : index
    %0 = vector.load %arg1[%c0, %c0_0] : memref<64x32xbf16, #tpu.memory_space<vmem>>, vector<64x32xbf16>
    %c0_1 = arith.constant 0 : index
    %c0_2 = arith.constant 0 : index
    %1 = vector.load %arg2[%c0_1, %c0_2] : memref<64x32xbf16, #tpu.memory_space<vmem>>, vector<64x32xbf16>
    %c0_3 = arith.constant 0 : index
    %c0_4 = arith.constant 0 : index
    %2 = vector.load %arg3[%c0_3, %c0_4] : memref<64x32xbf16, #tpu.memory_space<vmem>>, vector<64x32xbf16>
    %c0_5 = arith.constant 0 : index
    %c0_6 = arith.constant 0 : index
    %3 = vector.load %arg4[%c0_5, %c0_6] : memref<64x32xbf16, #tpu.memory_space<vmem>>, vector<64x32xbf16>
    %c0_7 = arith.constant 0 : index
    %c0_8 = arith.constant 0 : index
    %c0_9 = arith.constant 0 : index
    %4 = vector.load %arg5[%c0_7, %c0_8, %c0_9] : memref<9x32x64xbf16, #tpu.memory_space<vmem>>, vector<9x32x64xbf16>
    %5 = vector.extract_strided_slice %4 {offsets = [0, 0, 0], sizes = [1, 32, 64], strides = [1, 1, 1]} : vector<9x32x64xbf16> to vector<1x32x64xbf16>
    %6 = vector.shape_cast %5 : vector<1x32x64xbf16> to vector<32x64xbf16>
    %cst = arith.constant dense<0.000000e+00> : vector<64x64xf32>
    %7 = tpu.matmul %0, %6, %cst {dimension_numbers = #tpu.dot_dimension_numbers<[1], [0], [0], [1], [0, 0, 1, 1], [], []>} : vector<64x32xbf16>, vector<32x64xbf16>, vector<64x64xf32> -> vector<64x64xf32>
    %8 = vector.extract_strided_slice %4 {offsets = [1, 0, 0], sizes = [1, 32, 64], strides = [1, 1, 1]} : vector<9x32x64xbf16> to vector<1x32x64xbf16>
    %9 = vector.shape_cast %8 : vector<1x32x64xbf16> to vector<32x64xbf16>
    %cst_10 = arith.constant dense<0.000000e+00> : vector<64x64xf32>
    %10 = tpu.matmul %1, %9, %cst_10 {dimension_numbers = #tpu.dot_dimension_numbers<[1], [0], [0], [1], [0, 0, 1, 1], [], []>} : vector<64x32xbf16>, vector<32x64xbf16>, vector<64x64xf32> -> vector<64x64xf32>
    %11 = arith.addf %7, %10 : vector<64x64xf32>
    %cst_11 = arith.constant 0.000000e+00 : bf16
    %12 = vector.broadcast %cst_11 : bf16 to vector<1x32xbf16>
    %13 = vector.extract_strided_slice %0 {offsets = [1, 0], sizes = [63, 32], strides = [1, 1]} : vector<64x32xbf16> to vector<63x32xbf16>
    %14 = tpu.concatenate %13, %12 in 0 : vector<63x32xbf16>, vector<1x32xbf16> -> vector<64x32xbf16>
    %15 = vector.extract_strided_slice %4 {offsets = [2, 0, 0], sizes = [1, 32, 64], strides = [1, 1, 1]} : vector<9x32x64xbf16> to vector<1x32x64xbf16>
    %16 = vector.shape_cast %15 : vector<1x32x64xbf16> to vector<32x64xbf16>
    %cst_12 = arith.constant dense<0.000000e+00> : vector<64x64xf32>
    %17 = tpu.matmul %14, %16, %cst_12 {dimension_numbers = #tpu.dot_dimension_numbers<[1], [0], [0], [1], [0, 0, 1, 1], [], []>} : vector<64x32xbf16>, vector<32x64xbf16>, vector<64x64xf32> -> vector<64x64xf32>
    %18 = arith.addf %11, %17 : vector<64x64xf32>
    %19 = vector.extract_strided_slice %4 {offsets = [3, 0, 0], sizes = [1, 32, 64], strides = [1, 1, 1]} : vector<9x32x64xbf16> to vector<1x32x64xbf16>
    %20 = vector.shape_cast %19 : vector<1x32x64xbf16> to vector<32x64xbf16>
    %cst_13 = arith.constant dense<0.000000e+00> : vector<64x64xf32>
    %21 = tpu.matmul %2, %20, %cst_13 {dimension_numbers = #tpu.dot_dimension_numbers<[1], [0], [0], [1], [0, 0, 1, 1], [], []>} : vector<64x32xbf16>, vector<32x64xbf16>, vector<64x64xf32> -> vector<64x64xf32>
    %22 = arith.addf %18, %21 : vector<64x64xf32>
    %23 = vector.extract_strided_slice %4 {offsets = [4, 0, 0], sizes = [1, 32, 64], strides = [1, 1, 1]} : vector<9x32x64xbf16> to vector<1x32x64xbf16>
    %24 = vector.shape_cast %23 : vector<1x32x64xbf16> to vector<32x64xbf16>
    %cst_14 = arith.constant dense<0.000000e+00> : vector<64x64xf32>
    %25 = tpu.matmul %3, %24, %cst_14 {dimension_numbers = #tpu.dot_dimension_numbers<[1], [0], [0], [1], [0, 0, 1, 1], [], []>} : vector<64x32xbf16>, vector<32x64xbf16>, vector<64x64xf32> -> vector<64x64xf32>
    %26 = arith.addf %22, %25 : vector<64x64xf32>
    %cst_15 = arith.constant 0.000000e+00 : bf16
    %27 = vector.broadcast %cst_15 : bf16 to vector<1x32xbf16>
    %28 = vector.extract_strided_slice %2 {offsets = [1, 0], sizes = [63, 32], strides = [1, 1]} : vector<64x32xbf16> to vector<63x32xbf16>
    %29 = tpu.concatenate %28, %27 in 0 : vector<63x32xbf16>, vector<1x32xbf16> -> vector<64x32xbf16>
    %30 = vector.extract_strided_slice %4 {offsets = [5, 0, 0], sizes = [1, 32, 64], strides = [1, 1, 1]} : vector<9x32x64xbf16> to vector<1x32x64xbf16>
    %31 = vector.shape_cast %30 : vector<1x32x64xbf16> to vector<32x64xbf16>
    %cst_16 = arith.constant dense<0.000000e+00> : vector<64x64xf32>
    %32 = tpu.matmul %29, %31, %cst_16 {dimension_numbers = #tpu.dot_dimension_numbers<[1], [0], [0], [1], [0, 0, 1, 1], [], []>} : vector<64x32xbf16>, vector<32x64xbf16>, vector<64x64xf32> -> vector<64x64xf32>
    %33 = arith.addf %26, %32 : vector<64x64xf32>
    %cst_17 = arith.constant 0.000000e+00 : bf16
    %34 = vector.broadcast %cst_17 : bf16 to vector<8x32xbf16>
    %35 = vector.extract_strided_slice %0 {offsets = [8, 0], sizes = [56, 32], strides = [1, 1]} : vector<64x32xbf16> to vector<56x32xbf16>
    %36 = tpu.concatenate %35, %34 in 0 : vector<56x32xbf16>, vector<8x32xbf16> -> vector<64x32xbf16>
    %37 = vector.extract_strided_slice %4 {offsets = [6, 0, 0], sizes = [1, 32, 64], strides = [1, 1, 1]} : vector<9x32x64xbf16> to vector<1x32x64xbf16>
    %38 = vector.shape_cast %37 : vector<1x32x64xbf16> to vector<32x64xbf16>
    %cst_18 = arith.constant dense<0.000000e+00> : vector<64x64xf32>
    %39 = tpu.matmul %36, %38, %cst_18 {dimension_numbers = #tpu.dot_dimension_numbers<[1], [0], [0], [1], [0, 0, 1, 1], [], []>} : vector<64x32xbf16>, vector<32x64xbf16>, vector<64x64xf32> -> vector<64x64xf32>
    %40 = arith.addf %33, %39 : vector<64x64xf32>
    %cst_19 = arith.constant 0.000000e+00 : bf16
    %41 = vector.broadcast %cst_19 : bf16 to vector<8x32xbf16>
    %42 = vector.extract_strided_slice %1 {offsets = [8, 0], sizes = [56, 32], strides = [1, 1]} : vector<64x32xbf16> to vector<56x32xbf16>
    %43 = tpu.concatenate %42, %41 in 0 : vector<56x32xbf16>, vector<8x32xbf16> -> vector<64x32xbf16>
    %44 = vector.extract_strided_slice %4 {offsets = [7, 0, 0], sizes = [1, 32, 64], strides = [1, 1, 1]} : vector<9x32x64xbf16> to vector<1x32x64xbf16>
    %45 = vector.shape_cast %44 : vector<1x32x64xbf16> to vector<32x64xbf16>
    %cst_20 = arith.constant dense<0.000000e+00> : vector<64x64xf32>
    %46 = tpu.matmul %43, %45, %cst_20 {dimension_numbers = #tpu.dot_dimension_numbers<[1], [0], [0], [1], [0, 0, 1, 1], [], []>} : vector<64x32xbf16>, vector<32x64xbf16>, vector<64x64xf32> -> vector<64x64xf32>
    %47 = arith.addf %40, %46 : vector<64x64xf32>
    %cst_21 = arith.constant 0.000000e+00 : bf16
    %48 = vector.broadcast %cst_21 : bf16 to vector<9x32xbf16>
    %49 = vector.extract_strided_slice %0 {offsets = [9, 0], sizes = [55, 32], strides = [1, 1]} : vector<64x32xbf16> to vector<55x32xbf16>
    %50 = tpu.concatenate %49, %48 in 0 : vector<55x32xbf16>, vector<9x32xbf16> -> vector<64x32xbf16>
    %51 = vector.extract_strided_slice %4 {offsets = [8, 0, 0], sizes = [1, 32, 64], strides = [1, 1, 1]} : vector<9x32x64xbf16> to vector<1x32x64xbf16>
    %52 = vector.shape_cast %51 : vector<1x32x64xbf16> to vector<32x64xbf16>
    %cst_22 = arith.constant dense<0.000000e+00> : vector<64x64xf32>
    %53 = tpu.matmul %50, %52, %cst_22 {dimension_numbers = #tpu.dot_dimension_numbers<[1], [0], [0], [1], [0, 0, 1, 1], [], []>} : vector<64x32xbf16>, vector<32x64xbf16>, vector<64x64xf32> -> vector<64x64xf32>
    %54 = arith.addf %47, %53 : vector<64x64xf32>
    %55 = vector.extract_strided_slice %4 {offsets = [0, 0, 0], sizes = [1, 32, 64], strides = [1, 1, 1]} : vector<9x32x64xbf16> to vector<1x32x64xbf16>
    %56 = vector.shape_cast %55 : vector<1x32x64xbf16> to vector<32x64xbf16>
    %cst_23 = arith.constant dense<0.000000e+00> : vector<64x64xf32>
    %57 = tpu.matmul %1, %56, %cst_23 {dimension_numbers = #tpu.dot_dimension_numbers<[1], [0], [0], [1], [0, 0, 1, 1], [], []>} : vector<64x32xbf16>, vector<32x64xbf16>, vector<64x64xf32> -> vector<64x64xf32>
    %58 = vector.extract_strided_slice %4 {offsets = [1, 0, 0], sizes = [1, 32, 64], strides = [1, 1, 1]} : vector<9x32x64xbf16> to vector<1x32x64xbf16>
    %59 = vector.shape_cast %58 : vector<1x32x64xbf16> to vector<32x64xbf16>
    %cst_24 = arith.constant dense<0.000000e+00> : vector<64x64xf32>
    %60 = tpu.matmul %14, %59, %cst_24 {dimension_numbers = #tpu.dot_dimension_numbers<[1], [0], [0], [1], [0, 0, 1, 1], [], []>} : vector<64x32xbf16>, vector<32x64xbf16>, vector<64x64xf32> -> vector<64x64xf32>
    %61 = arith.addf %57, %60 : vector<64x64xf32>
    %cst_25 = arith.constant 0.000000e+00 : bf16
    %62 = vector.broadcast %cst_25 : bf16 to vector<1x32xbf16>
    %63 = vector.extract_strided_slice %1 {offsets = [1, 0], sizes = [63, 32], strides = [1, 1]} : vector<64x32xbf16> to vector<63x32xbf16>
    %64 = tpu.concatenate %63, %62 in 0 : vector<63x32xbf16>, vector<1x32xbf16> -> vector<64x32xbf16>
    %65 = vector.extract_strided_slice %4 {offsets = [2, 0, 0], sizes = [1, 32, 64], strides = [1, 1, 1]} : vector<9x32x64xbf16> to vector<1x32x64xbf16>
    %66 = vector.shape_cast %65 : vector<1x32x64xbf16> to vector<32x64xbf16>
    %cst_26 = arith.constant dense<0.000000e+00> : vector<64x64xf32>
    %67 = tpu.matmul %64, %66, %cst_26 {dimension_numbers = #tpu.dot_dimension_numbers<[1], [0], [0], [1], [0, 0, 1, 1], [], []>} : vector<64x32xbf16>, vector<32x64xbf16>, vector<64x64xf32> -> vector<64x64xf32>
    %68 = arith.addf %61, %67 : vector<64x64xf32>
    %69 = vector.extract_strided_slice %4 {offsets = [3, 0, 0], sizes = [1, 32, 64], strides = [1, 1, 1]} : vector<9x32x64xbf16> to vector<1x32x64xbf16>
    %70 = vector.shape_cast %69 : vector<1x32x64xbf16> to vector<32x64xbf16>
    %cst_27 = arith.constant dense<0.000000e+00> : vector<64x64xf32>
    %71 = tpu.matmul %3, %70, %cst_27 {dimension_numbers = #tpu.dot_dimension_numbers<[1], [0], [0], [1], [0, 0, 1, 1], [], []>} : vector<64x32xbf16>, vector<32x64xbf16>, vector<64x64xf32> -> vector<64x64xf32>
    %72 = arith.addf %68, %71 : vector<64x64xf32>
    %73 = vector.extract_strided_slice %4 {offsets = [4, 0, 0], sizes = [1, 32, 64], strides = [1, 1, 1]} : vector<9x32x64xbf16> to vector<1x32x64xbf16>
    %74 = vector.shape_cast %73 : vector<1x32x64xbf16> to vector<32x64xbf16>
    %cst_28 = arith.constant dense<0.000000e+00> : vector<64x64xf32>
    %75 = tpu.matmul %29, %74, %cst_28 {dimension_numbers = #tpu.dot_dimension_numbers<[1], [0], [0], [1], [0, 0, 1, 1], [], []>} : vector<64x32xbf16>, vector<32x64xbf16>, vector<64x64xf32> -> vector<64x64xf32>
    %76 = arith.addf %72, %75 : vector<64x64xf32>
    %cst_29 = arith.constant 0.000000e+00 : bf16
    %77 = vector.broadcast %cst_29 : bf16 to vector<1x32xbf16>
    %78 = vector.extract_strided_slice %3 {offsets = [1, 0], sizes = [63, 32], strides = [1, 1]} : vector<64x32xbf16> to vector<63x32xbf16>
    %79 = tpu.concatenate %78, %77 in 0 : vector<63x32xbf16>, vector<1x32xbf16> -> vector<64x32xbf16>
    %80 = vector.extract_strided_slice %4 {offsets = [5, 0, 0], sizes = [1, 32, 64], strides = [1, 1, 1]} : vector<9x32x64xbf16> to vector<1x32x64xbf16>
    %81 = vector.shape_cast %80 : vector<1x32x64xbf16> to vector<32x64xbf16>
    %cst_30 = arith.constant dense<0.000000e+00> : vector<64x64xf32>
    %82 = tpu.matmul %79, %81, %cst_30 {dimension_numbers = #tpu.dot_dimension_numbers<[1], [0], [0], [1], [0, 0, 1, 1], [], []>} : vector<64x32xbf16>, vector<32x64xbf16>, vector<64x64xf32> -> vector<64x64xf32>
    %83 = arith.addf %76, %82 : vector<64x64xf32>
    %84 = vector.extract_strided_slice %4 {offsets = [6, 0, 0], sizes = [1, 32, 64], strides = [1, 1, 1]} : vector<9x32x64xbf16> to vector<1x32x64xbf16>
    %85 = vector.shape_cast %84 : vector<1x32x64xbf16> to vector<32x64xbf16>
    %cst_31 = arith.constant dense<0.000000e+00> : vector<64x64xf32>
    %86 = tpu.matmul %43, %85, %cst_31 {dimension_numbers = #tpu.dot_dimension_numbers<[1], [0], [0], [1], [0, 0, 1, 1], [], []>} : vector<64x32xbf16>, vector<32x64xbf16>, vector<64x64xf32> -> vector<64x64xf32>
    %87 = arith.addf %83, %86 : vector<64x64xf32>
    %88 = vector.extract_strided_slice %4 {offsets = [7, 0, 0], sizes = [1, 32, 64], strides = [1, 1, 1]} : vector<9x32x64xbf16> to vector<1x32x64xbf16>
    %89 = vector.shape_cast %88 : vector<1x32x64xbf16> to vector<32x64xbf16>
    %cst_32 = arith.constant dense<0.000000e+00> : vector<64x64xf32>
    %90 = tpu.matmul %50, %89, %cst_32 {dimension_numbers = #tpu.dot_dimension_numbers<[1], [0], [0], [1], [0, 0, 1, 1], [], []>} : vector<64x32xbf16>, vector<32x64xbf16>, vector<64x64xf32> -> vector<64x64xf32>
    %91 = arith.addf %87, %90 : vector<64x64xf32>
    %cst_33 = arith.constant 0.000000e+00 : bf16
    %92 = vector.broadcast %cst_33 : bf16 to vector<9x32xbf16>
    %93 = vector.extract_strided_slice %1 {offsets = [9, 0], sizes = [55, 32], strides = [1, 1]} : vector<64x32xbf16> to vector<55x32xbf16>
    %94 = tpu.concatenate %93, %92 in 0 : vector<55x32xbf16>, vector<9x32xbf16> -> vector<64x32xbf16>
    %95 = vector.extract_strided_slice %4 {offsets = [8, 0, 0], sizes = [1, 32, 64], strides = [1, 1, 1]} : vector<9x32x64xbf16> to vector<1x32x64xbf16>
    %96 = vector.shape_cast %95 : vector<1x32x64xbf16> to vector<32x64xbf16>
    %cst_34 = arith.constant dense<0.000000e+00> : vector<64x64xf32>
    %97 = tpu.matmul %94, %96, %cst_34 {dimension_numbers = #tpu.dot_dimension_numbers<[1], [0], [0], [1], [0, 0, 1, 1], [], []>} : vector<64x32xbf16>, vector<32x64xbf16>, vector<64x64xf32> -> vector<64x64xf32>
    %98 = arith.addf %91, %97 : vector<64x64xf32>
    %99 = arith.maximumf %54, %98 : vector<64x64xf32>
    %100 = vector.extract_strided_slice %4 {offsets = [0, 0, 0], sizes = [1, 32, 64], strides = [1, 1, 1]} : vector<9x32x64xbf16> to vector<1x32x64xbf16>
    %101 = vector.shape_cast %100 : vector<1x32x64xbf16> to vector<32x64xbf16>
    %cst_35 = arith.constant dense<0.000000e+00> : vector<64x64xf32>
    %102 = tpu.matmul %2, %101, %cst_35 {dimension_numbers = #tpu.dot_dimension_numbers<[1], [0], [0], [1], [0, 0, 1, 1], [], []>} : vector<64x32xbf16>, vector<32x64xbf16>, vector<64x64xf32> -> vector<64x64xf32>
    %103 = vector.extract_strided_slice %4 {offsets = [1, 0, 0], sizes = [1, 32, 64], strides = [1, 1, 1]} : vector<9x32x64xbf16> to vector<1x32x64xbf16>
    %104 = vector.shape_cast %103 : vector<1x32x64xbf16> to vector<32x64xbf16>
    %cst_36 = arith.constant dense<0.000000e+00> : vector<64x64xf32>
    %105 = tpu.matmul %3, %104, %cst_36 {dimension_numbers = #tpu.dot_dimension_numbers<[1], [0], [0], [1], [0, 0, 1, 1], [], []>} : vector<64x32xbf16>, vector<32x64xbf16>, vector<64x64xf32> -> vector<64x64xf32>
    %106 = arith.addf %102, %105 : vector<64x64xf32>
    %107 = vector.extract_strided_slice %4 {offsets = [2, 0, 0], sizes = [1, 32, 64], strides = [1, 1, 1]} : vector<9x32x64xbf16> to vector<1x32x64xbf16>
    %108 = vector.shape_cast %107 : vector<1x32x64xbf16> to vector<32x64xbf16>
    %cst_37 = arith.constant dense<0.000000e+00> : vector<64x64xf32>
    %109 = tpu.matmul %29, %108, %cst_37 {dimension_numbers = #tpu.dot_dimension_numbers<[1], [0], [0], [1], [0, 0, 1, 1], [], []>} : vector<64x32xbf16>, vector<32x64xbf16>, vector<64x64xf32> -> vector<64x64xf32>
    %110 = arith.addf %106, %109 : vector<64x64xf32>
    %111 = vector.extract_strided_slice %4 {offsets = [3, 0, 0], sizes = [1, 32, 64], strides = [1, 1, 1]} : vector<9x32x64xbf16> to vector<1x32x64xbf16>
    %112 = vector.shape_cast %111 : vector<1x32x64xbf16> to vector<32x64xbf16>
    %cst_38 = arith.constant dense<0.000000e+00> : vector<64x64xf32>
    %113 = tpu.matmul %36, %112, %cst_38 {dimension_numbers = #tpu.dot_dimension_numbers<[1], [0], [0], [1], [0, 0, 1, 1], [], []>} : vector<64x32xbf16>, vector<32x64xbf16>, vector<64x64xf32> -> vector<64x64xf32>
    %114 = arith.addf %110, %113 : vector<64x64xf32>
    %115 = vector.extract_strided_slice %4 {offsets = [4, 0, 0], sizes = [1, 32, 64], strides = [1, 1, 1]} : vector<9x32x64xbf16> to vector<1x32x64xbf16>
    %116 = vector.shape_cast %115 : vector<1x32x64xbf16> to vector<32x64xbf16>
    %cst_39 = arith.constant dense<0.000000e+00> : vector<64x64xf32>
    %117 = tpu.matmul %43, %116, %cst_39 {dimension_numbers = #tpu.dot_dimension_numbers<[1], [0], [0], [1], [0, 0, 1, 1], [], []>} : vector<64x32xbf16>, vector<32x64xbf16>, vector<64x64xf32> -> vector<64x64xf32>
    %118 = arith.addf %114, %117 : vector<64x64xf32>
    %119 = vector.extract_strided_slice %4 {offsets = [5, 0, 0], sizes = [1, 32, 64], strides = [1, 1, 1]} : vector<9x32x64xbf16> to vector<1x32x64xbf16>
    %120 = vector.shape_cast %119 : vector<1x32x64xbf16> to vector<32x64xbf16>
    %cst_40 = arith.constant dense<0.000000e+00> : vector<64x64xf32>
    %121 = tpu.matmul %50, %120, %cst_40 {dimension_numbers = #tpu.dot_dimension_numbers<[1], [0], [0], [1], [0, 0, 1, 1], [], []>} : vector<64x32xbf16>, vector<32x64xbf16>, vector<64x64xf32> -> vector<64x64xf32>
    %122 = arith.addf %118, %121 : vector<64x64xf32>
    %cst_41 = arith.constant 0.000000e+00 : bf16
    %123 = vector.broadcast %cst_41 : bf16 to vector<8x32xbf16>
    %124 = vector.extract_strided_slice %2 {offsets = [8, 0], sizes = [56, 32], strides = [1, 1]} : vector<64x32xbf16> to vector<56x32xbf16>
    %125 = tpu.concatenate %124, %123 in 0 : vector<56x32xbf16>, vector<8x32xbf16> -> vector<64x32xbf16>
    %126 = vector.extract_strided_slice %4 {offsets = [6, 0, 0], sizes = [1, 32, 64], strides = [1, 1, 1]} : vector<9x32x64xbf16> to vector<1x32x64xbf16>
    %127 = vector.shape_cast %126 : vector<1x32x64xbf16> to vector<32x64xbf16>
    %cst_42 = arith.constant dense<0.000000e+00> : vector<64x64xf32>
    %128 = tpu.matmul %125, %127, %cst_42 {dimension_numbers = #tpu.dot_dimension_numbers<[1], [0], [0], [1], [0, 0, 1, 1], [], []>} : vector<64x32xbf16>, vector<32x64xbf16>, vector<64x64xf32> -> vector<64x64xf32>
    %129 = arith.addf %122, %128 : vector<64x64xf32>
    %cst_43 = arith.constant 0.000000e+00 : bf16
    %130 = vector.broadcast %cst_43 : bf16 to vector<8x32xbf16>
    %131 = vector.extract_strided_slice %3 {offsets = [8, 0], sizes = [56, 32], strides = [1, 1]} : vector<64x32xbf16> to vector<56x32xbf16>
    %132 = tpu.concatenate %131, %130 in 0 : vector<56x32xbf16>, vector<8x32xbf16> -> vector<64x32xbf16>
    %133 = vector.extract_strided_slice %4 {offsets = [7, 0, 0], sizes = [1, 32, 64], strides = [1, 1, 1]} : vector<9x32x64xbf16> to vector<1x32x64xbf16>
    %134 = vector.shape_cast %133 : vector<1x32x64xbf16> to vector<32x64xbf16>
    %cst_44 = arith.constant dense<0.000000e+00> : vector<64x64xf32>
    %135 = tpu.matmul %132, %134, %cst_44 {dimension_numbers = #tpu.dot_dimension_numbers<[1], [0], [0], [1], [0, 0, 1, 1], [], []>} : vector<64x32xbf16>, vector<32x64xbf16>, vector<64x64xf32> -> vector<64x64xf32>
    %136 = arith.addf %129, %135 : vector<64x64xf32>
    %cst_45 = arith.constant 0.000000e+00 : bf16
    %137 = vector.broadcast %cst_45 : bf16 to vector<9x32xbf16>
    %138 = vector.extract_strided_slice %2 {offsets = [9, 0], sizes = [55, 32], strides = [1, 1]} : vector<64x32xbf16> to vector<55x32xbf16>
    %139 = tpu.concatenate %138, %137 in 0 : vector<55x32xbf16>, vector<9x32xbf16> -> vector<64x32xbf16>
    %140 = vector.extract_strided_slice %4 {offsets = [8, 0, 0], sizes = [1, 32, 64], strides = [1, 1, 1]} : vector<9x32x64xbf16> to vector<1x32x64xbf16>
    %141 = vector.shape_cast %140 : vector<1x32x64xbf16> to vector<32x64xbf16>
    %cst_46 = arith.constant dense<0.000000e+00> : vector<64x64xf32>
    %142 = tpu.matmul %139, %141, %cst_46 {dimension_numbers = #tpu.dot_dimension_numbers<[1], [0], [0], [1], [0, 0, 1, 1], [], []>} : vector<64x32xbf16>, vector<32x64xbf16>, vector<64x64xf32> -> vector<64x64xf32>
    %143 = arith.addf %136, %142 : vector<64x64xf32>
    %144 = arith.maximumf %99, %143 : vector<64x64xf32>
    %145 = vector.extract_strided_slice %4 {offsets = [0, 0, 0], sizes = [1, 32, 64], strides = [1, 1, 1]} : vector<9x32x64xbf16> to vector<1x32x64xbf16>
    %146 = vector.shape_cast %145 : vector<1x32x64xbf16> to vector<32x64xbf16>
    %cst_47 = arith.constant dense<0.000000e+00> : vector<64x64xf32>
    %147 = tpu.matmul %3, %146, %cst_47 {dimension_numbers = #tpu.dot_dimension_numbers<[1], [0], [0], [1], [0, 0, 1, 1], [], []>} : vector<64x32xbf16>, vector<32x64xbf16>, vector<64x64xf32> -> vector<64x64xf32>
    %148 = vector.extract_strided_slice %4 {offsets = [1, 0, 0], sizes = [1, 32, 64], strides = [1, 1, 1]} : vector<9x32x64xbf16> to vector<1x32x64xbf16>
    %149 = vector.shape_cast %148 : vector<1x32x64xbf16> to vector<32x64xbf16>
    %cst_48 = arith.constant dense<0.000000e+00> : vector<64x64xf32>
    %150 = tpu.matmul %29, %149, %cst_48 {dimension_numbers = #tpu.dot_dimension_numbers<[1], [0], [0], [1], [0, 0, 1, 1], [], []>} : vector<64x32xbf16>, vector<32x64xbf16>, vector<64x64xf32> -> vector<64x64xf32>
    %151 = arith.addf %147, %150 : vector<64x64xf32>
    %152 = vector.extract_strided_slice %4 {offsets = [2, 0, 0], sizes = [1, 32, 64], strides = [1, 1, 1]} : vector<9x32x64xbf16> to vector<1x32x64xbf16>
    %153 = vector.shape_cast %152 : vector<1x32x64xbf16> to vector<32x64xbf16>
    %cst_49 = arith.constant dense<0.000000e+00> : vector<64x64xf32>
    %154 = tpu.matmul %79, %153, %cst_49 {dimension_numbers = #tpu.dot_dimension_numbers<[1], [0], [0], [1], [0, 0, 1, 1], [], []>} : vector<64x32xbf16>, vector<32x64xbf16>, vector<64x64xf32> -> vector<64x64xf32>
    %155 = arith.addf %151, %154 : vector<64x64xf32>
    %156 = vector.extract_strided_slice %4 {offsets = [3, 0, 0], sizes = [1, 32, 64], strides = [1, 1, 1]} : vector<9x32x64xbf16> to vector<1x32x64xbf16>
    %157 = vector.shape_cast %156 : vector<1x32x64xbf16> to vector<32x64xbf16>
    %cst_50 = arith.constant dense<0.000000e+00> : vector<64x64xf32>
    %158 = tpu.matmul %43, %157, %cst_50 {dimension_numbers = #tpu.dot_dimension_numbers<[1], [0], [0], [1], [0, 0, 1, 1], [], []>} : vector<64x32xbf16>, vector<32x64xbf16>, vector<64x64xf32> -> vector<64x64xf32>
    %159 = arith.addf %155, %158 : vector<64x64xf32>
    %160 = vector.extract_strided_slice %4 {offsets = [4, 0, 0], sizes = [1, 32, 64], strides = [1, 1, 1]} : vector<9x32x64xbf16> to vector<1x32x64xbf16>
    %161 = vector.shape_cast %160 : vector<1x32x64xbf16> to vector<32x64xbf16>
    %cst_51 = arith.constant dense<0.000000e+00> : vector<64x64xf32>
    %162 = tpu.matmul %50, %161, %cst_51 {dimension_numbers = #tpu.dot_dimension_numbers<[1], [0], [0], [1], [0, 0, 1, 1], [], []>} : vector<64x32xbf16>, vector<32x64xbf16>, vector<64x64xf32> -> vector<64x64xf32>
    %163 = arith.addf %159, %162 : vector<64x64xf32>
    %164 = vector.extract_strided_slice %4 {offsets = [5, 0, 0], sizes = [1, 32, 64], strides = [1, 1, 1]} : vector<9x32x64xbf16> to vector<1x32x64xbf16>
    %165 = vector.shape_cast %164 : vector<1x32x64xbf16> to vector<32x64xbf16>
    %cst_52 = arith.constant dense<0.000000e+00> : vector<64x64xf32>
    %166 = tpu.matmul %94, %165, %cst_52 {dimension_numbers = #tpu.dot_dimension_numbers<[1], [0], [0], [1], [0, 0, 1, 1], [], []>} : vector<64x32xbf16>, vector<32x64xbf16>, vector<64x64xf32> -> vector<64x64xf32>
    %167 = arith.addf %163, %166 : vector<64x64xf32>
    %168 = vector.extract_strided_slice %4 {offsets = [6, 0, 0], sizes = [1, 32, 64], strides = [1, 1, 1]} : vector<9x32x64xbf16> to vector<1x32x64xbf16>
    %169 = vector.shape_cast %168 : vector<1x32x64xbf16> to vector<32x64xbf16>
    %cst_53 = arith.constant dense<0.000000e+00> : vector<64x64xf32>
    %170 = tpu.matmul %132, %169, %cst_53 {dimension_numbers = #tpu.dot_dimension_numbers<[1], [0], [0], [1], [0, 0, 1, 1], [], []>} : vector<64x32xbf16>, vector<32x64xbf16>, vector<64x64xf32> -> vector<64x64xf32>
    %171 = arith.addf %167, %170 : vector<64x64xf32>
    %172 = vector.extract_strided_slice %4 {offsets = [7, 0, 0], sizes = [1, 32, 64], strides = [1, 1, 1]} : vector<9x32x64xbf16> to vector<1x32x64xbf16>
    %173 = vector.shape_cast %172 : vector<1x32x64xbf16> to vector<32x64xbf16>
    %cst_54 = arith.constant dense<0.000000e+00> : vector<64x64xf32>
    %174 = tpu.matmul %139, %173, %cst_54 {dimension_numbers = #tpu.dot_dimension_numbers<[1], [0], [0], [1], [0, 0, 1, 1], [], []>} : vector<64x32xbf16>, vector<32x64xbf16>, vector<64x64xf32> -> vector<64x64xf32>
    %175 = arith.addf %171, %174 : vector<64x64xf32>
    %cst_55 = arith.constant 0.000000e+00 : bf16
    %176 = vector.broadcast %cst_55 : bf16 to vector<9x32xbf16>
    %177 = vector.extract_strided_slice %3 {offsets = [9, 0], sizes = [55, 32], strides = [1, 1]} : vector<64x32xbf16> to vector<55x32xbf16>
    %178 = tpu.concatenate %177, %176 in 0 : vector<55x32xbf16>, vector<9x32xbf16> -> vector<64x32xbf16>
    %179 = vector.extract_strided_slice %4 {offsets = [8, 0, 0], sizes = [1, 32, 64], strides = [1, 1, 1]} : vector<9x32x64xbf16> to vector<1x32x64xbf16>
    %180 = vector.shape_cast %179 : vector<1x32x64xbf16> to vector<32x64xbf16>
    %cst_56 = arith.constant dense<0.000000e+00> : vector<64x64xf32>
    %181 = tpu.matmul %178, %180, %cst_56 {dimension_numbers = #tpu.dot_dimension_numbers<[1], [0], [0], [1], [0, 0, 1, 1], [], []>} : vector<64x32xbf16>, vector<32x64xbf16>, vector<64x64xf32> -> vector<64x64xf32>
    %182 = arith.addf %175, %181 : vector<64x64xf32>
    %183 = arith.maximumf %144, %182 : vector<64x64xf32>
    %c0_57 = arith.constant 0 : index
    %c0_58 = arith.constant 0 : index
    %184 = vector.load %arg6[%c0_57, %c0_58] : memref<1x64xf32, #tpu.memory_space<vmem>>, vector<1x64xf32>
    %185 = vector.broadcast %184 : vector<1x64xf32> to vector<64x64xf32>
    %186 = arith.addf %183, %185 : vector<64x64xf32>
    %cst_59 = arith.constant 0.000000e+00 : f32
    %187 = vector.broadcast %cst_59 : f32 to vector<64x64xf32>
    %188 = arith.maximumf %186, %187 : vector<64x64xf32>
    %189 = arith.truncf %188 : vector<64x64xf32> to vector<64x64xbf16>
    %c0_60 = arith.constant 0 : index
    %c0_61 = arith.constant 0 : index
    %190 = vector.load %arg7[%c0_60, %c0_61] : memref<64x64xbf16, #tpu.memory_space<vmem>>, vector<64x64xbf16>
    tpu.vector_store %arg7[%c0_60, %c0_61], %189 {strides = array<i32>} : memref<64x64xbf16, #tpu.memory_space<vmem>>, vector<64x64xbf16>,
    return
  }
  func.func @transform_0(%arg0: i32) -> (i32, i32) {
    %c0_i32 = arith.constant 0 : i32
    %c0_i32_0 = arith.constant 0 : i32
    return %arg0, %c0_i32 : i32, i32
  }
  func.func @transform_1(%arg0: i32) -> (i32, i32) {
    %c0_i32 = arith.constant 0 : i32
    %c0_i32_0 = arith.constant 0 : i32
    return %arg0, %c0_i32 : i32, i32
  }
  func.func @transform_2(%arg0: i32) -> (i32, i32) {
    %c0_i32 = arith.constant 0 : i32
    %c0_i32_0 = arith.constant 0 : i32
    return %arg0, %c0_i32 : i32, i32
  }
  func.func @transform_3(%arg0: i32) -> (i32, i32) {
    %c0_i32 = arith.constant 0 : i32
    %c0_i32_0 = arith.constant 0 : i32
    return %arg0, %c0_i32 : i32, i32
  }
  func.func @transform_4(%arg0: i32) -> (i32, i32, i32) {
    %c0_i32 = arith.constant 0 : i32
    %c0_i32_0 = arith.constant 0 : i32
    %c0_i32_1 = arith.constant 0 : i32
    %c0_i32_2 = arith.constant 0 : i32
    return %c0_i32, %c0_i32_0, %c0_i32_1 : i32, i32, i32
  }
  func.func @transform_5(%arg0: i32) -> (i32, i32) {
    %c0_i32 = arith.constant 0 : i32
    %c0_i32_0 = arith.constant 0 : i32
    %c0_i32_1 = arith.constant 0 : i32
    return %c0_i32, %c0_i32_0 : i32, i32
  }
  func.func @transform_6(%arg0: i32) -> (i32, i32) {
    %c0_i32 = arith.constant 0 : i32
    %c0_i32_0 = arith.constant 0 : i32
    return %arg0, %c0_i32 : i32, i32
  }
}

</mosaic_0001>

<bundles_post_ra>
// kernel: cnn_forward.3
= control target key start
LH: loop header
LB: loop body
LE: loop exit
PB: predicated region body
PF: predicated region fallthrough
CT: control target
= control target key end

     0   :  { %8 = vsyncpa [#allocation3], 0  ;;  %s2652_s0 = inlined_call_operand.vmem [shape: bf16[64,32], index: 0, kind: input, shape index: {}]   ;;  %s2653_s1 = inlined_call_operand.hbm [shape: bf16[2,32,1536], index: 1, kind: input, shape index: {}]   ;;  %s2654_s2 = inlined_call_operand.hbm [shape: f32[1,512], index: 2, kind: input, shape index: {}]   ;;  %s2655_s3 = inlined_call_operand.vmem [shape: bf16[64,512], index: 3, kind: output, shape index: {}]  }
   0x1   :  { %9 = vsyncpa [#allocation5], 0  ;;  %s2065_s12 = smov 0  }
   0x2 LB: > { %s1759_s13 = sadd.s32 4294967295, %s2038_s12   ;;  %p1761_p0 = scmp.ge.s32.totalorder %s2038_s12, 1  ;;  %s2038_s12 = sphi %s2065_s12, %s15_s12  }
   0x3   : > { %p114_p1 = scmp.lt.s32.totalorder %s2038_s12, 3  ;;  %s2040_s14 = smov [#allocation2]  }
   0x4   : > { %s126_s15 = sshll.u32 %s2040_s14, 4  ;;  %p2079_p3 = scmp.eq.s32.totalorder %s1759_s13, 0  ;;  %s127_s15 = int_to_ptr.vmem [resolvable:$true] %s126_s15 }
   0x5   : > { %p2073_p2 = pnand %p1761_p0, %p114_p1  ;;  %s2041_s18 = smov [#allocation4]  }
   0x6   : > { %s140_s19 = sshll.u32 %s2041_s18, 4  ;;  %s1983_s21 = scalar_lea.vmem %s127_s15, 6144  ;;  %s141_s19 = int_to_ptr.vmem [resolvable:$true] %s140_s19 }
   0x7   : > { %p1874_p4 = pneg %p2073_p2  ;;  %p1984_p7 = scmp.ne.s32.totalorder %s127_s15, %s1983_s21 }
   0x8   : > { %p1991_p10 = scmp.lt.s32.totalorder %s127_s15, %s127_s15  ;;  %p1992_p11 = scmp.lt.s32.totalorder %s1983_s21, %s1983_s21 }
   0x9   : > { %p2087_p5 = pnand %p2079_p3, %p1874_p4 }
   0xa   : > { %p1993_p12 = por %p1992_p11, %p1991_p10 }
   0xb   : > { %p1974_p6 = pneg %p2087_p5 }
   0xd   : > { %p1986_p8 = pnand %p1984_p7, %p1974_p6 }
   0xf   : > { %p1987_p9 = pneg %p1986_p8 }
  0x11   : > { %p1994_p13 = pnand %p1993_p12, %p1987_p9 }
  0x13   : > { %1997 = shalt.err (!%p1994_p13)
}
  0x14   : > { %s2042_s22 = smov 768   ;;  %s2043_s23 = smov 48  }
  0x15   : > { %1877 = dma.hbm_to_vmem [thread:$0]  (!%p2087_p5), %s2653_s1, 6144, %s127_s15, [#allocation3], %s2042_s22, %s2042_s22, %s2043_s23  }
  0x16   : > { %s2009_s26 = scalar_lea.vmem %s141_s19, 64  ;;  %p2017_p7 = scmp.lt.s32.totalorder %s141_s19, %s141_s19 }
  0x17   : > { %p2010_p0 = scmp.ne.s32.totalorder %s141_s19, %s2009_s26  ;;  %p2018_p8 = scmp.lt.s32.totalorder %s2009_s26, %s2009_s26 }
  0x19   : > { %p2012_p1 = pnand %p2010_p0, %p1974_p6  ;;  %p2019_p10 = por %p2018_p8, %p2017_p7 }
  0x1b   : > { %p2013_p4 = pneg %p2012_p1 }
  0x1d   : > { %p2020_p9 = pnand %p2019_p10, %p2013_p4 }
  0x1f   : > { %2023 = shalt.err (!%p2020_p9)
}
  0x20   : > { %1880 = dma.hbm_to_vmem [thread:$0]  (!%p2087_p5), %s2654_s2, 64, %s141_s19, [#allocation5]  }
  0x21   : > { %162 = sbr.rel (%p2073_p2) target bundleno = 375 (0x177), region = 32 }
  0x26   : > { %2029 = dma.done.wait (%p2079_p3), [#allocation3], 6144  }
  0x27   : > { %2031 = vsyncadd (%p2079_p3), [#allocation3], 4294961152 }
  0x28   : > { %2033 = dma.done.wait (%p2079_p3), [#allocation5], 64  }
  0x29   : > { %2035 = vsyncadd (%p2079_p3), [#allocation5], 4294967232  ;;  %s1768_s29 = sshll.u32 %s1759_s13, 2  ;;  %v2044_v0 = vmov 0   ;;  %v1898_v1 = vld [vmem:[#allocation2 + $0x64] ss:$48 sps:$4 sm:$0xff]  }
  0x2a   : > { %402 = vmatprep.mubr.bf16.mxu0 %v2044_v0  ;;  %455 = vmatprep.mubr.bf16.mxu1 %v2044_v0  ;;  %p192_p2 = scmp.lt.s32.totalorder %s1768_s29, 7  ;;  %v1900_v2 = vld [vmem:[#allocation2 + $0x6c] ss:$48 sps:$4 sm:$0xff]   ;;  %v1902_v3 = vld [vmem:[#allocation2 + $0x60] ss:$48 sps:$4 sm:$0xff]   ;;  %vm363_vm0 = vcmask 261120  }
  0x2b   : > { %382 = vmatprep.subr.bf16.mxu0 %v1898_v1  ;;  %v1903_v4 = vld [vmem:[#allocation2 + $0x68] ss:$48 sps:$4 sm:$0xff]   ;;  %435 = vmatprep.subr.bf16.mxu1 %v1900_v2  ;;  %v1904_v5 = vld [vmem:[#allocation2 + $0x4] ss:$48 sps:$4 sm:$0xff]   ;;  %v1906_v6 = vld [vmem:[#allocation2 + $0xc] ss:$48 sps:$4 sm:$0xff]  }
  0x2c   : > { %s2673_s29 = smov (!%p192_p2, %s1768_s29), 7  ;;  %383 = vmatpush1.bf16.msra.mxu0 %v1902_v3  ;;  %436 = vmatpush1.bf16.msra.mxu1 %v1903_v4  ;;  %v1908_v7 = vld [vmem:[#allocation2] ss:$48 sps:$4 sm:$0xff]   ;;  %v1909_v8 = vld [vmem:[#allocation2 + $0x8] ss:$48 sps:$4 sm:$0xff]   ;;  %vm704_vm1 = vcmask 1046528  }
  0x2d   : > { %s1769_s30 = sshll.u32 %s2673_s29, 2  ;;  %384 = vmatprep.subr.bf16.mxu0 %v1904_v5  ;;  %437 = vmatprep.subr.bf16.mxu1 %v1906_v6  ;;  %v1911_v10 = vld [vmem:[#allocation2 + $0x70] ss:$48 sps:$4 sm:$0xff]   ;;  %v1913_v11 = vld [vmem:[#allocation2 + $0x74] ss:$48 sps:$4 sm:$0xff]   ;;  %vm785_vm2 = vcmask 1045504  }
  0x2e   : > { %s195_s6 = scalar_lea.vmem %s2652_s0, %s1769_s30  ;;  %v1914_v12 = vld [vmem:[#allocation2 + $0x78] ss:$48 sps:$4 sm:$0xff]   ;;  %v1916_v13 = vld [vmem:[#allocation2 + $0x7c] ss:$48 sps:$4 sm:$0xff]   ;;  %v1918_v14 = vld [vmem:[#allocation2 + $0x10] ss:$48 sps:$4 sm:$0xff]  }
  0x2f   : > { %v2129_v9 = vld [vmem:[%s195_s6] sm:$0xff]   ;;  %v1921_v16 = vld [vmem:[#allocation2 + $0x18] ss:$48 sps:$4 sm:$0xff]   ;;  %v1923_v17 = vld [vmem:[#allocation2 + $0x1c] ss:$48 sps:$4 sm:$0xff]   ;;  %s1857_s7 = sshll.u32 %s2673_s29, 4 }
  0x30   : > { %385 = vmatpush1.bf16.msra.mxu0 %v1908_v7  ;;  %438 = vmatpush1.bf16.msra.mxu1 %v1909_v8  ;;  %v1920_v15 = vld [vmem:[#allocation2 + $0x14] ss:$48 sps:$4 sm:$0xff]   ;;  %v2137_v19 = vld [vmem:[%s195_s6 + $0x8] sm:$0xff]   ;;  %v1924_v21 = vld [vmem:[#allocation2 + $0x80] ss:$48 sps:$4 sm:$0xff]   ;;  %s2616_s10 = scalar_lea.vmem %s2655_s3, %s1857_s7 }
  0x31   : > { %488 = vmatprep.subr.bf16.mxu0 %v1913_v11  ;;  %541 = vmatprep.subr.bf16.mxu1 %v1916_v13  ;;  %v1926_v18 = vld [vmem:[#allocation2 + $0x84] ss:$48 sps:$4 sm:$0xff]   ;;  %v1929_v20 = vld [vmem:[#allocation2 + $0x8c] ss:$48 sps:$4 sm:$0xff]   ;;  %v1927_v22 = vld [vmem:[#allocation2 + $0x88] ss:$48 sps:$4 sm:$0xff]  }
  0x32   : > { %v1932_v23 = vld [vmem:[#allocation2 + $0x24] ss:$48 sps:$4 sm:$0xff]   ;;  %v1935_v24 = vld [vmem:[#allocation2 + $0x2c] ss:$48 sps:$4 sm:$0xff]   ;;  %v1930_v25 = vld [vmem:[#allocation2 + $0x20] ss:$48 sps:$4 sm:$0xff]  }
  0x33   : > { %1799 = vmatmul.mubr.msk.bf16.vlgmr.msra.gmra.mxu0 %vm363_vm0, %v2129_v9  ;;  %1801 = vmatmul.mubr.msk.bf16.vlgmr.msra.gmra.mxu1 %vm363_vm0, %v2129_v9  ;;  %v1933_v26 = vld [vmem:[#allocation2 + $0x28] ss:$48 sps:$4 sm:$0xff]   ;;  %v1938_v27 = vld [vmem:[#allocation2 + $0x124] ss:$48 sps:$4 sm:$0xff]   ;;  %v1941_v28 = vld [vmem:[#allocation2 + $0x12c] ss:$48 sps:$4 sm:$0xff]  }
  0x34   : > { %489 = vmatpush1.bf16.msra.mxu0 %v1911_v10  ;;  %542 = vmatpush1.bf16.msra.mxu1 %v1914_v12  ;;  %v1936_v29 = vld [vmem:[#allocation2 + $0x120] ss:$48 sps:$4 sm:$0xff]   ;;  %v1939_v30 = vld [vmem:[#allocation2 + $0x128] ss:$48 sps:$4 sm:$0xff]   ;;  %v1944_v31 = vld [vmem:[#allocation2 + $0xc4] ss:$48 sps:$4 sm:$0xff]  }
  0x35   : > { %412 = vmatprep.mubr.bf16.mxu0 %v2044_v0  ;;  %465 = vmatprep.mubr.bf16.mxu1 %v2044_v0  ;;  %v1947_v32 = vld [vmem:[#allocation2 + $0xcc] ss:$48 sps:$4 sm:$0xff]   ;;  %v1942_v33 = vld [vmem:[#allocation2 + $0xc0] ss:$48 sps:$4 sm:$0xff]   ;;  %v1945_v34 = vld [vmem:[#allocation2 + $0xc8] ss:$48 sps:$4 sm:$0xff]  }
  0x36   : > { %490 = vmatprep.subr.bf16.mxu0 %v1920_v15  ;;  %543 = vmatprep.subr.bf16.mxu1 %v1923_v17  ;;  %v1950_v35 = vld [vmem:[#allocation2 + $0x134] ss:$48 sps:$4 sm:$0xff]   ;;  %v1953_v36 = vld [vmem:[#allocation2 + $0x13c] ss:$48 sps:$4 sm:$0xff]   ;;  %v1948_v37 = vld [vmem:[#allocation2 + $0x130] ss:$48 sps:$4 sm:$0xff]  }
  0x37   : > { %v1951_v38 = vld [vmem:[#allocation2 + $0x138] ss:$48 sps:$4 sm:$0xff]   ;;  %v1956_v39 = vld [vmem:[#allocation2 + $0xd4] ss:$48 sps:$4 sm:$0xff]   ;;  %v1959_v40 = vld [vmem:[#allocation2 + $0xdc] ss:$48 sps:$4 sm:$0xff]  }
  0x38   : > { %491 = vmatpush1.bf16.msra.mxu0 %v1918_v14  ;;  %544 = vmatpush1.bf16.msra.mxu1 %v1921_v16  ;;  %v1954_v41 = vld [vmem:[#allocation2 + $0xd0] ss:$48 sps:$4 sm:$0xff]   ;;  %v1957_v42 = vld [vmem:[#allocation2 + $0xd8] ss:$48 sps:$4 sm:$0xff]   ;;  %v1962_v43 = vld [vmem:[#allocation2 + $0x144] ss:$48 sps:$4 sm:$0xff]  }
  0x39   : > { %594 = vmatprep.subr.bf16.mxu0 %v1926_v18  ;;  %647 = vmatprep.subr.bf16.mxu1 %v1929_v20  ;;  %v1965_v44 = vld [vmem:[#allocation2 + $0x14c] ss:$48 sps:$4 sm:$0xff]   ;;  %v1960_v45 = vld [vmem:[#allocation2 + $0x140] ss:$48 sps:$4 sm:$0xff]   ;;  %v1963_v46 = vld [vmem:[#allocation2 + $0x148] ss:$48 sps:$4 sm:$0xff]  }
  0x3a   : > { %v1968_v47 = vld [vmem:[#allocation2 + $0xe4] ss:$48 sps:$4 sm:$0xff]   ;;  %v1971_v48 = vld [vmem:[#allocation2 + $0xec] ss:$48 sps:$4 sm:$0xff]   ;;  %v1966_v49 = vld [vmem:[#allocation2 + $0xe0] ss:$48 sps:$4 sm:$0xff]  }
  0x3b   : > { %1800 = vmatmul.mubr.msk.bf16.gmra.mxu0 %vm363_vm0, %v2137_v19  ;;  %1802 = vmatmul.mubr.msk.bf16.gmra.mxu1 %vm363_vm0, %v2137_v19  ;;  %v1969_v50 = vld [vmem:[#allocation2 + $0xe8] ss:$48 sps:$4 sm:$0xff]  }
  0x3c   : > { %508 = vmatprep.mubr.bf16.mxu0 %v2044_v0  ;;  %561 = vmatprep.mubr.bf16.mxu1 %v2044_v0 }
  0x43   : > { %1803 = vmatmul.mubr.msk.bf16.vlgmr.msra.gmra.mxu0 %vm363_vm0, %v2129_v9  ;;  %1805 = vmatmul.mubr.msk.bf16.vlgmr.msra.gmra.mxu1 %vm363_vm0, %v2129_v9 }
  0x44   : > { %595 = vmatpush1.bf16.msra.mxu0 %v1924_v21  ;;  %648 = vmatpush1.bf16.msra.mxu1 %v1927_v22 }
  0x45   : > { %518 = vmatprep.mubr.bf16.mxu0 %v2044_v0  ;;  %571 = vmatprep.mubr.bf16.mxu1 %v2044_v0 }
  0x46   : > { %596 = vmatprep.subr.bf16.mxu0 %v1932_v23  ;;  %649 = vmatprep.subr.bf16.mxu1 %v1935_v24 }
  0x48   : > { %597 = vmatpush1.bf16.msra.mxu0 %v1930_v25  ;;  %650 = vmatpush1.bf16.msra.mxu1 %v1933_v26 }
  0x49   : > { %1007 = vmatprep.subr.bf16.mxu0 %v1938_v27  ;;  %1060 = vmatprep.subr.bf16.mxu1 %v1941_v28 }
  0x4b   : > { %1804 = vmatmul.mubr.msk.bf16.gmra.mxu0 %vm363_vm0, %v2137_v19  ;;  %1806 = vmatmul.mubr.msk.bf16.gmra.mxu1 %vm363_vm0, %v2137_v19 }
  0x4c   : > { %614 = vmatprep.mubr.bf16.mxu0 %v2044_v0  ;;  %667 = vmatprep.mubr.bf16.mxu1 %v2044_v0 }
  0x53   : > { %1807 = vmatmul.mubr.msk.bf16.vlgmr.msra.gmra.mxu0 %vm363_vm0, %v2129_v9  ;;  %1809 = vmatmul.mubr.msk.bf16.vlgmr.msra.gmra.mxu1 %vm363_vm0, %v2129_v9 }
  0x54   : > { %1008 = vmatpush1.bf16.msra.mxu0 %v1936_v29  ;;  %1061 = vmatpush1.bf16.msra.mxu1 %v1939_v30 }
  0x55   : > { %624 = vmatprep.mubr.bf16.mxu0 %v2044_v0  ;;  %677 = vmatprep.mubr.bf16.mxu1 %v2044_v0 }
  0x56   : > { %1009 = vmatprep.subr.bf16.mxu0 %v1944_v31  ;;  %1062 = vmatprep.subr.bf16.mxu1 %v1947_v32 }
  0x58   : > { %1010 = vmatpush1.bf16.msra.mxu0 %v1942_v33  ;;  %1063 = vmatpush1.bf16.msra.mxu1 %v1945_v34 }
  0x59   : > { %1113 = vmatprep.subr.bf16.mxu0 %v1950_v35  ;;  %1166 = vmatprep.subr.bf16.mxu1 %v1953_v36 }
  0x5b   : > { %1808 = vmatmul.mubr.msk.bf16.gmra.mxu0 %vm363_vm0, %v2137_v19  ;;  %1810 = vmatmul.mubr.msk.bf16.gmra.mxu1 %vm363_vm0, %v2137_v19 }
  0x5c   : > { %1027 = vmatprep.mubr.bf16.mxu0 %v2044_v0  ;;  %1080 = vmatprep.mubr.bf16.mxu1 %v2044_v0 }
  0x63   : > { %1835 = vmatmul.mubr.msk.bf16.vlgmr.msra.gmra.mxu0 %vm363_vm0, %v2129_v9  ;;  %1837 = vmatmul.mubr.msk.bf16.vlgmr.msra.gmra.mxu1 %vm363_vm0, %v2129_v9 }
  0x64   : > { %1114 = vmatpush1.bf16.msra.mxu0 %v1948_v37  ;;  %1167 = vmatpush1.bf16.msra.mxu1 %v1951_v38 }
  0x65   : > { %1037 = vmatprep.mubr.bf16.mxu0 %v2044_v0  ;;  %1090 = vmatprep.mubr.bf16.mxu1 %v2044_v0 }
  0x66   : > { %1115 = vmatprep.subr.bf16.mxu0 %v1956_v39  ;;  %1168 = vmatprep.subr.bf16.mxu1 %v1959_v40 }
  0x68   : > { %1116 = vmatpush1.bf16.msra.mxu0 %v1954_v41  ;;  %1169 = vmatpush1.bf16.msra.mxu1 %v1957_v42 }
  0x69   : > { %1219 = vmatprep.subr.bf16.mxu0 %v1962_v43  ;;  %1272 = vmatprep.subr.bf16.mxu1 %v1965_v44 }
  0x6b   : > { %1836 = vmatmul.mubr.msk.bf16.gmra.mxu0 %vm363_vm0, %v2137_v19  ;;  %1838 = vmatmul.mubr.msk.bf16.gmra.mxu1 %vm363_vm0, %v2137_v19 }
  0x6c   : > { %1133 = vmatprep.mubr.bf16.mxu0 %v2044_v0  ;;  %1186 = vmatprep.mubr.bf16.mxu1 %v2044_v0 }
  0x73   : > { %1839 = vmatmul.mubr.msk.bf16.vlgmr.msra.gmra.mxu0 %vm363_vm0, %v2129_v9  ;;  %1841 = vmatmul.mubr.msk.bf16.vlgmr.msra.gmra.mxu1 %vm363_vm0, %v2129_v9 }
  0x74   : > { %1220 = vmatpush1.bf16.msra.mxu0 %v1960_v45  ;;  %1273 = vmatpush1.bf16.msra.mxu1 %v1963_v46 }
  0x75   : > { %1143 = vmatprep.mubr.bf16.mxu0 %v2044_v0  ;;  %1196 = vmatprep.mubr.bf16.mxu1 %v2044_v0 }
  0x76   : > { %1221 = vmatprep.subr.bf16.mxu0 %v1968_v47  ;;  %1274 = vmatprep.subr.bf16.mxu1 %v1971_v48 }
  0x78   : > { %1222 = vmatpush1.bf16.msra.mxu0 %v1966_v49  ;;  %1275 = vmatpush1.bf16.msra.mxu1 %v1969_v50 }
  0x7b   : > { %1840 = vmatmul.mubr.msk.bf16.gmra.mxu0 %vm363_vm0, %v2137_v19  ;;  %1842 = vmatmul.mubr.msk.bf16.gmra.mxu1 %vm363_vm0, %v2137_v19 }
  0x7c   : > { %1239 = vmatprep.mubr.bf16.mxu0 %v2044_v0  ;;  %1292 = vmatprep.mubr.bf16.mxu1 %v2044_v0 }
  0x83   : > { %1843 = vmatmul.mubr.msk.bf16.vlgmr.msra.gmra.mxu0 %vm363_vm0, %v2129_v9  ;;  %1845 = vmatmul.mubr.msk.bf16.vlgmr.msra.gmra.mxu1 %vm363_vm0, %v2129_v9 }
  0x84   : > { %1249 = vmatprep.mubr.bf16.mxu0 %v2044_v0  ;;  %1302 = vmatprep.mubr.bf16.mxu1 %v2044_v0 }
  0x8b   : > { %1844 = vmatmul.mubr.msk.bf16.gmra.mxu0 %vm363_vm0, %v2137_v19  ;;  %1846 = vmatmul.mubr.msk.bf16.gmra.mxu1 %vm363_vm0, %v2137_v19 }
  0xf3   : > { %v404_v51 = vpop.f32.mrf.mxu0  ;;  %v457_v52 = vpop.f32.mrf.mxu1 }
  0xf5   : > { %v406_v53 = vpop.f32.mrf.mxu0  ;;  %v459_v54 = vpop.f32.mrf.mxu1 }
  0xf7   : > { %v408_v55 = vpop.f32.mrf.mxu0  ;;  %v461_v56 = vpop.f32.mrf.mxu1 }
  0xf9   : > { %v410_v57 = vpop.f32.mrf.mxu0  ;;  %v463_v58 = vpop.f32.mrf.mxu1 }
  0xfb   : > { %v414_v59 = vpop.f32.mrf.mxu0  ;;  %v467_v60 = vpop.f32.mrf.mxu1 }
  0xfd   : > { %v2203_v61 = vpop.f32.mrf.mxu0  ;;  %v2205_v62 = vpop.f32.mrf.mxu1 }
  0xff   : > { %v418_v63 = vpop.f32.mrf.mxu0  ;;  %v471_v0 = vpop.f32.mrf.mxu1 }
 0x101   : > { %v2207_v1 = vpop.f32.mrf.mxu0  ;;  %v2209_v2 = vpop.f32.mrf.mxu1 }
 0x103   : > { %v510_v3 = vpop.f32.mrf.mxu0  ;;  %v563_v4 = vpop.f32.mrf.mxu1 }
 0x104   : > { %v705_v9 = vrot.slane %v510_v3, 1  ;;  %v711_v10 = vrot.slane %v563_v4, 1 }
 0x105   : > { %v512_v5 = vpop.f32.mrf.mxu0  ;;  %v565_v6 = vpop.f32.mrf.mxu1 }
 0x106   : > { %v708_v13 = vrot.slane %v512_v5, 1  ;;  %v714_v14 = vrot.slane %v565_v6, 1 }
 0x107   : > { %v514_v7 = vpop.f32.mrf.mxu0  ;;  %v567_v8 = vpop.f32.mrf.mxu1 }
 0x108   : > { %v706_v11 = vrot.slane %v514_v7, 1  ;;  %v712_v12 = vrot.slane %v567_v8, 1 }
 0x109   : > { %v516_v15 = vpop.f32.mrf.mxu0  ;;  %v569_v16 = vpop.f32.mrf.mxu1 }
 0x10a   : > { %v707_v17 = vsel %vm704_vm1, %v705_v9, %v706_v11  ;;  %v713_v18 = vsel %vm704_vm1, %v711_v10, %v712_v12  ;;  %v709_v19 = vrot.slane %v516_v15, 1  ;;  %v715_v20 = vrot.slane %v569_v16, 1 }
 0x10b   : > { %v2213_v21 = vadd.f32 %v707_v17, %v404_v51  ;;  %v2215_v22 = vadd.f32 %v713_v18, %v457_v52  ;;  %v520_v23 = vpop.f32.mrf.mxu0  ;;  %v573_v24 = vpop.f32.mrf.mxu1 }
 0x10c   : > { %v710_v25 = vsel %vm704_vm1, %v708_v13, %v709_v19  ;;  %v716_v26 = vsel %vm704_vm1, %v714_v14, %v715_v20  ;;  %v717_v27 = vrot.slane %v520_v23, 1  ;;  %v721_v28 = vrot.slane %v573_v24, 1 }
 0x10d   : > { %v2219_v29 = vadd.f32 %v710_v25, %v406_v53  ;;  %v2221_v30 = vadd.f32 %v716_v26, %v459_v54  ;;  %v2223_v31 = vpop.f32.mrf.mxu0  ;;  %v575_v32 = vpop.f32.mrf.mxu1 }
 0x10e   : > { %v718_v33 = vsel %vm704_vm1, %v706_v11, %v717_v27  ;;  %v722_v34 = vsel %vm704_vm1, %v712_v12, %v721_v28  ;;  %v719_v35 = vrot.slane %v2223_v31, 1  ;;  %v723_v36 = vrot.slane %v575_v32, 1 }
 0x10f   : > { %v2228_v37 = vadd.f32 %v718_v33, %v408_v55  ;;  %v2230_v38 = vadd.f32 %v722_v34, %v461_v56  ;;  %v524_v39 = vpop.f32.mrf.mxu0  ;;  %v577_v40 = vpop.f32.mrf.mxu1 }
 0x110   : > { %v720_v41 = vsel %vm704_vm1, %v709_v19, %v719_v35  ;;  %v724_v42 = vsel %vm704_vm1, %v715_v20, %v723_v36  ;;  %v725_v43 = vrot.slane %v524_v39, 1  ;;  %v729_v44 = vrot.slane %v577_v40, 1 }
 0x111   : > { %v2236_v45 = vadd.f32 %v720_v41, %v410_v57  ;;  %v2238_v46 = vadd.f32 %v724_v42, %v463_v58  ;;  %v526_v47 = vpop.f32.mrf.mxu0  ;;  %v579_v48 = vpop.f32.mrf.mxu1  ;;  %v1571_v20 = vlaneseq  ;;  %v1569_v41 = vld [vmem:[#allocation4] sm:$0xf] }
 0x112   : > { %v726_v49 = vsel %vm704_vm1, %v717_v27, %v725_v43  ;;  %v749_v50 = vsel %vm704_vm1, %v725_v43, 0.0  ;;  %v730_v51 = vsel %vm704_vm1, %v721_v28, %v729_v44  ;;  %v751_v52 = vsel %vm704_vm1, %v729_v44, 0.0 }
 0x113   : > { %v2244_v53 = vadd.f32 %v726_v49, %v414_v59  ;;  %v2246_v54 = vadd.f32 %v749_v50, %v418_v63  ;;  %v2248_v55 = vadd.f32 %v730_v51, %v467_v60  ;;  %v2250_v56 = vadd.f32 %v751_v52, %v471_v0  ;;  %v2252_v57 = vpop.f32.mrf.mxu0  ;;  %v2254_v58 = vpop.f32.mrf.mxu1 }
 0x114   : > { %v731_v3 = vrot.slane %v579_v48, 1  ;;  %v1572_v27 = vshrl.u32 %v1571_v20, 7  ;;  %v727_v40 = vrot.slane %v526_v47, 1 }
 0x115   : > { %v2256_v4 = vpop.f32.mrf.mxu0  ;;  %v2258_v5 = vpop.f32.mrf.mxu1 }
 0x116   : > { %v732_v6 = vsel %vm704_vm1, %v723_v36, %v731_v3  ;;  %v752_v59 = vsel %vm704_vm1, %v731_v3, 0.0  ;;  %v1573_v36 = vsub.s32 0, %v1572_v27  ;;  %v1581_v39 = vsub.s32 2, %v1572_v27 }
 0x117   : > { %v2263_v63 = vadd.f32 %v732_v6, %v2205_v62  ;;  %v2266_v60 = vadd.f32 %v752_v59, %v2209_v2  ;;  %v2268_v0 = vpop.f32.mrf.mxu0  ;;  %v2270_v7 = vpop.f32.mrf.mxu1  ;;  %v1577_v51 = vsub.s32 1, %v1572_v27  ;;  %v1585_v52 = vsub.s32 3, %v1572_v27 }
 0x118   : > { %v2324_v49 = vrot.slane %v1569_v41, %v1573_v36  ;;  %v2326_v50 = vrot.slane %v1569_v41, %v1581_v39  ;;  %v728_v47 = vsel %vm704_vm1, %v719_v35, %v727_v40  ;;  %v750_v3 = vsel %vm704_vm1, %v727_v40, 0.0 }
 0x119   : > { %2660 = vst [vmem:[#allocation8_spill] sm:$0xff] %v2263_v63  ;;  %2661 = vst [vmem:[#allocation9_spill] sm:$0xff] %v2266_v60  ;;  %v2272_v8 = vpop.f32.mrf.mxu0  ;;  %v2274_v9 = vpop.f32.mrf.mxu1  ;;  %v786_v6 = vrot.slane %v2252_v57, 2  ;;  %v792_v59 = vrot.slane %v2254_v58, 2  ;;  %v787_v20 = vrot.slane %v2268_v0, 2  ;;  %v789_v0 = vrot.slane %v2256_v4, 2 }
 0x11a   : > { %2664 = vst [vmem:[#allocation12_spill] sm:$0xff] %v2326_v50  ;;  %v790_v36 = vrot.slane %v2272_v8, 2  ;;  %v796_v39 = vrot.slane %v2274_v9, 2  ;;  %v2362_v58 = vrot.slane %v1569_v41, %v1585_v52 }
 0x11b   : > { %v2276_v10 = vpop.f32.mrf.mxu0  ;;  %v2278_v11 = vpop.f32.mrf.mxu1  ;;  %v788_v4 = vsel %vm785_vm2, %v786_v6, %v787_v20 }
 0x11c   : > { %v798_v31 = vrot.slane %v2276_v10, 2  ;;  %v802_v35 = vrot.slane %v2278_v11, 2  ;;  %v2355_v10 = vadd.f32 %v728_v47, %v2203_v61  ;;  %v2358_v11 = vadd.f32 %v750_v3, %v2207_v1 }
 0x11d   : > { %v2280_v12 = vpop.f32.mrf.mxu0  ;;  %v2282_v13 = vpop.f32.mrf.mxu1 }
 0x11e   : > { %v800_v57 = vrot.slane %v2280_v12, 2  ;;  %v2360_v12 = vrot.slane %v1569_v41, %v1577_v51  ;;  %v799_v61 = vsel %vm785_vm2, %v787_v20, %v798_v31  ;;  %v2665_v51 = vrot.slane %v2282_v13, 2 }
 0x11f   : > { %v2284_v62 = vpop.f32.mrf.mxu0  ;;  %v2286_v2 = vpop.f32.mrf.mxu1  ;;  %v2379_v20 = vadd.f32 %v788_v4, %v2213_v21 }
 0x120   : > { %v806_v8 = vrot.slane %v2284_v62, 2  ;;  %v810_v9 = vrot.slane %v2286_v2, 2  ;;  %v791_v62 = vsel %vm785_vm2, %v789_v0, %v790_v36  ;;  %v801_v1 = vsel %vm785_vm2, %v790_v36, %v800_v57 }
 0x121   : > { %v2288_v14 = vpop.f32.mrf.mxu0  ;;  %v2290_v15 = vpop.f32.mrf.mxu1  ;;  %v805_v41 = vsel %vm785_vm2, %v796_v39, %v2665_v51  ;;  %v2385_v36 = vadd.f32 %v791_v62, %v2219_v29 }
 0x122   : > { %v807_v52 = vsel %vm785_vm2, %v798_v31, %v806_v8  ;;  %v830_v3 = vsel %vm785_vm2, %v806_v8, 0.0  ;;  %v811_v6 = vsel %vm785_vm2, %v802_v35, %v810_v9  ;;  %v2391_v31 = vadd.f32 %v799_v61, %v2228_v37 }
 0x123   : > { %v2292_v16 = vpop.f32.mrf.mxu0  ;;  %v2294_v17 = vpop.f32.mrf.mxu1  ;;  %v2400_v21 = vadd.f32 %v805_v41, %v2238_v46  ;;  %v2403_v29 = vadd.f32 %v807_v52, %v2244_v53  ;;  %v832_v37 = vsel %vm785_vm2, %v810_v9, 0.0  ;;  %v2410_v4 = vadd.f32 %v811_v6, %v2248_v55 }
 0x124   : > { %v812_v46 = vrot.slane %v2290_v15, 2 }
 0x125   : > { %v2296_v18 = vpop.f32.mrf.mxu0  ;;  %v2298_v19 = vpop.f32.mrf.mxu1 }
 0x127   : > { %v2300_v23 = vpop.f32.mrf.mxu0  ;;  %v2302_v24 = vpop.f32.mrf.mxu1 }
 0x129   : > { %v2304_v25 = vpop.f32.mrf.mxu0  ;;  %v2306_v26 = vpop.f32.mrf.mxu1 }
 0x12b   : > { %v2308_v28 = vpop.f32.mrf.mxu0  ;;  %v2310_v32 = vpop.f32.mrf.mxu1 }
 0x12d   : > { %v2312_v33 = vpop.f32.mrf.mxu0  ;;  %v2314_v34 = vpop.f32.mrf.mxu1 }
 0x12e   : > { %2662 = vst [vmem:[#allocation10_spill] sm:$0xff] %v2314_v34 }
 0x12f   : > { %v2316_v42 = vpop.f32.mrf.mxu0  ;;  %v2318_v43 = vpop.f32.mrf.mxu1 }
 0x131   : > { %v2320_v44 = vpop.f32.mrf.mxu0  ;;  %v2322_v48 = vpop.f32.mrf.mxu1 }
 0x132   : > { %2663 = vst [vmem:[#allocation11_spill] sm:$0xff] %v2322_v48  ;;  %v793_v48 = vrot.slane %v2270_v7, 2  ;;  %v795_v7 = vrot.slane %v2258_v5, 2 }
 0x133   : > { %v2338_v34 = vpop.f32.mrf.mxu0  ;;  %v2340_v27 = vpop.f32.mrf.mxu1 }
 0x134   : > { %v794_v5 = vsel %vm785_vm2, %v792_v59, %v793_v48  ;;  %v797_v2 = vsel %vm785_vm2, %v795_v7, %v796_v39  ;;  %v803_v47 = vsel %vm785_vm2, %v793_v48, %v802_v35  ;;  %v808_v59 = vrot.slane %v2288_v14, 2 }
 0x135   : > { %v2350_v40 = vpop.f32.mrf.mxu0  ;;  %v2352_v60 = vpop.f32.mrf.mxu1  ;;  %v2382_v48 = vadd.f32 %v794_v5, %v2215_v22  ;;  %v2388_v39 = vadd.f32 %v797_v2, %v2221_v30  ;;  %v2394_v35 = vadd.f32 %v803_v47, %v2230_v38  ;;  %v2397_v14 = vadd.f32 %v801_v1, %v2236_v45 }
 0x136   : > { %v2406_v30 = vadd.f32 %v830_v3, %v2246_v54  ;;  %v809_v38 = vsel %vm785_vm2, %v800_v57, %v808_v59  ;;  %v831_v45 = vsel %vm785_vm2, %v808_v59, 0.0  ;;  %v1329_v53 = vrot.slane %v2338_v34, 1 }
 0x137   : > { %v1139_v63 = vpop.f32.mrf.mxu0  ;;  %v1192_v50 = vpop.f32.mrf.mxu1  ;;  %v1335_v9 = vrot.slane %v2340_v27, 1  ;;  %v1332_v55 = vrot.slane %v2350_v40, 1  ;;  %v1338_v15 = vrot.slane %v2352_v60, 1  ;;  %v2426_v34 = vadd.f32 %v832_v37, %v2250_v56 }
 0x138   : > { %v1330_v5 = vrot.slane %v1139_v63, 1  ;;  %v1336_v54 = vrot.slane %v1192_v50, 1  ;;  %v2666_v50 = vrot.slane %v2282_v13, 2  ;;  %v2434_v40 = vsel %vm785_vm2, %v812_v46, 0.0 }
 0x139   : > { %v1141_v0 = vpop.f32.mrf.mxu0  ;;  %v1194_v7 = vpop.f32.mrf.mxu1  ;;  %v2445_v13 = vadd.f32 %v809_v38, %v2355_v10 }
 0x13a   : > { %v1333_v61 = vrot.slane %v1141_v0, 1  ;;  %v1339_v47 = vrot.slane %v1194_v7, 1  ;;  %v2431_v27 = vsel %vm785_vm2, %v2666_v50, %v812_v46  ;;  %v1331_v6 = vsel %vm704_vm1, %v1329_v53, %v1330_v5 }
 0x13b   : > { %v1145_v22 = vpop.f32.mrf.mxu0  ;;  %v1198_v8 = vpop.f32.mrf.mxu1  ;;  %v1337_v0 = vsel %vm704_vm1, %v1335_v9, %v1336_v54 }
 0x13c   : > { %v1341_v1 = vrot.slane %v1145_v22, 1  ;;  %v1345_v57 = vrot.slane %v1198_v8, 1  ;;  %v1334_v7 = vsel %vm704_vm1, %v1332_v55, %v1333_v61  ;;  %v1340_v56 = vsel %vm704_vm1, %v1338_v15, %v1339_v47 }
 0x13d   : > { %v2415_v62 = vpop.f32.mrf.mxu0  ;;  %v2417_v2 = vpop.f32.mrf.mxu1  ;;  %v2448_v8 = vadd.f32 %v831_v45, %v2358_v11  ;;  %v1377_v11 = vadd.f32 %v1331_v6, %v2292_v16  ;;  %v1379_v45 = vadd.f32 %v1337_v0, %v2294_v17 }
 0x13e   : > { %v1343_v63 = vrot.slane %v2415_v62, 1  ;;  %v1347_v52 = vrot.slane %v2417_v2, 1  ;;  %v1342_v37 = vsel %vm704_vm1, %v1330_v5, %v1341_v1  ;;  %v1346_v46 = vsel %vm704_vm1, %v1336_v54, %v1345_v57 }
 0x13f   : > { %v1149_v51 = vpop.f32.mrf.mxu0  ;;  %v1202_v41 = vpop.f32.mrf.mxu1  ;;  %v1378_v5 = vadd.f32 %v1334_v7, %v2296_v18  ;;  %v1380_v54 = vadd.f32 %v1340_v56, %v2298_v19  ;;  %v1383_v50 = vadd.f32 %v1346_v46, %v2302_v24 }
 0x140   : > { %v1349_v3 = vrot.slane %v1149_v51, 1  ;;  %v1353_v22 = vrot.slane %v1202_v41, 1  ;;  %v1344_v9 = vsel %vm704_vm1, %v1333_v61, %v1343_v63  ;;  %v1348_v55 = vsel %vm704_vm1, %v1339_v47, %v1347_v52 }
 0x141   : > { %v2437_v59 = vpop.f32.mrf.mxu0  ;;  %v2439_v60 = vpop.f32.mrf.mxu1  ;;  %v1381_v61 = vadd.f32 %v1342_v37, %v2300_v23  ;;  %v1384_v16 = vadd.f32 %v1348_v55, %v2306_v26 }
 0x142   : > { %v1350_v10 = vsel %vm704_vm1, %v1341_v1, %v1349_v3  ;;  %v1373_v38 = vsel %vm704_vm1, %v1349_v3, 0.0  ;;  %v1354_v47 = vsel %vm704_vm1, %v1345_v57, %v1353_v22  ;;  %v1375_v1 = vsel %vm704_vm1, %v1353_v22, 0.0 }
 0x143   : > { %v1241_v53 = vpop.f32.mrf.mxu0  ;;  %v1294_v51 = vpop.f32.mrf.mxu1  ;;  %v1382_v3 = vadd.f32 %v1344_v9, %v2304_v25  ;;  %v2471_v17 = vadd.f32 %v1350_v10, %v2308_v28  ;;  %v2474_v18 = vadd.f32 %v1373_v38, %v2316_v42  ;;  %v2477_v57 = vadd.f32 %v1354_v47, %v2310_v32 }
 0x144   : > { %v1409_v0 = vrot.slane %v1241_v53, 2  ;;  %v1415_v23 = vrot.slane %v1294_v51, 2  ;;  %v2480_v56 = vadd.f32 %v1375_v1, %v2318_v43  ;;  %v1351_v53 = vrot.slane %v2437_v59, 1 }
 0x145   : > { %v1243_v41 = vpop.f32.mrf.mxu0  ;;  %v1296_v15 = vpop.f32.mrf.mxu1  ;;  %v1355_v51 = vrot.slane %v2439_v60, 1 }
 0x146   : > { %v1412_v25 = vrot.slane %v1243_v41, 2  ;;  %v1418_v26 = vrot.slane %v1296_v15, 2 }
 0x147   : > { %v1245_v19 = vpop.f32.mrf.mxu0  ;;  %v1298_v6 = vpop.f32.mrf.mxu1  ;;  %v1376_v59 = vsel %vm704_vm1, %v1355_v51, 0.0 }
 0x148   : > { %v1410_v7 = vrot.slane %v1245_v19, 2  ;;  %v1416_v24 = vrot.slane %v1298_v6, 2 }
 0x149   : > { %v1247_v22 = vpop.f32.mrf.mxu0  ;;  %v1300_v28 = vpop.f32.mrf.mxu1 }
 0x14a   : > { %v1411_v37 = vsel %vm785_vm2, %v1409_v0, %v1410_v7  ;;  %v1417_v42 = vsel %vm785_vm2, %v1415_v23, %v1416_v24  ;;  %v1413_v46 = vrot.slane %v1247_v22, 2  ;;  %v1419_v9 = vrot.slane %v1300_v28, 2 }
 0x14b   : > { %v1457_v55 = vadd.f32 %v1411_v37, %v1377_v11  ;;  %v1459_v32 = vadd.f32 %v1417_v42, %v1379_v45  ;;  %v1251_v10 = vpop.f32.mrf.mxu0  ;;  %v1304_v38 = vpop.f32.mrf.mxu1 }
 0x14c   : > { %v1414_v43 = vsel %vm785_vm2, %v1412_v25, %v1413_v46  ;;  %v1420_v41 = vsel %vm785_vm2, %v1418_v26, %v1419_v9  ;;  %v1421_v15 = vrot.slane %v1251_v10, 2  ;;  %v1425_v47 = vrot.slane %v1304_v38, 2 }
 0x14d   : > { %v2489_v1 = vmax.f32 %v2379_v20, %v1457_v55  ;;  %v2492_v19 = vmax.f32 %v2382_v48, %v1459_v32  ;;  %v1458_v6 = vadd.f32 %v1414_v43, %v1378_v5  ;;  %v1460_v0 = vadd.f32 %v1420_v41, %v1380_v54  ;;  %v1253_v23 = vpop.f32.mrf.mxu0  ;;  %v2494_v22 = vpop.f32.mrf.mxu1 }
 0x14e   : > { %v1422_v11 = vsel %vm785_vm2, %v1410_v7, %v1421_v15  ;;  %v1426_v45 = vsel %vm785_vm2, %v1416_v24, %v1425_v47  ;;  %v1423_v25 = vrot.slane %v1253_v23, 2  ;;  %v1427_v26 = vrot.slane %v2494_v22, 2 }
 0x14f   : > { %v1352_v20 = vsel %vm704_vm1, %v1343_v63, %v1351_v53  ;;  %v1505_v48 = vrot.slane %v2489_v1, 1  ;;  %v2506_v5 = vmax.f32 %v2385_v36, %v1458_v6  ;;  %v2509_v54 = vmax.f32 %v2388_v39, %v1460_v0  ;;  %v1255_v7 = vpop.f32.mrf.mxu0  ;;  %v1308_v28 = vpop.f32.mrf.mxu1 }
 0x150   : > { %v1461_v24 = vadd.f32 %v1422_v11, %v1381_v61  ;;  %v1463_v37 = vadd.f32 %v1426_v45, %v1383_v50  ;;  %v1424_v42 = vsel %vm785_vm2, %v1413_v46, %v1423_v25  ;;  %v1428_v62 = vsel %vm785_vm2, %v1419_v9, %v1427_v26 }
 0x151   : > { %v1511_v63 = vrot.slane %v2492_v19, 1  ;;  %v1508_v55 = vrot.slane %v2506_v5, 1  ;;  %v1462_v32 = vadd.f32 %v1424_v42, %v1382_v3  ;;  %v1464_v36 = vadd.f32 %v1428_v62, %v1384_v16  ;;  %v1257_v10 = vpop.f32.mrf.mxu0 }
 0x152   : > { %v2518_v39 = vmax.f32 %v2391_v31, %v1461_v24  ;;  %v2521_v38 = vmax.f32 %v2394_v35, %v1463_v37  ;;  %v1429_v61 = vrot.slane %v1255_v7, 2  ;;  %v1433_v50 = vrot.slane %v1308_v28, 2 }
 0x153   : > { %v1514_v46 = vrot.slane %v2509_v54, 1  ;;  %v2525_v43 = vmax.f32 %v2397_v14, %v1462_v32  ;;  %v2528_v9 = vmax.f32 %v2400_v21, %v1464_v36  ;;  %v1431_v41 = vrot.slane %v1257_v10, 2  ;;  %v2667_v10 = vld [vmem:[#allocation12_spill] sm:$0xff] }
 0x154   : > { %v1506_v3 = vrot.slane %v2518_v39, 1  ;;  %v1512_v16 = vrot.slane %v2521_v38, 1  ;;  %v1430_v31 = vsel %vm785_vm2, %v1421_v15, %v1429_v61  ;;  %v1453_v35 = vsel %vm785_vm2, %v1429_v61, 0.0 }
 0x155   : > { %v1509_v6 = vrot.slane %v2525_v43, 1  ;;  %v1515_v0 = vrot.slane %v2528_v9, 1  ;;  %v1465_v23 = vadd.f32 %v1430_v31, %v2471_v17  ;;  %v1469_v14 = vadd.f32 %v1453_v35, %v2474_v18 }
 0x156   : > { %v1507_v21 = vsel %vm704_vm1, %v1505_v48, %v1506_v3  ;;  %v1513_v11 = vsel %vm704_vm1, %v1511_v63, %v1512_v16  ;;  %v1434_v45 = vsel %vm785_vm2, %v1425_v47, %v1433_v50  ;;  %v1455_v7 = vsel %vm785_vm2, %v1433_v50, 0.0 }
 0x157   : > { %v1553_v15 = vmax.f32 %v2489_v1, %v1507_v21  ;;  %v1555_v28 = vmax.f32 %v2492_v19, %v1513_v11  ;;  %v1510_v24 = vsel %vm704_vm1, %v1508_v55, %v1509_v6  ;;  %v2550_v17 = vsel %vm704_vm1, %v1514_v46, %v1515_v0 }
 0x158   : > { %v1554_v18 = vmax.f32 %v2506_v5, %v1510_v24  ;;  %v1556_v47 = vmax.f32 %v2509_v54, %v2550_v17  ;;  %v1481_v48 = vmax.f32 %v2403_v29, %v1465_v23  ;;  %v1485_v1 = vmax.f32 %v2406_v30, %v1469_v14  ;;  %v2669_v14 = vld [vmem:[#allocation9_spill] sm:$0xff] }
 0x159   : > { %v1374_v19 = vsel %vm704_vm1, %v1351_v53, 0.0  ;;  %v1356_v37 = vsel %vm704_vm1, %v1347_v52, %v1355_v51  ;;  %v1467_v42 = vadd.f32 %v1434_v45, %v2477_v57  ;;  %v1471_v5 = vadd.f32 %v1455_v7, %v2480_v56  ;;  %v2671_v7 = vld [vmem:[#allocation11_spill] sm:$0xff] }
 0x15a   : > { %v1386_v62 = vadd.f32 %v1352_v20, %v2312_v33  ;;  %v1517_v63 = vrot.slane %v1481_v48, 1  ;;  %v1525_v29 = vrot.slane %v1485_v1, 1  ;;  %v1432_v30 = vsel %vm785_vm2, %v1423_v25, %v1431_v41  ;;  %v1310_v25 = vpop.f32.mrf.mxu1 }
 0x15b   : > { %v2573_v53 = vmax.f32 %v2410_v4, %v1467_v42  ;;  %v2576_v2 = vmax.f32 %v2426_v34, %v1471_v5  ;;  %v1454_v52 = vsel %vm785_vm2, %v1431_v41, 0.0  ;;  %v1390_v57 = vadd.f32 %v1374_v19, %v2320_v44 }
 0x15c   : > { %v1518_v33 = vsel %vm704_vm1, %v1506_v3, %v1517_v63  ;;  %v1526_v56 = vsel %vm704_vm1, %v1517_v63, %v1525_v29  ;;  %v1466_v20 = vadd.f32 %v1432_v30, %v1386_v62  ;;  %v1591_v60 = vadd.f32 %v2324_v49, %v1553_v15  ;;  %v2668_v3 = vld [vmem:[#allocation8_spill] sm:$0xff] }
 0x15d   : > { %v1557_v51 = vmax.f32 %v2518_v39, %v1518_v33  ;;  %v1561_v55 = vmax.f32 %v1481_v48, %v1526_v56  ;;  %v1521_v4 = vrot.slane %v2573_v53, 1  ;;  %v1549_v34 = vsel %vm704_vm1, %v1525_v29, 0.0 }
 0x15e   : > { %v1529_v32 = vrot.slane %v2576_v2, 1  ;;  %v1470_v36 = vadd.f32 %v1454_v52, %v1390_v57  ;;  %v1482_v44 = vmax.f32 %v2445_v13, %v1466_v20  ;;  %v1593_v61 = vadd.f32 %v2667_v10, %v1555_v28  ;;  %v2670_v13 = vld [vmem:[#allocation10_spill] sm:$0xff] }
 0x15f   : > { %v1522_v50 = vsel %vm704_vm1, %v1512_v16, %v1521_v4  ;;  %v1592_v46 = vadd.f32 %v2360_v12, %v1554_v18  ;;  %v1435_v41 = vrot.slane %v1310_v25, 2  ;;  %v845_v39 = vadd.f32 %v2431_v27, %v2668_v3 }
 0x160   : > { %v1530_v31 = vsel %vm704_vm1, %v1521_v4, %v1529_v32  ;;  %v1559_v35 = vmax.f32 %v2521_v38, %v1522_v50  ;;  %v1486_v23 = vmax.f32 %v2448_v8, %v1470_v36  ;;  %v849_v21 = vadd.f32 %v2434_v40, %v2669_v14 }
 0x161   : > { %v1388_v11 = vadd.f32 %v1356_v37, %v2670_v13  ;;  %v1565_v45 = vmax.f32 %v1485_v1, %v1549_v34  ;;  %v1563_v16 = vmax.f32 %v2573_v53, %v1530_v31  ;;  %v1392_v15 = vadd.f32 %v1376_v59, %v2671_v7 }
 0x162   : > { %v1607_v28 = vmax.f32 %v1591_v60, 0.0  ;;  %v1519_v24 = vrot.slane %v1482_v44, 1  ;;  %v1527_v27 = vrot.slane %v1486_v23, 1  ;;  %v1609_v18 = vmax.f32 %v1593_v61, 0.0 }
 0x163   : > { %v1595_v48 = vadd.f32 %v2324_v49, %v1557_v51  ;;  %v1608_v38 = vmax.f32 %v1592_v46, 0.0  ;;  %v1436_v8 = vsel %vm785_vm2, %v1427_v26, %v1435_v41  ;;  %v1599_v40 = vadd.f32 %v2324_v49, %v1561_v55 }
 0x164   : > { %v1520_v1 = vsel %vm704_vm1, %v1509_v6, %v1519_v24  ;;  %v1528_v19 = vsel %vm704_vm1, %v1519_v24, %v1527_v27  ;;  %v1456_v37 = vsel %vm785_vm2, %v1435_v41, 0.0  ;;  %v1603_v42 = vadd.f32 %v2324_v49, %v1565_v45 }
 0x165   : > { %v1550_v22 = vsel %vm704_vm1, %v1527_v27, 0.0  ;;  %v1558_v26 = vmax.f32 %v2525_v43, %v1520_v1  ;;  %v1562_v5 = vmax.f32 %v1482_v44, %v1528_v19  ;;  %v1551_v62 = vsel %vm704_vm1, %v1529_v32, 0.0 }
 0x166   : > { %v1566_v6 = vmax.f32 %v1486_v23, %v1550_v22  ;;  %v1858_v63 = vpack.c.bf16 %v1608_v38, %v1607_v28  ;;  %v1468_v29 = vadd.f32 %v1436_v8, %v1388_v11  ;;  %v1472_v59 = vadd.f32 %v1456_v37, %v1392_v15 }
 0x167   : > { %v1596_v30 = vadd.f32 %v2360_v12, %v1558_v26  ;;  %v1600_v49 = vadd.f32 %v2360_v12, %v1562_v5  ;;  %v1594_v53 = vadd.f32 %v2362_v58, %v1556_v47  ;;  %v1611_v52 = vmax.f32 %v1595_v48, 0.0 }
 0x168   : > { %v1615_v57 = vmax.f32 %v1599_v40, 0.0  ;;  %v1604_v43 = vadd.f32 %v2360_v12, %v1566_v6  ;;  %1671 = vst [vmem:[%s2616_s10] sm:$0xff] %v1858_v63  ;;  %v1484_v33 = vmax.f32 %v845_v39, %v1468_v29  ;;  %v1488_v25 = vmax.f32 %v849_v21, %v1472_v59 }
 0x169   : > { %v1612_v56 = vmax.f32 %v1596_v30, 0.0  ;;  %v1616_v20 = vmax.f32 %v1600_v49, 0.0  ;;  %v1610_v60 = vmax.f32 %v1594_v53, 0.0  ;;  %v1619_v51 = vmax.f32 %v1603_v42, 0.0 }
 0x16a   : > { %v1567_v55 = vmax.f32 %v2576_v2, %v1551_v62  ;;  %v1620_v4 = vmax.f32 %v1604_v43, 0.0  ;;  %v1523_v54 = vrot.slane %v1484_v33, 1  ;;  %v1531_v34 = vrot.slane %v1488_v25, 1 }
 0x16b   : > { %v1860_v17 = vpack.c.bf16 %v1612_v56, %v1611_v52  ;;  %v1862_v47 = vpack.c.bf16 %v1616_v20, %v1615_v57  ;;  %v1859_v32 = vpack.c.bf16 %v1610_v60, %v1609_v18  ;;  %v1597_v44 = vadd.f32 %v2667_v10, %v1559_v35 }
 0x16c   : > { %v1864_v12 = vpack.c.bf16 %v1620_v4, %v1619_v51  ;;  %v1524_v36 = vsel %vm704_vm1, %v1515_v0, %v1523_v54  ;;  %v1532_v61 = vsel %vm704_vm1, %v1523_v54, %v1531_v34  ;;  %v1552_v2 = vsel %vm704_vm1, %v1531_v34, 0.0 }
 0x16d   : > { %1673 = vst [vmem:[%s2616_s10 + $0x10] sm:$0xff] %v1860_v17  ;;  %v1560_v50 = vmax.f32 %v2528_v9, %v1524_v36  ;;  %1672 = vst [vmem:[%s2616_s10 + $0x8] sm:$0xff] %v1859_v32  ;;  %v1601_v46 = vadd.f32 %v2667_v10, %v1563_v16  ;;  %v1605_v41 = vadd.f32 %v2667_v10, %v1567_v55  ;;  %v1613_v23 = vmax.f32 %v1597_v44, 0.0 }
 0x16e   : > { %1675 = vst [vmem:[%s2616_s10 + $0x20] sm:$0xff] %v1862_v47  ;;  %v1564_v3 = vmax.f32 %v1484_v33, %v1532_v61  ;;  %v1568_v39 = vmax.f32 %v1488_v25, %v1552_v2  ;;  %1677 = vst [vmem:[%s2616_s10 + $0x30] sm:$0xff] %v1864_v12 }
 0x16f   : > { %v1598_v0 = vadd.f32 %v2362_v58, %v1560_v50  ;;  %v1617_v14 = vmax.f32 %v1601_v46, 0.0  ;;  %v1621_v21 = vmax.f32 %v1605_v41, 0.0 }
 0x170   : > { %v1602_v31 = vadd.f32 %v2362_v58, %v1564_v3  ;;  %v1606_v35 = vadd.f32 %v2362_v58, %v1568_v39 }
 0x171   : > { %v1614_v9 = vmax.f32 %v1598_v0, 0.0 }
 0x172   : > { %v1618_v13 = vmax.f32 %v1602_v31, 0.0  ;;  %v1622_v11 = vmax.f32 %v1606_v35, 0.0 }
 0x173   : > { %v1861_v10 = vpack.c.bf16 %v1614_v9, %v1613_v23 }
 0x174   : > { %v1863_v45 = vpack.c.bf16 %v1618_v13, %v1617_v14  ;;  %v1865_v16 = vpack.c.bf16 %v1622_v11, %v1621_v21 }
 0x175   : > { %1674 = vst [vmem:[%s2616_s10 + $0x18] sm:$0xff] %v1861_v10 }
 0x176   : > { %1676 = vst [vmem:[%s2616_s10 + $0x28] sm:$0xff] %v1863_v45  ;;  %1678 = vst [vmem:[%s2616_s10 + $0x38] sm:$0xff] %v1865_v16 }
 0x177 PF: > { %s15_s12 = sadd.s32 1, %s2038_s12  }
 0x178   : > { %p12_p3 = scmp.ge.s32.totalorder %s15_s12, 4  }
 0x17a   :  { %14 = sbr.rel (!%p12_p3) target bundleno = 2 (0x2), region = 72 }
 0x17f   :  { %1703 = vsyncpa [#allocation3], 1 }
 0x180   :  { %1705 = vsyncpa [#allocation3 + $0x1], 1 }
 0x181   :  { %1706 = vsyncpa [#allocation5], 1 }

// kernel: cnn_forward.4
= control target key start
LH: loop header
LB: loop body
LE: loop exit
PB: predicated region body
PF: predicated region fallthrough
CT: control target
= control target key end

     0   :  { %s4758_s21 = smov 0   ;;  %s5844_s0 = inlined_call_operand.vmem [shape: bf16[128,32], index: 0, kind: input, shape index: {}]   ;;  %s5845_s1 = inlined_call_operand.vmem [shape: bf16[128,32], index: 1, kind: input, shape index: {}]   ;;  %s5846_s2 = inlined_call_operand.vmem [shape: bf16[128,32], index: 2, kind: input, shape index: {}]   ;;  %s5847_s3 = inlined_call_operand.vmem [shape: bf16[128,32], index: 3, kind: input, shape index: {}]   ;;  %s5848_s4 = inlined_call_operand.vmem [shape: bf16[9,32,64], index: 4, kind: input, shape index: {}]   ;;  %s5849_s5 = inlined_call_operand.vmem [shape: f32[1,64], index: 5, kind: input, shape index: {}]   ;;  %s5850_s6 = inlined_call_operand.vmem [shape: bf16[128,64], index: 6, kind: output, shape index: {}]  }
   0x1 LB: > { %s3775_s22 = sadd.s32 4294967295, %s4721_s21   ;;  %p3779_p0 = scmp.ge.s32.totalorder %s4721_s21, 1  ;;  %s4721_s21 = sphi %s4758_s21, %s16_s21  }
   0x2   : > { %p246_p1 = scmp.lt.s32.totalorder %s4721_s21, 3 }
   0x4   : > { %p247_p2 = pnand %p3779_p0, %p246_p1 }
   0x6   : > { %250 = sbr.rel (%p247_p2) target bundleno = 514 (0x202), region = 44 }
   0xb   : > { %v4769_v0 = vld [vmem:[%s5848_s4 + $0x18] sm:$0xff]   ;;  %s3780_s25 = sshll.u32 %s3775_s22, 3  ;;  %v4774_v1 = vld [vmem:[%s5848_s4 + $0x8] sm:$0xff]   ;;  %v4780_v2 = vld [vmem:[%s5848_s4 + $0x10] sm:$0xff]   ;;  %vm422_vm0 = vcmask 261120   ;;  %vm638_vm2 = vcmask 1047552  }
   0xc   : > { %p292_p3 = scmp.lt.s32.totalorder %s3780_s25, 15  ;;  %4219 = vmatprep.subr.bf16.mxu0 %v4769_v0  ;;  %5871 = vst [vmem:[#allocation2_spill] sm:$0xff] %v4780_v2  ;;  %4231 = vmatprep.subr.bf16.mxu1 %v4774_v1  ;;  %v4787_v3 = vld [vmem:[%s5848_s4] sm:$0xff]   ;;  %v4794_v4 = vld [vmem:[%s5848_s4 + $0x28] sm:$0xff]   ;;  %v4802_v5 = vld [vmem:[%s5848_s4 + $0x38] sm:$0xff]   ;;  %vm1102_vm4 = vcmask 1043456  }
   0xd   : > { %4220 = vmatpush3.bf16.msra.mxu0 %v4769_v0  ;;  %4232 = vmatpush3.bf16.msra.mxu1 %v4774_v1  ;;  %v4850_v17 = vld [vmem:[%s5848_s4 + $0x20] sm:$0xff]   ;;  %v4902_v32 = vld [vmem:[%s5848_s4 + $0x30] sm:$0xff]   ;;  %v4911_v35 = vld [vmem:[%s5848_s4 + $0x48] sm:$0xff]   ;;  %vm609_vm1 = vsmask.f32 7424  ;;  %vm3674_vm7 = vcmask 519168  }
   0xe   : > { %s5916_s25 = smov (!%p292_p3, %s3780_s25), 15  ;;  %4221 = vmatprep.subr.bf16.mxu0 %v4780_v2  ;;  %4233 = vmatprep.subr.bf16.mxu1 %v4787_v3  ;;  %v4932_v44 = vld [vmem:[%s5848_s4 + $0x58] sm:$0xff]   ;;  %vm4973_vm3 = vmand %vm638_vm2, %vm609_vm1  ;;  %vm1333_vm5 = vsmask.f32 3328 }
   0xf   : > { %s4797_s10 = sshll.u32 %s5916_s25, 2  ;;  %vm5241_vm6 = vmand %vm1102_vm4, %vm1333_vm5 }
  0x10   : > { %s4808_s15 = scalar_lea.vmem %s5845_s1, %s4797_s10  ;;  %s4814_s18 = scalar_lea.vmem %s5844_s0, %s4797_s10 }
  0x11   : > { %4222 = vmatpush3.bf16.msra.mxu0 %v4780_v2  ;;  %v330_v6 = vld [vmem:[%s4808_s15] sm:$0xf]  ;;  %v4819_v7 = vld [vmem:[%s4808_s15 + $0x4] sm:$0xf]  ;;  %4234 = vmatpush3.bf16.msra.mxu1 %v4787_v3  ;;  %v4830_v11 = vld [vmem:[%s4814_s18 + $0x8] sm:$0xf]  ;;  %s4886_s24 = scalar_lea.vmem %s5846_s2, %s4797_s10  ;;  %s4967_s9 = scalar_lea.vmem %s5847_s3, %s4797_s10 }
  0x12   : > { %v322_v8 = vld [vmem:[%s4814_s18] sm:$0xf]  ;;  %v4824_v9 = vcombine.low %v330_v6, %v4819_v7  ;;  %v4827_v10 = vld [vmem:[%s4814_s18 + $0x4] sm:$0xf]  ;;  %v4833_v12 = vld [vmem:[%s4808_s15 + $0x8] sm:$0xf]  ;;  %4243 = vmatprep.subr.bf16.mxu0 %v4794_v4  ;;  %4255 = vmatprep.subr.bf16.mxu1 %v4802_v5  ;;  %s5812_s22 = scalar_lea.vmem %s5850_s6, %s4797_s10 }
  0x13   : > { %v3800_v13 = vcombine.low %v322_v8, %v4827_v10  ;;  %v4838_v14 = vld [vmem:[%s4808_s15 + $0xc] sm:$0xf]  ;;  %v4845_v16 = vld [vmem:[%s4808_s15 + $0x10] sm:$0xf]  ;;  %v4861_v20 = vld [vmem:[%s4808_s15 + $0x14] sm:$0xf] }
  0x14   : > { %v4841_v15 = vld [vmem:[%s4814_s18 + $0xc] sm:$0xf]  ;;  %4223 = vmatprep.mubr.msk.bf16.mxu0 %vm422_vm0, %v4824_v9  ;;  %v4856_v18 = vcombine.low %v4833_v12, %v4838_v14  ;;  %v4864_v21 = vld [vmem:[%s4814_s18 + $0x10] sm:$0xf]  ;;  %v4867_v22 = vld [vmem:[%s4814_s18 + $0x14] sm:$0xf]  ;;  %v4872_v25 = vcombine.low %v4845_v16, %v4861_v20 }
  0x15   : > { %v3801_v19 = vcombine.low %v4830_v11, %v4841_v15  ;;  %4235 = vmatprep.mubr.msk.bf16.mxu1 %vm422_vm0, %v3800_v13  ;;  %v610_v23 = vshrl.u32 %v3800_v13, 16  ;;  %v612_v24 = vshll.u32 %v3800_v13, 16  ;;  %v3802_v26 = vcombine.low %v4864_v21, %v4867_v22  ;;  %v4877_v27 = vld [vmem:[%s4808_s15 + $0x18] sm:$0xf]  ;;  %v4880_v28 = vld [vmem:[%s4808_s15 + $0x1c] sm:$0xf] }
  0x16   : > { %4224 = vmatmul.mubr.msk.bf16.vlgmr.msra.gmra.mxu0 %vm422_vm0, %v4856_v18  ;;  %v4892_v29 = vld [vmem:[%s4814_s18 + $0x18] sm:$0xf]  ;;  %v4895_v30 = vld [vmem:[%s4814_s18 + $0x1c] sm:$0xf]  ;;  %v338_v34 = vld [vmem:[%s4886_s24] sm:$0xf]  ;;  %v4920_v40 = vcombine.low %v4877_v27, %v4880_v28 }
  0x17   : > { %4236 = vmatmul.mubr.msk.bf16.vlgmr.msra.gmra.mxu1 %vm422_vm0, %v3801_v19  ;;  %v614_v31 = vrot.slane %v612_v24, 1  ;;  %4244 = vmatpush3.bf16.msra.mxu0 %v4794_v4  ;;  %v616_v33 = vshll.u32 %v3801_v19, 16  ;;  %v4916_v38 = vld [vmem:[%s4886_s24 + $0x4] sm:$0xf]  ;;  %v623_v39 = vshll.u32 %v3802_v26, 16  ;;  %v3803_v41 = vcombine.low %v4892_v29, %v4895_v30 }
  0x18   : > { %4256 = vmatpush3.bf16.msra.mxu1 %v4802_v5  ;;  %4227 = vmatprep.mubr.msk.bf16.mxu0 %vm422_vm0, %v4872_v25  ;;  %v620_v42 = vshrl.u32 %v3801_v19, 16  ;;  %v4927_v43 = vcombine.low %v338_v34, %v4916_v38  ;;  %v341_v46 = vld [vmem:[%s4886_s24 + $0xc] sm:$0xf]  ;;  %v342_v47 = vld [vmem:[%s4886_s24 + $0x10] sm:$0xf]  ;;  %v627_v48 = vshrl.u32 %v3802_v26, 16 }
  0x19   : > { %4239 = vmatprep.mubr.msk.bf16.mxu1 %vm422_vm0, %v3802_v26  ;;  %4245 = vmatprep.subr.bf16.mxu0 %v4850_v17  ;;  %v615_v36 = vor.u32 %v614_v31, %v610_v23  ;;  %v618_v37 = vrot.slane %v616_v33, 1  ;;  %v630_v49 = vshll.u32 %v3803_v41, 16  ;;  %v4941_v50 = vcombine.low %v341_v46, %v342_v47  ;;  %v4951_v53 = vld [vmem:[%s4886_s24 + $0x8] sm:$0xf]  ;;  %v4955_v57 = vld [vmem:[%s4886_s24 + $0x14] sm:$0xf] }
  0x1a   : > { %4257 = vmatprep.subr.bf16.mxu1 %v4902_v32  ;;  %5872 = vst [vmem:[#allocation3_spill] sm:$0xff] %v4927_v43  ;;  %v625_v51 = vrot.slane %v623_v39, 1  ;;  %v974_v54 = vshll.u32 %v4927_v43, 16  ;;  %v4958_v58 = vcombine.low %v4951_v53, %v341_v46  ;;  %v634_v60 = vshrl.u32 %v3803_v41, 16  ;;  %v4983_v19 = vld [vmem:[%s4886_s24 + $0x18] sm:$0xf] }
  0x1b   : > { %4246 = vmatpush3.bf16.msra.mxu0 %v4850_v17  ;;  %v4935_v45 = vsel %vm609_vm1, %v615_v36, %v618_v37  ;;  %v622_v52 = vor.u32 %v620_v42, %v618_v37  ;;  %v632_v56 = vrot.slane %v630_v49, 1  ;;  %v4970_v61 = vcombine.low %v342_v47, %v4955_v57  ;;  %v4986_v23 = vld [vmem:[%s4886_s24 + $0x1c] sm:$0xf]  ;;  %v4991_v24 = vld [vmem:[%s5848_s4 + $0x40] sm:$0xff]   ;;  %v4996_v26 = vld [vmem:[%s5848_s4 + $0x50] sm:$0xff]  }
  0x1c   : > { %4258 = vmatpush3.bf16.msra.mxu1 %v4902_v32  ;;  %4267 = vmatprep.subr.bf16.mxu0 %v4911_v35  ;;  %v629_v55 = vor.u32 %v627_v48, %v625_v51  ;;  %5873 = vst [vmem:[#allocation4_spill] sm:$0xff] %v4958_v58  ;;  %v972_v63 = vshrl.u32 %v4927_v43, 16  ;;  %v976_v6 = vrot.slane %v974_v54, 1  ;;  %v978_v8 = vshll.u32 %v4958_v58, 16  ;;  %v346_v31 = vld [vmem:[%s4967_s9] sm:$0xf] }
  0x1d   : > { %4279 = vmatprep.subr.bf16.mxu1 %v4932_v44  ;;  %v4961_v59 = vsel %vm609_vm1, %v622_v52, %v625_v51  ;;  %5874 = vst [vmem:[#allocation5_spill] sm:$0xff] %v4970_v61  ;;  %v5004_v33 = vld [vmem:[%s4967_s9 + $0x4] sm:$0xf]  ;;  %v636_v34 = vor.u32 %v634_v60, %v632_v56  ;;  %v5015_v39 = vld [vmem:[%s5848_s4 + $0x68] sm:$0xff]   ;;  %v5026_v42 = vcombine.low %v4983_v19, %v4986_v23  ;;  %v982_v48 = vshrl.u32 %v4958_v58, 16 }
  0x1e   : > { %4228 = vmatmul.mubr.msk.bf16.gmra.mxu0 %vm422_vm0, %v4920_v40  ;;  %v4980_v13 = vsel %vm609_vm1, %v629_v55, %v632_v56  ;;  %v977_v36 = vor.u32 %v976_v6, %v972_v63  ;;  %v980_v37 = vrot.slane %v978_v8, 1  ;;  %v5035_v47 = vcombine.low %v346_v31, %v5004_v33  ;;  %v5055_v56 = vld [vmem:[%s4967_s9 + $0x8] sm:$0xf]  ;;  %v5058_v60 = vld [vmem:[%s4967_s9 + $0xc] sm:$0xf] }
  0x1f   : > { %4240 = vmatmul.mubr.msk.bf16.gmra.mxu1 %vm422_vm0, %v3803_v41  ;;  %4247 = vmatprep.mubr.msk.bf16.mxu0 %vm422_vm0, %v4935_v45  ;;  %v5020_v41 = vld [vmem:[%s5848_s4 + $0x78] sm:$0xff]   ;;  %5877 = vst [vmem:[#allocation6_spill] sm:$0xff] %v5026_v42  ;;  %v5030_v46 = vsel %vm4973_vm3, %v636_v34, 0  ;;  %v985_v49 = vshll.u32 %v4970_v61, 16  ;;  %v989_v52 = vshrl.u32 %v4970_v61, 16  ;;  %v992_v54 = vshll.u32 %v5026_v42, 16 }
  0x20   : > { %4259 = vmatprep.mubr.msk.bf16.mxu1 %vm422_vm0, %v4927_v43  ;;  %v5040_v51 = vsel %vm609_vm1, %v977_v36, %v980_v37  ;;  %v984_v55 = vor.u32 %v982_v48, %v980_v37  ;;  %v5061_v6 = vld [vmem:[%s4967_s9 + $0x10] sm:$0xf]  ;;  %v5064_v8 = vld [vmem:[%s4967_s9 + $0x14] sm:$0xf]  ;;  %v5068_v36 = vcombine.low %v5055_v56, %v5058_v60  ;;  %v996_v48 = vshrl.u32 %v5026_v42, 16 }
  0x21   : > { %v987_v63 = vrot.slane %v985_v49, 1  ;;  %v994_v34 = vrot.slane %v992_v54, 1  ;;  %v5076_v49 = vcombine.low %v5061_v6, %v5064_v8  ;;  %v5089_v54 = vld [vmem:[%s5848_s4 + $0x70] sm:$0xff]  }
  0x22   : > { %5878 = vst [vmem:[#allocation7_spill] sm:$0xff] %v5089_v54 }
  0x23   : > { %v991_v31 = vor.u32 %v989_v52, %v987_v63  ;;  %v5071_v37 = vsel %vm609_vm1, %v984_v55, %v987_v63  ;;  %v5084_v52 = vld [vmem:[%s5848_s4 + $0x60] sm:$0xff]   ;;  %v5098_v55 = vld [vmem:[%s4967_s9 + $0x18] sm:$0xf]  ;;  %v5101_v63 = vld [vmem:[%s4967_s9 + $0x1c] sm:$0xf] }
  0x24   : > { %5879 = vst [vmem:[#allocation8_spill] sm:$0xff] %v5101_v63 }
  0x26   : > { %4248 = vmatmul.mubr.msk.bf16.vlgmr.msra.gmra.mxu0 %vm422_vm0, %v4961_v59 }
  0x27   : > { %4260 = vmatmul.mubr.msk.bf16.vlgmr.msra.gmra.mxu1 %vm422_vm0, %v4958_v58  ;;  %4268 = vmatpush3.bf16.msra.mxu0 %v4911_v35  ;;  %v5116_v58 = vcombine.low %v5098_v55, %v5101_v63 }
  0x28   : > { %4280 = vmatpush3.bf16.msra.mxu1 %v4932_v44  ;;  %4251 = vmatprep.mubr.msk.bf16.mxu0 %vm422_vm0, %v4980_v13 }
  0x29   : > { %4263 = vmatprep.mubr.msk.bf16.mxu1 %vm422_vm0, %v4970_v61  ;;  %4269 = vmatprep.subr.bf16.mxu0 %v4991_v24  ;;  %v5079_v61 = vsel %vm609_vm1, %v991_v31, %v994_v34  ;;  %v998_v31 = vor.u32 %v996_v48, %v994_v34  ;;  %v5120_v34 = vcombine.low %v4827_v10, %v4830_v11 }
  0x2a   : > { %4281 = vmatprep.subr.bf16.mxu1 %v4996_v26  ;;  %v5124_v48 = vcombine.low %v4819_v7, %v4833_v12  ;;  %v5145_v10 = vcombine.low %v4838_v14, %v4845_v16  ;;  %v5149_v11 = vcombine.low %v4841_v15, %v4864_v21  ;;  %v5153_v12 = vcombine.low %v4861_v20, %v4877_v27  ;;  %v5164_v14 = vld [vmem:[%s5848_s4 + $0x80] sm:$0xff]  }
  0x2b   : > { %4270 = vmatpush3.bf16.msra.mxu0 %v4991_v24  ;;  %5880 = vst [vmem:[#allocation9_spill] sm:$0xff] %v5120_v34  ;;  %v5128_v43 = vsel %vm4973_vm3, %v998_v31, 0  ;;  %v1306_v7 = vshll.u32 %v5120_v34, 16  ;;  %v5157_v31 = vcombine.low %v4867_v22, %v4892_v29  ;;  %v1304_v63 = vshrl.u32 %v5120_v34, 16 }
  0x2c   : > { %4282 = vmatpush3.bf16.msra.mxu1 %v4996_v26  ;;  %4291 = vmatprep.subr.bf16.mxu0 %v5015_v39  ;;  %5881 = vst [vmem:[#allocation10_spill] sm:$0xff] %v5124_v48  ;;  %5882 = vst [vmem:[#allocation11_spill] sm:$0xff] %v5149_v11  ;;  %v3845_v15 = vcombine.low %v4895_v30, %v4895_v30  ;;  %v5176_v16 = vcombine.low %v4880_v28, %v4880_v28  ;;  %v1314_v28 = vshrl.u32 %v5149_v11, 16 }
  0x2d   : > { %4303 = vmatprep.subr.bf16.mxu1 %v5020_v41  ;;  %5883 = vst [vmem:[#allocation12_spill] sm:$0xff] %v5157_v31  ;;  %v1317_v29 = vshll.u32 %v5157_v31, 16 }
  0x2e   : > { %4252 = vmatmul.mubr.msk.bf16.gmra.mxu0 %vm422_vm0, %v5030_v46  ;;  %v5185_v22 = vsel %vm1102_vm4, %v3845_v15, 0  ;;  %v5189_v27 = vsel %vm1102_vm4, %v5176_v16, 0  ;;  %v2103_v62 = vshll.u32 %v5176_v16, 16 }
  0x2f   : > { %4264 = vmatmul.mubr.msk.bf16.gmra.mxu1 %vm422_vm0, %v5026_v42  ;;  %4271 = vmatprep.mubr.msk.bf16.mxu0 %vm422_vm0, %v5035_v47  ;;  %v5110_v42 = vld [vmem:[%s5848_s4 + $0x88] sm:$0xff]   ;;  %5884 = vst [vmem:[#allocation13_spill] sm:$0xff] %v5185_v22 }
  0x30   : > { %4283 = vmatprep.mubr.msk.bf16.mxu1 %vm422_vm0, %v5040_v51 }
  0x36   : > { %4272 = vmatmul.mubr.msk.bf16.vlgmr.msra.gmra.mxu0 %vm422_vm0, %v5068_v36 }
  0x37   : > { %4284 = vmatmul.mubr.msk.bf16.vlgmr.msra.gmra.mxu1 %vm422_vm0, %v5071_v37  ;;  %4292 = vmatpush3.bf16.msra.mxu0 %v5015_v39 }
  0x38   : > { %4304 = vmatpush3.bf16.msra.mxu1 %v5020_v41  ;;  %4275 = vmatprep.mubr.msk.bf16.mxu0 %vm422_vm0, %v5076_v49 }
  0x39   : > { %4287 = vmatprep.mubr.msk.bf16.mxu1 %vm422_vm0, %v5079_v61  ;;  %4293 = vmatprep.subr.bf16.mxu0 %v5084_v52 }
  0x3a   : > { %4305 = vmatprep.subr.bf16.mxu1 %v5089_v54 }
  0x3b   : > { %4294 = vmatpush3.bf16.msra.mxu0 %v5084_v52 }
  0x3c   : > { %4306 = vmatpush3.bf16.msra.mxu1 %v5089_v54  ;;  %4315 = vmatprep.subr.bf16.mxu0 %v5110_v42  ;;  %v1308_v54 = vrot.slane %v1306_v7, 1 }
  0x3d   : > { %4327 = vmatprep.subr.bf16.mxu1 %v4769_v0 }
  0x3e   : > { %4276 = vmatmul.mubr.msk.bf16.gmra.mxu0 %vm422_vm0, %v5116_v58  ;;  %v1309_v20 = vor.u32 %v1308_v54, %v1304_v63  ;;  %v1321_v54 = vshrl.u32 %v5157_v31, 16  ;;  %v1324_v63 = vshll.u32 %v3845_v15, 16 }
  0x3f   : > { %4288 = vmatmul.mubr.msk.bf16.gmra.mxu1 %vm422_vm0, %v5128_v43  ;;  %4295 = vmatprep.mubr.msk.bf16.mxu0 %vm422_vm0, %v5120_v34 }
  0x40   : > { %4307 = vmatprep.mubr.msk.bf16.mxu1 %vm422_vm0, %v5124_v48  ;;  %v1310_v48 = vshll.u32 %v5149_v11, 16  ;;  %v1326_v34 = vrot.slane %v1324_v63, 1  ;;  %v1580_v63 = vshrl.u32 %v4872_v25, 16 }
  0x42   : > { %v1312_v21 = vrot.slane %v1310_v48, 1  ;;  %v5207_v48 = vcombine.low %v4916_v38, %v4951_v53  ;;  %v1328_v38 = vshrl.u32 %v3845_v15, 16  ;;  %v1563_v53 = vshrl.u32 %v4824_v9, 16 }
  0x44   : > { %v5196_v30 = vsel %vm609_vm1, %v1309_v20, %v1312_v21  ;;  %v1316_v7 = vor.u32 %v1314_v28, %v1312_v21  ;;  %v1319_v20 = vrot.slane %v1317_v29, 1  ;;  %v1569_v28 = vshll.u32 %v4856_v18, 16 }
  0x45   : > { %v5265_v29 = vcombine.low %v4986_v23, %v4986_v23 }
  0x46   : > { %4296 = vmatmul.mubr.msk.bf16.vlgmr.msra.gmra.mxu0 %vm422_vm0, %v5149_v11  ;;  %v1323_v11 = vor.u32 %v1321_v54, %v1319_v20 }
  0x47   : > { %4308 = vmatmul.mubr.msk.bf16.vlgmr.msra.gmra.mxu1 %vm422_vm0, %v5145_v10  ;;  %4316 = vmatpush3.bf16.msra.mxu0 %v5110_v42 }
  0x48   : > { %4328 = vmatpush3.bf16.msra.mxu1 %v4769_v0  ;;  %4299 = vmatprep.mubr.msk.bf16.mxu0 %vm422_vm0, %v5157_v31  ;;  %v5215_v31 = vcombine.low %v5004_v33, %v5055_v56  ;;  %v5228_v33 = vsel %vm609_vm1, %v1323_v11, %v1326_v34  ;;  %v1330_v56 = vor.u32 %v1328_v38, %v1326_v34  ;;  %v1571_v11 = vrot.slane %v1569_v28, 1 }
  0x49   : > { %4311 = vmatprep.mubr.msk.bf16.mxu1 %vm422_vm0, %v5153_v12  ;;  %4317 = vmatprep.subr.bf16.mxu0 %v5164_v14  ;;  %v1576_v34 = vshll.u32 %v4872_v25, 16 }
  0x4a   : > { %4329 = vmatprep.subr.bf16.mxu1 %v4780_v2  ;;  %v5251_v15 = vsel %vm5241_vm6, %v1330_v56, 0 }
  0x4b   : > { %4318 = vmatpush3.bf16.msra.mxu0 %v5164_v14  ;;  %v1578_v23 = vrot.slane %v1576_v34, 1 }
  0x4c   : > { %4330 = vmatpush3.bf16.msra.mxu1 %v4780_v2  ;;  %4339 = vmatprep.subr.bf16.mxu0 %v4774_v1  ;;  %v5219_v2 = vsel %vm609_vm1, %v1316_v7, %v1319_v20  ;;  %v1583_v7 = vshll.u32 %v4920_v40, 16  ;;  %v2813_v20 = vshll.u32 %v4941_v50, 16 }
  0x4d   : > { %4351 = vmatprep.subr.bf16.mxu1 %v4794_v4  ;;  %v1582_v38 = vor.u32 %v1580_v63, %v1578_v23 }
  0x4e   : > { %4300 = vmatmul.mubr.msk.bf16.gmra.mxu0 %vm422_vm0, %v5185_v22  ;;  %v1565_v22 = vshll.u32 %v4824_v9, 16  ;;  %v1585_v28 = vrot.slane %v1583_v7, 1  ;;  %v2827_v7 = vshll.u32 %v5265_v29, 16 }
  0x4f   : > { %4312 = vmatmul.mubr.msk.bf16.gmra.mxu1 %vm422_vm0, %v5189_v27  ;;  %4319 = vmatprep.mubr.msk.bf16.mxu0 %vm422_vm0, %v5196_v30 }
  0x50   : > { %4331 = vmatprep.mubr.msk.bf16.mxu1 %vm422_vm0, %v4935_v45  ;;  %v1567_v21 = vrot.slane %v1565_v22, 1  ;;  %v5225_v45 = vcombine.low %v5058_v60, %v5061_v6  ;;  %v5261_v22 = vcombine.low %v5064_v8, %v5098_v55  ;;  %v2809_v8 = vshll.u32 %v5207_v48, 16 }
  0x52   : > { %v1568_v6 = vor.u32 %v1567_v21, %v1563_v53  ;;  %5887 = vst [vmem:[#allocation14_spill] sm:$0xff] %v5261_v22  ;;  %v2807_v53 = vshrl.u32 %v5207_v48, 16  ;;  %v2811_v21 = vrot.slane %v2809_v8, 1  ;;  %v1587_v22 = vshrl.u32 %v4920_v40, 16 }
  0x53   : > { %v1823_v8 = vshrl.u32 %v5035_v47, 16 }
  0x54   : > { %v1572_v54 = vsel %vm609_vm1, %v1568_v6, %v1571_v11  ;;  %v2815_v6 = vrot.slane %v2813_v20, 1  ;;  %v2812_v34 = vor.u32 %v2811_v21, %v2807_v53  ;;  %v1589_v63 = vor.u32 %v1587_v22, %v1585_v28 }
  0x55   : > { %v1825_v22 = vshll.u32 %v5035_v47, 16  ;;  %v1829_v20 = vshll.u32 %v5068_v36, 16  ;;  %v1833_v53 = vshrl.u32 %v5068_v36, 16  ;;  %v1836_v21 = vshll.u32 %v5076_v49, 16 }
  0x56   : > { %4320 = vmatmul.mubr.msk.bf16.vlgmr.msra.gmra.mxu0 %vm422_vm0, %v5219_v2 }
  0x57   : > { %4332 = vmatmul.mubr.msk.bf16.vlgmr.msra.gmra.mxu1 %vm422_vm0, %v4961_v59  ;;  %4340 = vmatpush3.bf16.msra.mxu0 %v4774_v1  ;;  %v1573_v59 = vshrl.u32 %v4856_v18, 16 }
  0x58   : > { %4352 = vmatpush3.bf16.msra.mxu1 %v4794_v4  ;;  %4323 = vmatprep.mubr.msk.bf16.mxu0 %vm422_vm0, %v5228_v33 }
  0x59   : > { %4335 = vmatprep.mubr.msk.bf16.mxu1 %vm422_vm0, %v4980_v13  ;;  %4341 = vmatprep.subr.bf16.mxu0 %v4787_v3  ;;  %v5257_v13 = vcombine.low %v4955_v57, %v4983_v19  ;;  %v5275_v19 = vsel %vm1102_vm4, %v5265_v29, 0  ;;  %v1575_v55 = vor.u32 %v1573_v59, %v1571_v11  ;;  %v5291_v11 = vsel %vm609_vm1, %v2812_v34, %v2815_v6  ;;  %v5889_v34 = vld [vmem:[#allocation10_spill] sm:$0xff] }
  0x5a   : > { %4353 = vmatprep.subr.bf16.mxu1 %v4850_v17  ;;  %5888 = vst [vmem:[#allocation15_spill] sm:$0xff] %v5275_v19  ;;  %v1586_v59 = vsel %vm609_vm1, %v1582_v38, %v1585_v28  ;;  %v1831_v38 = vrot.slane %v1829_v20, 1 }
  0x5b   : > { %4342 = vmatpush3.bf16.msra.mxu0 %v4787_v3  ;;  %v2820_v57 = vshll.u32 %v5257_v13, 16  ;;  %v1579_v19 = vsel %vm609_vm1, %v1575_v55, %v1578_v23  ;;  %v1591_v23 = vsel %vm4973_vm3, %v1589_v63, 0  ;;  %v1827_v55 = vrot.slane %v1825_v22, 1 }
  0x5c   : > { %4354 = vmatpush3.bf16.msra.mxu1 %v4850_v17  ;;  %4363 = vmatprep.subr.bf16.mxu0 %v4802_v5 }
  0x5d   : > { %4375 = vmatprep.subr.bf16.mxu1 %v4911_v35  ;;  %v2822_v56 = vrot.slane %v2820_v57, 1  ;;  %v2824_v57 = vshrl.u32 %v5257_v13, 16 }
  0x5e   : > { %4324 = vmatmul.mubr.msk.bf16.gmra.mxu0 %vm422_vm0, %v5251_v15 }
  0x5f   : > { %4336 = vmatmul.mubr.msk.bf16.gmra.mxu1 %vm422_vm0, %v5030_v46  ;;  %4343 = vmatprep.mubr.msk.bf16.mxu0 %vm422_vm0, %v4824_v9  ;;  %v2817_v46 = vshrl.u32 %v4941_v50, 16 }
  0x60   : > { %4355 = vmatprep.mubr.msk.bf16.mxu1 %vm422_vm0, %v1572_v54 }
  0x61   : > { %v2819_v9 = vor.u32 %v2817_v46, %v2815_v6  ;;  %v1843_v6 = vshll.u32 %v5116_v58, 16  ;;  %v1835_v46 = vor.u32 %v1833_v53, %v1831_v38  ;;  %v5890_v53 = vld [vmem:[#allocation7_spill] sm:$0xff] }
  0x63   : > { %v5295_v54 = vsel %vm609_vm1, %v2819_v9, %v2822_v56  ;;  %v1838_v9 = vrot.slane %v1836_v21, 1 }
  0x66   : > { %4344 = vmatmul.mubr.msk.bf16.vlgmr.msra.gmra.mxu0 %vm422_vm0, %v4856_v18  ;;  %v5309_v18 = vrot.slane %v2827_v7, 1  ;;  %v1845_v7 = vrot.slane %v1843_v6, 1  ;;  %v2096_v6 = vshll.u32 %v5153_v12, 16 }
  0x67   : > { %4356 = vmatmul.mubr.msk.bf16.vlgmr.msra.gmra.mxu1 %vm422_vm0, %v1579_v19  ;;  %4364 = vmatpush3.bf16.msra.mxu0 %v4802_v5  ;;  %v2826_v19 = vor.u32 %v2824_v57, %v2822_v56  ;;  %v1840_v56 = vshrl.u32 %v5076_v49, 16  ;;  %v5364_v57 = vsel %vm609_vm1, %v1835_v46, %v1838_v9 }
  0x68   : > { %4376 = vmatpush3.bf16.msra.mxu1 %v4911_v35  ;;  %4347 = vmatprep.mubr.msk.bf16.mxu0 %vm422_vm0, %v4872_v25 }
  0x69   : > { %4359 = vmatprep.mubr.msk.bf16.mxu1 %vm422_vm0, %v1586_v59  ;;  %4365 = vmatprep.subr.bf16.mxu0 %v4902_v32  ;;  %v5319_v25 = vsel %vm609_vm1, %v2826_v19, %v5309_v18  ;;  %v2085_v59 = vshll.u32 %v5889_v34, 16  ;;  %v1842_v63 = vor.u32 %v1840_v56, %v1838_v9  ;;  %v1847_v19 = vshrl.u32 %v5116_v58, 16 }
  0x6a   : > { %4377 = vmatprep.subr.bf16.mxu1 %v4991_v24  ;;  %v2093_v56 = vshrl.u32 %v5145_v10, 16  ;;  %v2100_v9 = vshrl.u32 %v5153_v12, 16 }
  0x6b   : > { %4366 = vmatpush3.bf16.msra.mxu0 %v4902_v32  ;;  %v2087_v22 = vrot.slane %v2085_v59, 1  ;;  %v1849_v20 = vor.u32 %v1847_v19, %v1845_v7  ;;  %v2105_v19 = vrot.slane %v2103_v62, 1  ;;  %v5899_v62 = vld [vmem:[#allocation12_spill] sm:$0xff] }
  0x6c   : > { %4378 = vmatpush3.bf16.msra.mxu1 %v4991_v24  ;;  %4387 = vmatprep.subr.bf16.mxu0 %v4932_v44 }
  0x6d   : > { %4399 = vmatprep.subr.bf16.mxu1 %v5015_v39  ;;  %v5386_v21 = vsel %vm4973_vm3, %v1849_v20, 0 }
  0x6e   : > { %4348 = vmatmul.mubr.msk.bf16.gmra.mxu0 %vm422_vm0, %v4920_v40  ;;  %v1828_v40 = vor.u32 %v1827_v55, %v1823_v8  ;;  %v2089_v8 = vshll.u32 %v5145_v10, 16  ;;  %v5370_v55 = vsel %vm609_vm1, %v1842_v63, %v1845_v7  ;;  %v2098_v63 = vrot.slane %v2096_v6, 1  ;;  %v5897_v6 = vld [vmem:[#allocation9_spill] sm:$0xff] }
  0x6f   : > { %4360 = vmatmul.mubr.msk.bf16.gmra.mxu1 %vm422_vm0, %v1591_v23  ;;  %4367 = vmatprep.mubr.msk.bf16.mxu0 %vm422_vm0, %v5035_v47  ;;  %v2083_v23 = vshrl.u32 %v5889_v34, 16 }
  0x70   : > { %4379 = vmatprep.mubr.msk.bf16.mxu1 %vm422_vm0, %v5040_v51  ;;  %v5348_v28 = vsel %vm609_vm1, %v1828_v40, %v1831_v38  ;;  %v2091_v38 = vrot.slane %v2089_v8, 1  ;;  %v2102_v7 = vor.u32 %v2100_v9, %v2098_v63  ;;  %v5898_v9 = vld [vmem:[#allocation11_spill] sm:$0xff] }
  0x71   : > { %v2088_v40 = vor.u32 %v2087_v22, %v2083_v23  ;;  %v2107_v22 = vshrl.u32 %v5176_v16, 16  ;;  %v5891_v16 = vld [vmem:[#allocation2_spill] sm:$0xff] }
  0x72   : > { %v2095_v59 = vor.u32 %v2093_v56, %v2091_v38  ;;  %v5412_v8 = vsel %vm609_vm1, %v2102_v7, %v2105_v19  ;;  %v5895_v56 = vld [vmem:[#allocation5_spill] sm:$0xff] }
  0x73   : > { %v5393_v46 = vsel %vm609_vm1, %v2088_v40, %v2091_v38  ;;  %v2109_v20 = vor.u32 %v2107_v22, %v2105_v19  ;;  %v5893_v38 = vld [vmem:[#allocation3_spill] sm:$0xff]  ;;  %v5901_v22 = vld [vmem:[#allocation8_spill] sm:$0xff] }
  0x74   : > { %v5408_v23 = vsel %vm609_vm1, %v2095_v59, %v2098_v63  ;;  %v5900_v59 = vld [vmem:[#allocation13_spill] sm:$0xff] }
  0x75   : > { %v5428_v40 = vsel %vm5241_vm6, %v2109_v20, 0  ;;  %v5522_v20 = vcombine.low %v5901_v22, %v5901_v22 }
  0x76   : > { %4368 = vmatmul.mubr.msk.bf16.vlgmr.msra.gmra.mxu0 %vm422_vm0, %v5068_v36  ;;  %5892 = vst [vmem:[#allocation10_spill] sm:$0xff] %v5428_v40 }
  0x77   : > { %4380 = vmatmul.mubr.msk.bf16.vlgmr.msra.gmra.mxu1 %vm422_vm0, %v5071_v37  ;;  %4388 = vmatpush3.bf16.msra.mxu0 %v4932_v44  ;;  %5902 = vst [vmem:[#allocation7_spill] sm:$0xff] %v5522_v20 }
  0x78   : > { %4400 = vmatpush3.bf16.msra.mxu1 %v5015_v39  ;;  %4371 = vmatprep.mubr.msk.bf16.mxu0 %vm422_vm0, %v5076_v49 }
  0x79   : > { %4383 = vmatprep.mubr.msk.bf16.mxu1 %vm422_vm0, %v5079_v61  ;;  %4389 = vmatprep.subr.bf16.mxu0 %v4996_v26 }
  0x7a   : > { %4401 = vmatprep.subr.bf16.mxu1 %v5084_v52 }
  0x7b   : > { %4390 = vmatpush3.bf16.msra.mxu0 %v4996_v26 }
  0x7c   : > { %4402 = vmatpush3.bf16.msra.mxu1 %v5084_v52  ;;  %4411 = vmatprep.subr.bf16.mxu0 %v5020_v41 }
  0x7d   : > { %4423 = vmatprep.subr.bf16.mxu1 %v5110_v42 }
  0x7e   : > { %4372 = vmatmul.mubr.msk.bf16.gmra.mxu0 %vm422_vm0, %v5116_v58 }
  0x7f   : > { %4384 = vmatmul.mubr.msk.bf16.gmra.mxu1 %vm422_vm0, %v5128_v43  ;;  %4391 = vmatprep.mubr.msk.bf16.mxu0 %vm422_vm0, %v5348_v28 }
  0x80   : > { %4403 = vmatprep.mubr.msk.bf16.mxu1 %vm422_vm0, %v5889_v34 }
  0x86   : > { %4392 = vmatmul.mubr.msk.bf16.vlgmr.msra.gmra.mxu0 %vm422_vm0, %v5364_v57 }
  0x87   : > { %4404 = vmatmul.mubr.msk.bf16.vlgmr.msra.gmra.mxu1 %vm422_vm0, %v5145_v10  ;;  %4412 = vmatpush3.bf16.msra.mxu0 %v5020_v41 }
  0x88   : > { %4424 = vmatpush3.bf16.msra.mxu1 %v5110_v42  ;;  %4395 = vmatprep.mubr.msk.bf16.mxu0 %vm422_vm0, %v5370_v55 }
  0x89   : > { %4407 = vmatprep.mubr.msk.bf16.mxu1 %vm422_vm0, %v5153_v12  ;;  %4413 = vmatprep.subr.bf16.mxu0 %v5890_v53 }
  0x8a   : > { %4425 = vmatprep.subr.bf16.mxu1 %v5164_v14 }
  0x8b   : > { %4414 = vmatpush3.bf16.msra.mxu0 %v5890_v53 }
  0x8c   : > { %4426 = vmatpush3.bf16.msra.mxu1 %v5164_v14  ;;  %4435 = vmatprep.subr.bf16.mxu0 %v4769_v0 }
  0x8d   : > { %4447 = vmatprep.subr.bf16.mxu1 %v4774_v1 }
  0x8e   : > { %4396 = vmatmul.mubr.msk.bf16.gmra.mxu0 %vm422_vm0, %v5386_v21 }
  0x8f   : > { %4408 = vmatmul.mubr.msk.bf16.gmra.mxu1 %vm422_vm0, %v5189_v27  ;;  %4415 = vmatprep.mubr.msk.bf16.mxu0 %vm422_vm0, %v5196_v30 }
  0x90   : > { %4427 = vmatprep.mubr.msk.bf16.mxu1 %vm422_vm0, %v5393_v46 }
  0x96   : > { %4416 = vmatmul.mubr.msk.bf16.vlgmr.msra.gmra.mxu0 %vm422_vm0, %v5219_v2 }
  0x97   : > { %4428 = vmatmul.mubr.msk.bf16.vlgmr.msra.gmra.mxu1 %vm422_vm0, %v5408_v23  ;;  %4436 = vmatpush3.bf16.msra.mxu0 %v4769_v0 }
  0x98   : > { %4448 = vmatpush3.bf16.msra.mxu1 %v4774_v1  ;;  %4419 = vmatprep.mubr.msk.bf16.mxu0 %vm422_vm0, %v5228_v33 }
  0x99   : > { %4431 = vmatprep.mubr.msk.bf16.mxu1 %vm422_vm0, %v5412_v8  ;;  %4437 = vmatprep.subr.bf16.mxu0 %v5891_v16 }
  0x9a   : > { %4449 = vmatprep.subr.bf16.mxu1 %v4787_v3 }
  0x9b   : > { %4438 = vmatpush3.bf16.msra.mxu0 %v5891_v16 }
  0x9c   : > { %4450 = vmatpush3.bf16.msra.mxu1 %v4787_v3  ;;  %4459 = vmatprep.subr.bf16.mxu0 %v4794_v4  ;;  %v5894_v3 = vld [vmem:[#allocation4_spill] sm:$0xff] }
  0x9d   : > { %4471 = vmatprep.subr.bf16.mxu1 %v4802_v5 }
  0x9e   : > { %4420 = vmatmul.mubr.msk.bf16.gmra.mxu0 %vm422_vm0, %v5251_v15 }
  0x9f   : > { %4432 = vmatmul.mubr.msk.bf16.gmra.mxu1 %vm422_vm0, %v5428_v40  ;;  %4439 = vmatprep.mubr.msk.bf16.mxu0 %vm422_vm0, %v5035_v47 }
  0xa0   : > { %4451 = vmatprep.mubr.msk.bf16.mxu1 %vm422_vm0, %v5893_v38 }
  0xa6   : > { %4440 = vmatmul.mubr.msk.bf16.vlgmr.msra.gmra.mxu0 %vm422_vm0, %v5068_v36 }
  0xa7   : > { %4452 = vmatmul.mubr.msk.bf16.vlgmr.msra.gmra.mxu1 %vm422_vm0, %v5894_v3  ;;  %4460 = vmatpush3.bf16.msra.mxu0 %v4794_v4  ;;  %v5903_v3 = vld [vmem:[#allocation14_spill] sm:$0xff] }
  0xa8   : > { %4472 = vmatpush3.bf16.msra.mxu1 %v4802_v5  ;;  %4443 = vmatprep.mubr.msk.bf16.mxu0 %vm422_vm0, %v5076_v49  ;;  %v5896_v5 = vld [vmem:[#allocation6_spill] sm:$0xff] }
  0xa9   : > { %4455 = vmatprep.mubr.msk.bf16.mxu1 %vm422_vm0, %v5895_v56  ;;  %4461 = vmatprep.subr.bf16.mxu0 %v4850_v17 }
  0xaa   : > { %4473 = vmatprep.subr.bf16.mxu1 %v4902_v32 }
  0xab   : > { %4462 = vmatpush3.bf16.msra.mxu0 %v4850_v17 }
  0xac   : > { %4474 = vmatpush3.bf16.msra.mxu1 %v4902_v32  ;;  %4483 = vmatprep.subr.bf16.mxu0 %v4911_v35 }
  0xad   : > { %4495 = vmatprep.subr.bf16.mxu1 %v4932_v44 }
  0xae   : > { %4444 = vmatmul.mubr.msk.bf16.gmra.mxu0 %vm422_vm0, %v5116_v58 }
  0xaf   : > { %4456 = vmatmul.mubr.msk.bf16.gmra.mxu1 %vm422_vm0, %v5896_v5  ;;  %4463 = vmatprep.mubr.msk.bf16.mxu0 %vm422_vm0, %v5040_v51 }
  0xb0   : > { %4475 = vmatprep.mubr.msk.bf16.mxu1 %vm422_vm0, %v5897_v6  ;;  %v5532_v6 = vsel %vm1102_vm4, %v5522_v20, 0 }
  0xb1   : > { %5904 = vst [vmem:[#allocation2_spill] sm:$0xff] %v5532_v6 }
  0xb6   : > { %4464 = vmatmul.mubr.msk.bf16.vlgmr.msra.gmra.mxu0 %vm422_vm0, %v5071_v37 }
  0xb7   : > { %4476 = vmatmul.mubr.msk.bf16.vlgmr.msra.gmra.mxu1 %vm422_vm0, %v5898_v9  ;;  %4484 = vmatpush3.bf16.msra.mxu0 %v4911_v35 }
  0xb8   : > { %4496 = vmatpush3.bf16.msra.mxu1 %v4932_v44  ;;  %4467 = vmatprep.mubr.msk.bf16.mxu0 %vm422_vm0, %v5079_v61 }
  0xb9   : > { %4479 = vmatprep.mubr.msk.bf16.mxu1 %vm422_vm0, %v5899_v62  ;;  %4485 = vmatprep.subr.bf16.mxu0 %v4991_v24 }
  0xba   : > { %4497 = vmatprep.subr.bf16.mxu1 %v4996_v26 }
  0xbb   : > { %4486 = vmatpush3.bf16.msra.mxu0 %v4991_v24 }
  0xbc   : > { %4498 = vmatpush3.bf16.msra.mxu1 %v4996_v26  ;;  %4507 = vmatprep.subr.bf16.mxu0 %v5015_v39 }
  0xbd   : > { %4519 = vmatprep.subr.bf16.mxu1 %v5020_v41 }
  0xbe   : > { %4468 = vmatmul.mubr.msk.bf16.gmra.mxu0 %vm422_vm0, %v5128_v43 }
  0xbf   : > { %4480 = vmatmul.mubr.msk.bf16.gmra.mxu1 %vm422_vm0, %v5900_v59  ;;  %4487 = vmatprep.mubr.msk.bf16.mxu0 %vm422_vm0, %v5889_v34 }
  0xc0   : > { %4499 = vmatprep.mubr.msk.bf16.mxu1 %vm422_vm0, %v5196_v30 }
  0xc6   : > { %4488 = vmatmul.mubr.msk.bf16.vlgmr.msra.gmra.mxu0 %vm422_vm0, %v5145_v10 }
  0xc7   : > { %4500 = vmatmul.mubr.msk.bf16.vlgmr.msra.gmra.mxu1 %vm422_vm0, %v5219_v2  ;;  %4508 = vmatpush3.bf16.msra.mxu0 %v5015_v39 }
  0xc8   : > { %4520 = vmatpush3.bf16.msra.mxu1 %v5020_v41  ;;  %4491 = vmatprep.mubr.msk.bf16.mxu0 %vm422_vm0, %v5153_v12 }
  0xc9   : > { %4503 = vmatprep.mubr.msk.bf16.mxu1 %vm422_vm0, %v5228_v33  ;;  %4509 = vmatprep.subr.bf16.mxu0 %v5084_v52 }
  0xca   : > { %4521 = vmatprep.subr.bf16.mxu1 %v5890_v53 }
  0xcb   : > { %4510 = vmatpush3.bf16.msra.mxu0 %v5084_v52 }
  0xcc   : > { %4522 = vmatpush3.bf16.msra.mxu1 %v5890_v53  ;;  %4531 = vmatprep.subr.bf16.mxu0 %v5110_v42 }
  0xcd   : > { %4543 = vmatprep.subr.bf16.mxu1 %v4769_v0 }
  0xce   : > { %4492 = vmatmul.mubr.msk.bf16.gmra.mxu0 %vm422_vm0, %v5189_v27 }
  0xcf   : > { %4504 = vmatmul.mubr.msk.bf16.gmra.mxu1 %vm422_vm0, %v5251_v15  ;;  %4511 = vmatprep.mubr.msk.bf16.mxu0 %vm422_vm0, %v5207_v48 }
  0xd0   : > { %4523 = vmatprep.mubr.msk.bf16.mxu1 %vm422_vm0, %v5215_v31 }
  0xd6   : > { %v4225_v63 = vpop.f32.mrf.mxu0  ;;  %4512 = vmatmul.mubr.msk.bf16.vlgmr.msra.gmra.mxu0 %vm422_vm0, %v4941_v50 }
  0xd7   : > { %v4237_v7 = vpop.f32.mrf.mxu1  ;;  %4524 = vmatmul.mubr.msk.bf16.vlgmr.msra.gmra.mxu1 %vm422_vm0, %v5225_v45  ;;  %4532 = vmatpush3.bf16.msra.mxu0 %v5110_v42 }
  0xd8   : > { %v587_v19 = vadd.f32 %v4237_v7, %v4225_v63  ;;  %4544 = vmatpush3.bf16.msra.mxu1 %v4769_v0  ;;  %v469_v48 = vpop.f32.mrf.mxu0  ;;  %4515 = vmatprep.mubr.msk.bf16.mxu0 %vm422_vm0, %v5257_v13  ;;  %v5905_v7 = vld [vmem:[#allocation15_spill] sm:$0xff] }
  0xd9   : > { %v578_v38 = vpop.f32.mrf.mxu1  ;;  %4527 = vmatprep.mubr.msk.bf16.mxu1 %vm422_vm0, %v5903_v3  ;;  %4533 = vmatprep.subr.bf16.mxu0 %v5164_v14 }
  0xda   : > { %v579_v50 = vadd.f32 %v578_v38, %v469_v48  ;;  %4545 = vmatprep.subr.bf16.mxu1 %v5891_v16  ;;  %v4226_v56 = vpop.f32.mrf.mxu0 }
  0xdb   : > { %v4238_v5 = vpop.f32.mrf.mxu1  ;;  %4534 = vmatpush3.bf16.msra.mxu0 %v5164_v14 }
  0xdc   : > { %v590_v0 = vadd.f32 %v4238_v5, %v4226_v56  ;;  %4546 = vmatpush3.bf16.msra.mxu1 %v5891_v16  ;;  %v472_v13 = vpop.f32.mrf.mxu0  ;;  %4555 = vmatprep.subr.bf16.mxu0 %v4774_v1 }
  0xdd   : > { %v581_v9 = vpop.f32.mrf.mxu1  ;;  %4567 = vmatprep.subr.bf16.mxu1 %v4794_v4 }
  0xde   : > { %v582_v62 = vadd.f32 %v581_v9, %v472_v13  ;;  %v4229_v59 = vpop.f32.mrf.mxu0  ;;  %4516 = vmatmul.mubr.msk.bf16.gmra.mxu0 %vm422_vm0, %v5905_v7  ;;  %v2831_v13 = vshrl.u32 %v5265_v29, 16 }
  0xdf   : > { %v4241_v63 = vpop.f32.mrf.mxu1  ;;  %4528 = vmatmul.mubr.msk.bf16.gmra.mxu1 %vm422_vm0, %v5532_v6  ;;  %4535 = vmatprep.mubr.msk.bf16.mxu0 %vm422_vm0, %v5291_v11 }
  0xe0   : > { %v603_v22 = vadd.f32 %v4241_v63, %v4229_v59  ;;  %4547 = vmatprep.mubr.msk.bf16.mxu1 %vm422_vm0, %v5040_v51  ;;  %v485_v16 = vpop.f32.mrf.mxu0  ;;  %v4709_v59 = vld [vmem:[%s5848_s4 + $0x8] sm:$0xff]   ;;  %v2833_v29 = vor.u32 %v2831_v13, %v5309_v18 }
  0xe1   : > { %v594_v1 = vpop.f32.mrf.mxu1 }
  0xe2   : > { %v595_v48 = vadd.f32 %v594_v1, %v485_v16  ;;  %v4230_v38 = vpop.f32.mrf.mxu0 }
  0xe3   : > { %v4242_v56 = vpop.f32.mrf.mxu1 }
  0xe4   : > { %v606_v5 = vadd.f32 %v4242_v56, %v4230_v38  ;;  %v488_v9 = vpop.f32.mrf.mxu0  ;;  %v5566_v56 = vsel %vm5241_vm6, %v2833_v29, 0 }
  0xe5   : > { %v597_v7 = vpop.f32.mrf.mxu1 }
  0xe6   : > { %v598_v40 = vadd.f32 %v597_v7, %v488_v9  ;;  %v4249_v20 = vpop.f32.mrf.mxu0  ;;  %4536 = vmatmul.mubr.msk.bf16.vlgmr.msra.gmra.mxu0 %vm422_vm0, %v5295_v54 }
  0xe7   : > { %v4261_v6 = vpop.f32.mrf.mxu1  ;;  %4548 = vmatmul.mubr.msk.bf16.vlgmr.msra.gmra.mxu1 %vm422_vm0, %v5071_v37  ;;  %v732_v51 = vadd.f32 %v4249_v20, %v587_v19  ;;  %4556 = vmatpush3.bf16.msra.mxu0 %v4709_v59  ;;  %v4710_v19 = vld [vmem:[%s5848_s4] sm:$0xff]  }
  0xe8   : > { %4568 = vmatpush3.bf16.msra.mxu1 %v4794_v4  ;;  %v699_v63 = vpop.f32.mrf.mxu0  ;;  %4539 = vmatprep.mubr.msk.bf16.mxu0 %vm422_vm0, %v5319_v25 }
  0xe9   : > { %v816_v16 = vpop.f32.mrf.mxu1  ;;  %4551 = vmatprep.mubr.msk.bf16.mxu1 %vm422_vm0, %v5079_v61  ;;  %v849_v1 = vadd.f32 %v4261_v6, %v732_v51  ;;  %v730_v37 = vadd.f32 %v699_v63, %v579_v50  ;;  %4557 = vmatprep.subr.bf16.mxu0 %v4710_v19  ;;  %v4711_v6 = vld [vmem:[%s5848_s4 + $0x38] sm:$0xff]  }
  0xea   : > { %4569 = vmatprep.subr.bf16.mxu1 %v4850_v17  ;;  %v4250_v4 = vpop.f32.mrf.mxu0 }
  0xeb   : > { %v4262_v20 = vpop.f32.mrf.mxu1  ;;  %v847_v18 = vadd.f32 %v816_v16, %v730_v37  ;;  %v733_v38 = vadd.f32 %v4250_v4, %v590_v0  ;;  %4558 = vmatpush3.bf16.msra.mxu0 %v4710_v19 }
  0xec   : > { %4570 = vmatpush3.bf16.msra.mxu1 %v4850_v17  ;;  %v702_v61 = vpop.f32.mrf.mxu0  ;;  %4579 = vmatprep.subr.bf16.mxu0 %v4711_v6 }
  0xed   : > { %v819_v50 = vpop.f32.mrf.mxu1  ;;  %4591 = vmatprep.subr.bf16.mxu1 %v4911_v35  ;;  %v850_v13 = vadd.f32 %v4262_v20, %v733_v38  ;;  %v731_v9 = vadd.f32 %v702_v61, %v582_v62 }
  0xee   : > { %v4253_v7 = vpop.f32.mrf.mxu0  ;;  %4540 = vmatmul.mubr.msk.bf16.gmra.mxu0 %vm422_vm0, %v5566_v56 }
  0xef   : > { %v4265_v0 = vpop.f32.mrf.mxu1  ;;  %4552 = vmatmul.mubr.msk.bf16.gmra.mxu1 %vm422_vm0, %v5128_v43  ;;  %v848_v17 = vadd.f32 %v819_v50, %v731_v9  ;;  %v736_v51 = vadd.f32 %v4253_v7, %v603_v22  ;;  %4559 = vmatprep.mubr.msk.bf16.mxu0 %vm422_vm0, %v5035_v47 }
  0xf0   : > { %4571 = vmatprep.mubr.msk.bf16.mxu1 %vm422_vm0, %v5348_v28  ;;  %v715_v59 = vpop.f32.mrf.mxu0 }
  0xf1   : > { %v832_v29 = vpop.f32.mrf.mxu1  ;;  %v853_v63 = vadd.f32 %v4265_v0, %v736_v51  ;;  %v734_v62 = vadd.f32 %v715_v59, %v595_v48 }
  0xf2   : > { %v4254_v16 = vpop.f32.mrf.mxu0 }
  0xf3   : > { %v4266_v37 = vpop.f32.mrf.mxu1  ;;  %v851_v19 = vadd.f32 %v832_v29, %v734_v62  ;;  %v737_v4 = vadd.f32 %v4254_v16, %v606_v5 }
  0xf4   : > { %v718_v20 = vpop.f32.mrf.mxu0 }
  0xf5   : > { %v835_v38 = vpop.f32.mrf.mxu1  ;;  %v854_v61 = vadd.f32 %v4266_v37, %v737_v4  ;;  %v735_v43 = vadd.f32 %v718_v20, %v598_v40 }
  0xf6   : > { %v4273_v50 = vpop.f32.mrf.mxu0  ;;  %4560 = vmatmul.mubr.msk.bf16.vlgmr.msra.gmra.mxu0 %vm422_vm0, %v5068_v36 }
  0xf7   : > { %v4285_v22 = vpop.f32.mrf.mxu1  ;;  %4572 = vmatmul.mubr.msk.bf16.vlgmr.msra.gmra.mxu1 %vm422_vm0, %v5364_v57  ;;  %v852_v47 = vadd.f32 %v835_v38, %v735_v43  ;;  %v966_v28 = vadd.f32 %v4273_v50, %v849_v1  ;;  %4580 = vmatpush3.bf16.msra.mxu0 %v4711_v6 }
  0xf8   : > { %4592 = vmatpush3.bf16.msra.mxu1 %v4911_v35  ;;  %v933_v48 = vpop.f32.mrf.mxu0  ;;  %4563 = vmatprep.mubr.msk.bf16.mxu0 %vm422_vm0, %v5076_v49  ;;  %v4712_v35 = vld [vmem:[%s5848_s4 + $0x30] sm:$0xff]  }
  0xf9   : > { %v1059_v9 = vpop.f32.mrf.mxu1  ;;  %4575 = vmatprep.mubr.msk.bf16.mxu1 %vm422_vm0, %v5370_v55  ;;  %v1092_v40 = vadd.f32 %v4285_v22, %v966_v28  ;;  %v964_v5 = vadd.f32 %v933_v48, %v847_v18  ;;  %4581 = vmatprep.subr.bf16.mxu0 %v4902_v32 }
  0xfa   : > { %4593 = vmatprep.subr.bf16.mxu1 %v4991_v24  ;;  %v4274_v36 = vpop.f32.mrf.mxu0 }
  0xfb   : > { %v4286_v57 = vpop.f32.mrf.mxu1  ;;  %v1090_v1 = vadd.f32 %v1059_v9, %v964_v5  ;;  %v967_v6 = vadd.f32 %v4274_v36, %v850_v13  ;;  %4582 = vmatpush3.bf16.msra.mxu0 %v4712_v35  ;;  %v3499_v36 = vshll.u32 %v5215_v31, 16 }
  0xfc   : > { %4594 = vmatpush3.bf16.msra.mxu1 %v4991_v24  ;;  %v936_v49 = vpop.f32.mrf.mxu0  ;;  %4603 = vmatprep.subr.bf16.mxu0 %v4932_v44 }
  0xfd   : > { %v1062_v7 = vpop.f32.mrf.mxu1  ;;  %4615 = vmatprep.subr.bf16.mxu1 %v5015_v39  ;;  %v1093_v32 = vadd.f32 %v4286_v57, %v967_v6  ;;  %v965_v55 = vadd.f32 %v936_v49, %v848_v17 }
  0xfe   : > { %v4277_v18 = vpop.f32.mrf.mxu0  ;;  %4564 = vmatmul.mubr.msk.bf16.gmra.mxu0 %vm422_vm0, %v5116_v58 }
  0xff   : > { %v4289_v0 = vpop.f32.mrf.mxu1  ;;  %4576 = vmatmul.mubr.msk.bf16.gmra.mxu1 %vm422_vm0, %v5386_v21  ;;  %v1091_v13 = vadd.f32 %v1062_v7, %v965_v55  ;;  %v970_v51 = vadd.f32 %v4277_v18, %v853_v63  ;;  %4583 = vmatprep.mubr.msk.bf16.mxu0 %vm422_vm0, %v5889_v34  ;;  %v3501_v55 = vrot.slane %v3499_v36, 1 }
 0x100   : > { %4595 = vmatprep.mubr.msk.bf16.mxu1 %vm422_vm0, %v5196_v30  ;;  %v949_v44 = vpop.f32.mrf.mxu0 }
 0x101   : > { %v1075_v24 = vpop.f32.mrf.mxu1  ;;  %v1096_v59 = vadd.f32 %v4289_v0, %v970_v51  ;;  %v968_v17 = vadd.f32 %v949_v44, %v851_v19  ;;  %v4713_v19 = vld [vmem:[%s5848_s4 + $0x58] sm:$0xff]  }
 0x102   : > { %v4278_v29 = vpop.f32.mrf.mxu0 }
 0x103   : > { %v4290_v62 = vpop.f32.mrf.mxu1  ;;  %v1094_v16 = vadd.f32 %v1075_v24, %v968_v17  ;;  %v971_v37 = vadd.f32 %v4278_v29, %v854_v61 }
 0x104   : > { %v952_v58 = vpop.f32.mrf.mxu0 }
 0x105   : > { %v1078_v4 = vpop.f32.mrf.mxu1  ;;  %v1097_v20 = vadd.f32 %v4290_v62, %v971_v37  ;;  %v969_v21 = vadd.f32 %v952_v58, %v852_v47 }
 0x106   : > { %v4297_v38 = vpop.f32.mrf.mxu0  ;;  %4584 = vmatmul.mubr.msk.bf16.vlgmr.msra.gmra.mxu0 %vm422_vm0, %v5145_v10 }
 0x107   : > { %v4309_v63 = vpop.f32.mrf.mxu1  ;;  %4596 = vmatmul.mubr.msk.bf16.vlgmr.msra.gmra.mxu1 %vm422_vm0, %v5219_v2  ;;  %v1095_v30 = vadd.f32 %v1078_v4, %v969_v21  ;;  %v1196_v34 = vadd.f32 %v4297_v38, %v1092_v40  ;;  %4604 = vmatpush3.bf16.msra.mxu0 %v4713_v19  ;;  %v3514_v38 = vshrl.u32 %v5903_v3, 16 }
 0x108   : > { %4616 = vmatpush3.bf16.msra.mxu1 %v5015_v39  ;;  %v1163_v61 = vpop.f32.mrf.mxu0  ;;  %4587 = vmatprep.mubr.msk.bf16.mxu0 %vm422_vm0, %v5153_v12 }
 0x109   : > { %v1265_v43 = vpop.f32.mrf.mxu1  ;;  %4599 = vmatprep.mubr.msk.bf16.mxu1 %vm422_vm0, %v5228_v33  ;;  %v1298_v10 = vadd.f32 %v4309_v63, %v1196_v34  ;;  %v1194_v50 = vadd.f32 %v1163_v61, %v1090_v1  ;;  %4605 = vmatprep.subr.bf16.mxu0 %v4996_v26  ;;  %v5906_v63 = vld [vmem:[#allocation7_spill] sm:$0xff] }
 0x10a   : > { %4617 = vmatprep.subr.bf16.mxu1 %v5084_v52  ;;  %v4298_v2 = vpop.f32.mrf.mxu0 }
 0x10b   : > { %v4310_v22 = vpop.f32.mrf.mxu1  ;;  %v1296_v47 = vadd.f32 %v1265_v43, %v1194_v50  ;;  %v1197_v28 = vadd.f32 %v4298_v2, %v1093_v32  ;;  %4606 = vmatpush3.bf16.msra.mxu0 %v4996_v26  ;;  %v3497_v32 = vshrl.u32 %v5215_v31, 16 }
 0x10c   : > { %4618 = vmatpush3.bf16.msra.mxu1 %v5084_v52  ;;  %v1166_v39 = vpop.f32.mrf.mxu0  ;;  %4627 = vmatprep.subr.bf16.mxu0 %v5020_v41 }
 0x10d   : > { %v1268_v48 = vpop.f32.mrf.mxu1  ;;  %4639 = vmatprep.subr.bf16.mxu1 %v5110_v42  ;;  %v1299_v12 = vadd.f32 %v4310_v22, %v1197_v28  ;;  %v1195_v33 = vadd.f32 %v1166_v39, %v1091_v13 }
 0x10e   : > { %v4301_v9 = vpop.f32.mrf.mxu0  ;;  %4588 = vmatmul.mubr.msk.bf16.gmra.mxu0 %vm422_vm0, %v5189_v27 }
 0x10f   : > { %v4313_v40 = vpop.f32.mrf.mxu1  ;;  %4600 = vmatmul.mubr.msk.bf16.gmra.mxu1 %vm422_vm0, %v5251_v15  ;;  %v1297_v5 = vadd.f32 %v1268_v48, %v1195_v33  ;;  %v1200_v26 = vadd.f32 %v4301_v9, %v1096_v59  ;;  %4607 = vmatprep.mubr.msk.bf16.mxu0 %vm422_vm0, %v5393_v46  ;;  %v3503_v46 = vshll.u32 %v5225_v45, 16  ;;  %v3521_v33 = vshrl.u32 %v5906_v63, 16 }
 0x110   : > { %4619 = vmatprep.mubr.msk.bf16.mxu1 %vm422_vm0, %v5215_v31  ;;  %v1179_v41 = vpop.f32.mrf.mxu0  ;;  %v4714_v31 = vld [vmem:[%s5848_s4 + $0x78] sm:$0xff]  }
 0x111   : > { %v1281_v52 = vpop.f32.mrf.mxu1  ;;  %v1302_v57 = vadd.f32 %v4313_v40, %v1200_v26  ;;  %v1198_v1 = vadd.f32 %v1179_v41, %v1094_v16  ;;  %v3505_v29 = vrot.slane %v3503_v46, 1  ;;  %v3510_v16 = vshll.u32 %v5903_v3, 16 }
 0x112   : > { %v4302_v6 = vpop.f32.mrf.mxu0 }
 0x113   : > { %v4314_v35 = vpop.f32.mrf.mxu1  ;;  %v1300_v27 = vadd.f32 %v1281_v52, %v1198_v1  ;;  %v1201_v49 = vadd.f32 %v4302_v6, %v1097_v20  ;;  %v3512_v19 = vrot.slane %v3510_v16, 1 }
 0x114   : > { %v1182_v7 = vpop.f32.mrf.mxu0 }
 0x115   : > { %v1284_v15 = vpop.f32.mrf.mxu1  ;;  %v1303_v18 = vadd.f32 %v4314_v35, %v1201_v49  ;;  %v1199_v0 = vadd.f32 %v1182_v7, %v1095_v30  ;;  %v3517_v30 = vshll.u32 %v5906_v63, 16  ;;  %v3516_v2 = vor.u32 %v3514_v38, %v3512_v19 }
 0x116   : > { %v4321_v13 = vpop.f32.mrf.mxu0  ;;  %4608 = vmatmul.mubr.msk.bf16.vlgmr.msra.gmra.mxu0 %vm422_vm0, %v5408_v23  ;;  %v3502_v23 = vor.u32 %v3501_v55, %v3497_v32 }
 0x117   : > { %v4333_v51 = vpop.f32.mrf.mxu1  ;;  %4620 = vmatmul.mubr.msk.bf16.vlgmr.msra.gmra.mxu1 %vm422_vm0, %v5225_v45  ;;  %v1301_v44 = vadd.f32 %v1284_v15, %v1199_v0  ;;  %v5639_v24 = vadd.f32 %v4321_v13, %v1298_v10  ;;  %4628 = vmatpush3.bf16.msra.mxu0 %v4714_v31  ;;  %v5907_v10 = vld [vmem:[#allocation10_spill] sm:$0xff]  ;;  %v3519_v22 = vrot.slane %v3517_v30, 1 }
 0x118   : > { %4640 = vmatpush3.bf16.msra.mxu1 %v5110_v42  ;;  %v1394_v59 = vpop.f32.mrf.mxu0  ;;  %4611 = vmatprep.mubr.msk.bf16.mxu0 %vm422_vm0, %v5412_v8  ;;  %v3507_v8 = vshrl.u32 %v5225_v45, 16  ;;  %v3506_v21 = vsel %vm609_vm1, %v3502_v23, %v3505_v29 }
 0x119   : > { %v1467_v17 = vpop.f32.mrf.mxu1  ;;  %4623 = vmatprep.mubr.msk.bf16.mxu1 %vm422_vm0, %v5903_v3  ;;  %v5649_v62 = vadd.f32 %v1394_v59, %v1296_v47  ;;  %4629 = vmatprep.subr.bf16.mxu0 %v5890_v53  ;;  %v3523_v36 = vor.u32 %v3521_v33, %v3519_v22 }
 0x11a   : > { %4641 = vmatprep.subr.bf16.mxu1 %v5164_v14  ;;  %v4322_v37 = vpop.f32.mrf.mxu0  ;;  %v3509_v45 = vor.u32 %v3507_v8, %v3505_v29 }
 0x11b   : > { %v4334_v42 = vpop.f32.mrf.mxu1  ;;  %v5654_v58 = vadd.f32 %v4322_v37, %v1299_v12  ;;  %4630 = vmatpush3.bf16.msra.mxu0 %v5890_v53  ;;  %v5908_v53 = vld [vmem:[#allocation2_spill] sm:$0xff] }
 0x11c   : > { %4642 = vmatpush3.bf16.msra.mxu1 %v5164_v14  ;;  %v1397_v4 = vpop.f32.mrf.mxu0  ;;  %v3513_v12 = vsel %vm609_vm1, %v3509_v45, %v3512_v19 }
 0x11d   : > { %v1470_v20 = vpop.f32.mrf.mxu1  ;;  %v5662_v34 = vadd.f32 %v1397_v4, %v1297_v5 }
 0x11e   : > { %v4325_v61 = vpop.f32.mrf.mxu0  ;;  %4612 = vmatmul.mubr.msk.bf16.gmra.mxu0 %vm422_vm0, %v5907_v10 }
 0x11f   : > { %v4337_v43 = vpop.f32.mrf.mxu1  ;;  %4624 = vmatmul.mubr.msk.bf16.gmra.mxu1 %vm422_vm0, %v5908_v53  ;;  %v5668_v14 = vadd.f32 %v4325_v61, %v1302_v57  ;;  %4631 = vmatprep.mubr.msk.bf16.mxu0 %vm422_vm0, %v5291_v11  ;;  %v3520_v11 = vsel %vm609_vm1, %v3516_v2, %v3519_v22 }
 0x120   : > { %4643 = vmatprep.mubr.msk.bf16.mxu1 %vm422_vm0, %v3506_v21  ;;  %v1410_v3 = vpop.f32.mrf.mxu0 }
 0x121   : > { %v1483_v50 = vpop.f32.mrf.mxu1  ;;  %v5673_v47 = vadd.f32 %v1410_v3, %v1300_v27 }
 0x122   : > { %v4326_v28 = vpop.f32.mrf.mxu0 }
 0x123   : > { %v4338_v39 = vpop.f32.mrf.mxu1  ;;  %v5675_v48 = vadd.f32 %v4326_v28, %v1303_v18 }
 0x124   : > { %v1413_v9 = vpop.f32.mrf.mxu0 }
 0x125   : > { %v1486_v40 = vpop.f32.mrf.mxu1  ;;  %v5680_v5 = vadd.f32 %v1413_v9, %v1301_v44 }
 0x126   : > { %v4345_v26 = vpop.f32.mrf.mxu0  ;;  %4632 = vmatmul.mubr.msk.bf16.vlgmr.msra.gmra.mxu0 %vm422_vm0, %v5295_v54  ;;  %v3525_v54 = vsel %vm5241_vm6, %v3523_v36, 0 }
 0x127   : > { %v4357_v41 = vpop.f32.mrf.mxu1  ;;  %4644 = vmatmul.mubr.msk.bf16.vlgmr.msra.gmra.mxu1 %vm422_vm0, %v3513_v12  ;;  %v1541_v52 = vadd.f32 %v4345_v26, %v4333_v51  ;;  %4635 = vmatprep.mubr.msk.bf16.mxu0 %vm422_vm0, %v5319_v25 }
 0x128   : > { %4647 = vmatprep.mubr.msk.bf16.mxu1 %vm422_vm0, %v3520_v11  ;;  %v1532_v57 = vpop.f32.mrf.mxu0 }
 0x129   : > { %v1638_v1 = vpop.f32.mrf.mxu1  ;;  %v1671_v6 = vadd.f32 %v4357_v41, %v1541_v52  ;;  %v1533_v35 = vadd.f32 %v1532_v57, %v1467_v17 }
 0x12a   : > { %v4346_v27 = vpop.f32.mrf.mxu0 }
 0x12b   : > { %v4358_v49 = vpop.f32.mrf.mxu1  ;;  %v1669_v7 = vadd.f32 %v1638_v1, %v1533_v35  ;;  %v1544_v15 = vadd.f32 %v4346_v27, %v4334_v42 }
 0x12c   : > { %v1535_v32 = vpop.f32.mrf.mxu0 }
 0x12d   : > { %v1641_v55 = vpop.f32.mrf.mxu1  ;;  %v1672_v46 = vadd.f32 %v4358_v49, %v1544_v15  ;;  %v1536_v18 = vadd.f32 %v1535_v32, %v1470_v20 }
 0x12e   : > { %v4349_v0 = vpop.f32.mrf.mxu0  ;;  %4636 = vmatmul.mubr.msk.bf16.gmra.mxu0 %vm422_vm0, %v5566_v56 }
 0x12f   : > { %v4361_v25 = vpop.f32.mrf.mxu1  ;;  %4648 = vmatmul.mubr.msk.bf16.gmra.mxu1 %vm422_vm0, %v3525_v54  ;;  %v1670_v13 = vadd.f32 %v1641_v55, %v1536_v18  ;;  %v1557_v51 = vadd.f32 %v4349_v0, %v4337_v43 }
 0x130   : > { %v1548_v44 = vpop.f32.mrf.mxu0 }
 0x131   : > { %v1654_v31 = vpop.f32.mrf.mxu1  ;;  %v1675_v59 = vadd.f32 %v4361_v25, %v1557_v51  ;;  %v1549_v17 = vadd.f32 %v1548_v44, %v1483_v50 }
 0x132   : > { %v4350_v23 = vpop.f32.mrf.mxu0 }
 0x133   : > { %v4362_v60 = vpop.f32.mrf.mxu1  ;;  %v1673_v29 = vadd.f32 %v1654_v31, %v1549_v17  ;;  %v1560_v16 = vadd.f32 %v4350_v23, %v4338_v39 }
 0x134   : > { %v1551_v37 = vpop.f32.mrf.mxu0 }
 0x135   : > { %v1657_v42 = vpop.f32.mrf.mxu1  ;;  %v1676_v8 = vadd.f32 %v4362_v60, %v1560_v16  ;;  %v1552_v4 = vadd.f32 %v1551_v37, %v1486_v40 }
 0x136   : > { %v4369_v20 = vpop.f32.mrf.mxu0 }
 0x137   : > { %v4381_v21 = vpop.f32.mrf.mxu1  ;;  %v1674_v38 = vadd.f32 %v1657_v42, %v1552_v4  ;;  %v1744_v56 = vadd.f32 %v4369_v20, %v1671_v6 }
 0x138   : > { %v1711_v63 = vpop.f32.mrf.mxu0 }
 0x139   : > { %v1784_v30 = vpop.f32.mrf.mxu1  ;;  %v1817_v19 = vadd.f32 %v4381_v21, %v1744_v56  ;;  %v1742_v61 = vadd.f32 %v1711_v63, %v1669_v7 }
 0x13a   : > { %v4370_v43 = vpop.f32.mrf.mxu0 }
 0x13b   : > { %v4382_v10 = vpop.f32.mrf.mxu1  ;;  %v1815_v53 = vadd.f32 %v1784_v30, %v1742_v61  ;;  %v1745_v45 = vadd.f32 %v4370_v43, %v1672_v46 }
 0x13c   : > { %v1714_v3 = vpop.f32.mrf.mxu0 }
 0x13d   : > { %v1787_v50 = vpop.f32.mrf.mxu1  ;;  %v1818_v2 = vadd.f32 %v4382_v10, %v1745_v45  ;;  %v1743_v22 = vadd.f32 %v1714_v3, %v1670_v13 }
 0x13e   : > { %v4373_v28 = vpop.f32.mrf.mxu0 }
 0x13f   : > { %v4385_v39 = vpop.f32.mrf.mxu1  ;;  %v1816_v12 = vadd.f32 %v1787_v50, %v1743_v22  ;;  %v1748_v33 = vadd.f32 %v4373_v28, %v1675_v59 }
 0x140   : > { %v1727_v9 = vpop.f32.mrf.mxu0 }
 0x141   : > { %v1800_v40 = vpop.f32.mrf.mxu1  ;;  %v1821_v11 = vadd.f32 %v4385_v39, %v1748_v33  ;;  %v1746_v26 = vadd.f32 %v1727_v9, %v1673_v29 }
 0x142   : > { %v4374_v41 = vpop.f32.mrf.mxu0 }
 0x143   : > { %v4386_v52 = vpop.f32.mrf.mxu1  ;;  %v1819_v36 = vadd.f32 %v1800_v40, %v1746_v26  ;;  %v1749_v57 = vadd.f32 %v4374_v41, %v1676_v8 }
 0x144   : > { %v1730_v1 = vpop.f32.mrf.mxu0 }
 0x145   : > { %v1803_v6 = vpop.f32.mrf.mxu1  ;;  %v1822_v35 = vadd.f32 %v4386_v52, %v1749_v57  ;;  %v1747_v27 = vadd.f32 %v1730_v1, %v1674_v38 }
 0x146   : > { %v4393_v49 = vpop.f32.mrf.mxu0 }
 0x147   : > { %v4405_v7 = vpop.f32.mrf.mxu1  ;;  %v1820_v15 = vadd.f32 %v1803_v6, %v1747_v27  ;;  %v1931_v54 = vadd.f32 %v4393_v49, %v1817_v19 }
 0x148   : > { %v1898_v32 = vpop.f32.mrf.mxu0 }
 0x149   : > { %v1971_v55 = vpop.f32.mrf.mxu1  ;;  %v2004_v46 = vadd.f32 %v4405_v7, %v1931_v54  ;;  %v1929_v18 = vadd.f32 %v1898_v32, %v1815_v53 }
 0x14a   : > { %v4394_v0 = vpop.f32.mrf.mxu0 }
 0x14b   : > { %v4406_v25 = vpop.f32.mrf.mxu1  ;;  %v2002_v13 = vadd.f32 %v1971_v55, %v1929_v18  ;;  %v1932_v51 = vadd.f32 %v4394_v0, %v1818_v2 }
 0x14c   : > { %v1901_v44 = vpop.f32.mrf.mxu0 }
 0x14d   : > { %v1974_v31 = vpop.f32.mrf.mxu1  ;;  %v2005_v59 = vadd.f32 %v4406_v25, %v1932_v51  ;;  %v1930_v17 = vadd.f32 %v1901_v44, %v1816_v12 }
 0x14e   : > { %v4397_v23 = vpop.f32.mrf.mxu0 }
 0x14f   : > { %v4409_v60 = vpop.f32.mrf.mxu1  ;;  %v2003_v29 = vadd.f32 %v1974_v31, %v1930_v17  ;;  %v1935_v16 = vadd.f32 %v4397_v23, %v1821_v11 }
 0x150   : > { %v1914_v37 = vpop.f32.mrf.mxu0 }
 0x151   : > { %v1987_v42 = vpop.f32.mrf.mxu1  ;;  %v2008_v8 = vadd.f32 %v4409_v60, %v1935_v16  ;;  %v1933_v4 = vadd.f32 %v1914_v37, %v1819_v36 }
 0x152   : > { %v4398_v20 = vpop.f32.mrf.mxu0 }
 0x153   : > { %v4410_v21 = vpop.f32.mrf.mxu1  ;;  %v2006_v38 = vadd.f32 %v1987_v42, %v1933_v4  ;;  %v1936_v56 = vadd.f32 %v4398_v20, %v1822_v35 }
 0x154   : > { %v1917_v63 = vpop.f32.mrf.mxu0 }
 0x155   : > { %v1990_v30 = vpop.f32.mrf.mxu1  ;;  %v2009_v19 = vadd.f32 %v4410_v21, %v1936_v56  ;;  %v1934_v61 = vadd.f32 %v1917_v63, %v1820_v15 }
 0x156   : > { %v4417_v43 = vpop.f32.mrf.mxu0 }
 0x157   : > { %v4429_v10 = vpop.f32.mrf.mxu1  ;;  %v2007_v53 = vadd.f32 %v1990_v30, %v1934_v61  ;;  %v2077_v45 = vadd.f32 %v4417_v43, %v2004_v46 }
 0x158   : > { %v2044_v3 = vpop.f32.mrf.mxu0 }
 0x159   : > { %v2158_v50 = vpop.f32.mrf.mxu1  ;;  %v5693_v2 = vadd.f32 %v4429_v10, %v2077_v45  ;;  %v2075_v22 = vadd.f32 %v2044_v3, %v2002_v13 }
 0x15a   : > { %v4418_v28 = vpop.f32.mrf.mxu0 }
 0x15b   : > { %v4430_v39 = vpop.f32.mrf.mxu1  ;;  %v2199_v12 = vmax.f32 %v5639_v24, %v5693_v2  ;;  %v5697_v33 = vadd.f32 %v2158_v50, %v2075_v22  ;;  %v2078_v9 = vadd.f32 %v4418_v28, %v2005_v59 }
 0x15c   : > { %v2047_v40 = vpop.f32.mrf.mxu0 }
 0x15d   : > { %v2161_v11 = vpop.f32.mrf.mxu1  ;;  %v2197_v26 = vmax.f32 %v5649_v62, %v5697_v33  ;;  %v5701_v41 = vadd.f32 %v4430_v39, %v2078_v9  ;;  %v2076_v52 = vadd.f32 %v2047_v40, %v2003_v29 }
 0x15e   : > { %v4421_v36 = vpop.f32.mrf.mxu0 }
 0x15f   : > { %v4433_v57 = vpop.f32.mrf.mxu1  ;;  %v2200_v1 = vmax.f32 %v5654_v58, %v5701_v41  ;;  %v5705_v6 = vadd.f32 %v2161_v11, %v2076_v52  ;;  %v2081_v35 = vadd.f32 %v4421_v36, %v2008_v8 }
 0x160   : > { %v2060_v27 = vpop.f32.mrf.mxu0 }
 0x161   : > { %v2174_v49 = vpop.f32.mrf.mxu1  ;;  %v2198_v7 = vmax.f32 %v5662_v34, %v5705_v6  ;;  %v5709_v15 = vadd.f32 %v4433_v57, %v2081_v35  ;;  %v2079_v54 = vadd.f32 %v2060_v27, %v2006_v38 }
 0x162   : > { %v4422_v32 = vpop.f32.mrf.mxu0 }
 0x163   : > { %v4434_v55 = vpop.f32.mrf.mxu1  ;;  %v2203_v46 = vmax.f32 %v5668_v14, %v5709_v15  ;;  %v5713_v18 = vadd.f32 %v2174_v49, %v2079_v54  ;;  %v2082_v0 = vadd.f32 %v4422_v32, %v2009_v19 }
 0x164   : > { %v2063_v25 = vpop.f32.mrf.mxu0 }
 0x165   : > { %v2177_v13 = vpop.f32.mrf.mxu1  ;;  %v2201_v51 = vmax.f32 %v5673_v47, %v5713_v18  ;;  %v5717_v44 = vadd.f32 %v4434_v55, %v2082_v0  ;;  %v2080_v31 = vadd.f32 %v2063_v25, %v2007_v53 }
 0x166   : > { %v4441_v59 = vpop.f32.mrf.mxu0 }
 0x167   : > { %v4453_v17 = vpop.f32.mrf.mxu1  ;;  %v2204_v23 = vmax.f32 %v5675_v48, %v5717_v44  ;;  %v5721_v60 = vadd.f32 %v2177_v13, %v2080_v31 }
 0x168   : > { %v2313_v29 = vadd.f32 %v4453_v17, %v4441_v59  ;;  %v2239_v16 = vpop.f32.mrf.mxu0 }
 0x169   : > { %v2304_v37 = vpop.f32.mrf.mxu1  ;;  %v2202_v42 = vmax.f32 %v5680_v5, %v5721_v60 }
 0x16a   : > { %v2305_v8 = vadd.f32 %v2304_v37, %v2239_v16  ;;  %v4442_v4 = vpop.f32.mrf.mxu0 }
 0x16b   : > { %v4454_v20 = vpop.f32.mrf.mxu1 }
 0x16c   : > { %v2316_v21 = vadd.f32 %v4454_v20, %v4442_v4  ;;  %v2242_v38 = vpop.f32.mrf.mxu0 }
 0x16d   : > { %v2307_v56 = vpop.f32.mrf.mxu1 }
 0x16e   : > { %v2308_v63 = vadd.f32 %v2307_v56, %v2242_v38  ;;  %v4445_v30 = vpop.f32.mrf.mxu0 }
 0x16f   : > { %v4457_v19 = vpop.f32.mrf.mxu1 }
 0x170   : > { %v2329_v61 = vadd.f32 %v4457_v19, %v4445_v30  ;;  %v2255_v43 = vpop.f32.mrf.mxu0 }
 0x171   : > { %v2320_v10 = vpop.f32.mrf.mxu1 }
 0x172   : > { %v2321_v53 = vadd.f32 %v2320_v10, %v2255_v43  ;;  %v4446_v45 = vpop.f32.mrf.mxu0 }
 0x173   : > { %v4458_v3 = vpop.f32.mrf.mxu1 }
 0x174   : > { %v2332_v50 = vadd.f32 %v4458_v3, %v4446_v45  ;;  %v2258_v22 = vpop.f32.mrf.mxu0 }
 0x175   : > { %v2323_v28 = vpop.f32.mrf.mxu1 }
 0x176   : > { %v2324_v39 = vadd.f32 %v2323_v28, %v2258_v22  ;;  %v4465_v9 = vpop.f32.mrf.mxu0 }
 0x177   : > { %v4477_v40 = vpop.f32.mrf.mxu1  ;;  %v2402_v11 = vadd.f32 %v4465_v9, %v2313_v29 }
 0x178   : > { %v2369_v52 = vpop.f32.mrf.mxu0 }
 0x179   : > { %v2442_v36 = vpop.f32.mrf.mxu1  ;;  %v2475_v57 = vadd.f32 %v4477_v40, %v2402_v11  ;;  %v2400_v35 = vadd.f32 %v2369_v52, %v2305_v8 }
 0x17a   : > { %v4466_v27 = vpop.f32.mrf.mxu0 }
 0x17b   : > { %v4478_v49 = vpop.f32.mrf.mxu1  ;;  %v2473_v54 = vadd.f32 %v2442_v36, %v2400_v35  ;;  %v2403_v32 = vadd.f32 %v4466_v27, %v2316_v21 }
 0x17c   : > { %v2372_v55 = vpop.f32.mrf.mxu0 }
 0x17d   : > { %v2445_v0 = vpop.f32.mrf.mxu1  ;;  %v2476_v25 = vadd.f32 %v4478_v49, %v2403_v32  ;;  %v2401_v13 = vadd.f32 %v2372_v55, %v2308_v63 }
 0x17e   : > { %v4469_v31 = vpop.f32.mrf.mxu0 }
 0x17f   : > { %v4481_v59 = vpop.f32.mrf.mxu1  ;;  %v2474_v17 = vadd.f32 %v2445_v0, %v2401_v13  ;;  %v2406_v16 = vadd.f32 %v4469_v31, %v2329_v61 }
 0x180   : > { %v2385_v37 = vpop.f32.mrf.mxu0 }
 0x181   : > { %v2458_v4 = vpop.f32.mrf.mxu1  ;;  %v2479_v20 = vadd.f32 %v4481_v59, %v2406_v16  ;;  %v2404_v29 = vadd.f32 %v2385_v37, %v2321_v53 }
 0x182   : > { %v4470_v38 = vpop.f32.mrf.mxu0 }
 0x183   : > { %v4482_v56 = vpop.f32.mrf.mxu1  ;;  %v2477_v30 = vadd.f32 %v2458_v4, %v2404_v29  ;;  %v2407_v8 = vadd.f32 %v4470_v38, %v2332_v50 }
 0x184   : > { %v2388_v19 = vpop.f32.mrf.mxu0 }
 0x185   : > { %v2461_v43 = vpop.f32.mrf.mxu1  ;;  %v2480_v10 = vadd.f32 %v4482_v56, %v2407_v8  ;;  %v2405_v21 = vadd.f32 %v2388_v19, %v2324_v39 }
 0x186   : > { %v4489_v45 = vpop.f32.mrf.mxu0 }
 0x187   : > { %v4501_v3 = vpop.f32.mrf.mxu1  ;;  %v2478_v22 = vadd.f32 %v2461_v43, %v2405_v21  ;;  %v2548_v63 = vadd.f32 %v4489_v45, %v2475_v57 }
 0x188   : > { %v2515_v28 = vpop.f32.mrf.mxu0 }
 0x189   : > { %v2588_v9 = vpop.f32.mrf.mxu1  ;;  %v2621_v40 = vadd.f32 %v4501_v3, %v2548_v63  ;;  %v2546_v61 = vadd.f32 %v2515_v28, %v2473_v54 }
 0x18a   : > { %v4490_v11 = vpop.f32.mrf.mxu0 }
 0x18b   : > { %v4502_v52 = vpop.f32.mrf.mxu1  ;;  %v2619_v36 = vadd.f32 %v2588_v9, %v2546_v61  ;;  %v2549_v53 = vadd.f32 %v4490_v11, %v2476_v25 }
 0x18c   : > { %v2518_v35 = vpop.f32.mrf.mxu0 }
 0x18d   : > { %v2591_v27 = vpop.f32.mrf.mxu1  ;;  %v2622_v49 = vadd.f32 %v4502_v52, %v2549_v53  ;;  %v2547_v50 = vadd.f32 %v2518_v35, %v2474_v17 }
 0x18e   : > { %v4493_v32 = vpop.f32.mrf.mxu0 }
 0x18f   : > { %v4505_v55 = vpop.f32.mrf.mxu1  ;;  %v2620_v0 = vadd.f32 %v2591_v27, %v2547_v50  ;;  %v2552_v39 = vadd.f32 %v4493_v32, %v2479_v20 }
 0x190   : > { %v2531_v13 = vpop.f32.mrf.mxu0 }
 0x191   : > { %v2604_v31 = vpop.f32.mrf.mxu1  ;;  %v2625_v59 = vadd.f32 %v4505_v55, %v2552_v39  ;;  %v2550_v57 = vadd.f32 %v2531_v13, %v2477_v30 }
 0x192   : > { %v4494_v16 = vpop.f32.mrf.mxu0 }
 0x193   : > { %v4506_v37 = vpop.f32.mrf.mxu1  ;;  %v2623_v4 = vadd.f32 %v2604_v31, %v2550_v57  ;;  %v2553_v54 = vadd.f32 %v4494_v16, %v2480_v10 }
 0x194   : > { %v2534_v29 = vpop.f32.mrf.mxu0 }
 0x195   : > { %v2607_v38 = vpop.f32.mrf.mxu1  ;;  %v2626_v56 = vadd.f32 %v4506_v37, %v2553_v54  ;;  %v2551_v25 = vadd.f32 %v2534_v29, %v2478_v22 }
 0x196   : > { %v4513_v8 = vpop.f32.mrf.mxu0 }
 0x197   : > { %v4525_v19 = vpop.f32.mrf.mxu1  ;;  %v2624_v43 = vadd.f32 %v2607_v38, %v2551_v25  ;;  %v2711_v17 = vadd.f32 %v4513_v8, %v2621_v40 }
 0x198   : > { %v2678_v21 = vpop.f32.mrf.mxu0 }
 0x199   : > { %v2768_v45 = vpop.f32.mrf.mxu1  ;;  %v2801_v3 = vadd.f32 %v4525_v19, %v2711_v17  ;;  %v2709_v20 = vadd.f32 %v2678_v21, %v2619_v36 }
 0x19a   : > { %v4514_v63 = vpop.f32.mrf.mxu0 }
 0x19b   : > { %v4526_v28 = vpop.f32.mrf.mxu1  ;;  %v2799_v9 = vadd.f32 %v2768_v45, %v2709_v20  ;;  %v2712_v30 = vadd.f32 %v4514_v63, %v2622_v49 }
 0x19c   : > { %v2681_v61 = vpop.f32.mrf.mxu0 }
 0x19d   : > { %v2771_v11 = vpop.f32.mrf.mxu1  ;;  %v2802_v52 = vadd.f32 %v4526_v28, %v2712_v30  ;;  %v2710_v10 = vadd.f32 %v2681_v61, %v2620_v0 }
 0x19e   : > { %v4517_v53 = vpop.f32.mrf.mxu0 }
 0x19f   : > { %v4529_v35 = vpop.f32.mrf.mxu1  ;;  %v2800_v27 = vadd.f32 %v2771_v11, %v2710_v10  ;;  %v2715_v22 = vadd.f32 %v4517_v53, %v2625_v59 }
 0x1a0   : > { %v2694_v50 = vpop.f32.mrf.mxu0 }
 0x1a1   : > { %v2784_v32 = vpop.f32.mrf.mxu1  ;;  %v2805_v55 = vadd.f32 %v4529_v35, %v2715_v22  ;;  %v2713_v40 = vadd.f32 %v2694_v50, %v2623_v4 }
 0x1a2   : > { %v4518_v39 = vpop.f32.mrf.mxu0 }
 0x1a3   : > { %v4530_v13 = vpop.f32.mrf.mxu1  ;;  %v2803_v31 = vadd.f32 %v2784_v32, %v2713_v40  ;;  %v2716_v36 = vadd.f32 %v4518_v39, %v2626_v56 }
 0x1a4   : > { %v2697_v57 = vpop.f32.mrf.mxu0 }
 0x1a5   : > { %v2787_v16 = vpop.f32.mrf.mxu1  ;;  %v2806_v37 = vadd.f32 %v4530_v13, %v2716_v36  ;;  %v2714_v49 = vadd.f32 %v2697_v57, %v2624_v43 }
 0x1a6   : > { %v4537_v54 = vpop.f32.mrf.mxu0 }
 0x1a7   : > { %v5725_v29 = vpop.f32.mrf.mxu1  ;;  %v2804_v0 = vadd.f32 %v2787_v16, %v2714_v49  ;;  %v2915_v38 = vadd.f32 %v4537_v54, %v2801_v3 }
 0x1a8   : > { %v2882_v25 = vpop.f32.mrf.mxu0 }
 0x1a9   : > { %v5727_v8 = vpop.f32.mrf.mxu1  ;;  %v5732_v59 = vmax.f32 %v2199_v12, %v2915_v38  ;;  %v2913_v4 = vadd.f32 %v2882_v25, %v2799_v9 }
 0x1aa   : > { %v4538_v19 = vpop.f32.mrf.mxu0 }
 0x1ab   : > { %v5734_v56 = vpop.f32.mrf.mxu1  ;;  %v5739_v43 = vmax.f32 %v2197_v26, %v2913_v4  ;;  %v2916_v17 = vadd.f32 %v4538_v19, %v2802_v52 }
 0x1ac   : > { %v2885_v21 = vpop.f32.mrf.mxu0 }
 0x1ad   : > { %v5741_v45 = vpop.f32.mrf.mxu1  ;;  %v5746_v3 = vmax.f32 %v2200_v1, %v2916_v17  ;;  %v2914_v24 = vadd.f32 %v2885_v21, %v2800_v27 }
 0x1ae   : > { %v4541_v2 = vpop.f32.mrf.mxu0 }
 0x1af   : > { %v5748_v12 = vpop.f32.mrf.mxu1  ;;  %v5753_v20 = vmax.f32 %v2198_v7, %v2914_v24  ;;  %v2919_v62 = vadd.f32 %v4541_v2, %v2805_v55 }
 0x1b0   : > { %v2898_v33 = vpop.f32.mrf.mxu0 }
 0x1b1   : > { %v5755_v26 = vpop.f32.mrf.mxu1  ;;  %v5760_v63 = vmax.f32 %v2203_v46, %v2919_v62  ;;  %v2917_v58 = vadd.f32 %v2898_v33, %v2803_v31 }
 0x1b2   : > { %v4542_v41 = vpop.f32.mrf.mxu0 }
 0x1b3   : > { %v5762_v1 = vpop.f32.mrf.mxu1  ;;  %v5767_v28 = vmax.f32 %v2201_v51, %v2917_v58  ;;  %v2920_v34 = vadd.f32 %v4542_v41, %v2806_v37 }
 0x1b4   : > { %v2901_v6 = vpop.f32.mrf.mxu0 }
 0x1b5   : > { %5909 = vst [vmem:[#allocation3_spill] sm:$0xff] %v5767_v28  ;;  %v5769_v7 = vpop.f32.mrf.mxu1  ;;  %v5774_v9 = vmax.f32 %v2204_v23, %v2920_v34  ;;  %v2918_v14 = vadd.f32 %v2901_v6, %v2804_v0 }
 0x1b6   : > { %v4561_v15 = vpop.f32.mrf.mxu0 }
 0x1b7   : > { %5910 = vst [vmem:[#allocation4_spill] sm:$0xff] %v5774_v9  ;;  %v4573_v46 = vpop.f32.mrf.mxu1  ;;  %v5779_v30 = vmax.f32 %v2202_v42, %v2918_v14  ;;  %v3037_v0 = vadd.f32 %v4561_v15, %v5725_v29 }
 0x1b8   : > { %v3028_v47 = vpop.f32.mrf.mxu0 }
 0x1b9   : > { %5911 = vst [vmem:[#allocation5_spill] sm:$0xff] %v5779_v30  ;;  %v3093_v18 = vpop.f32.mrf.mxu1  ;;  %v3029_v4 = vadd.f32 %v3028_v47, %v5727_v8  ;;  %v3126_v21 = vadd.f32 %v4573_v46, %v3037_v0 }
 0x1ba   : > { %v4562_v51 = vpop.f32.mrf.mxu0 }
 0x1bb   : > { %v4574_v61 = vpop.f32.mrf.mxu1  ;;  %v3040_v24 = vadd.f32 %v4562_v51, %v5734_v56  ;;  %v3124_v33 = vadd.f32 %v3093_v18, %v3029_v4 }
 0x1bc   : > { %v3031_v11 = vpop.f32.mrf.mxu0 }
 0x1bd   : > { %v3096_v52 = vpop.f32.mrf.mxu1  ;;  %v3032_v58 = vadd.f32 %v3031_v11, %v5741_v45  ;;  %v3127_v14 = vadd.f32 %v4574_v61, %v3040_v24 }
 0x1be   : > { %v4565_v10 = vpop.f32.mrf.mxu0 }
 0x1bf   : > { %v4577_v53 = vpop.f32.mrf.mxu1  ;;  %v3053_v29 = vadd.f32 %v4565_v10, %v5748_v12  ;;  %v3125_v8 = vadd.f32 %v3096_v52, %v3032_v58 }
 0x1c0   : > { %v3044_v35 = vpop.f32.mrf.mxu0 }
 0x1c1   : > { %v3109_v48 = vpop.f32.mrf.mxu1  ;;  %v3045_v46 = vadd.f32 %v3044_v35, %v5755_v26 }
 0x1c2   : > { %v4566_v44 = vpop.f32.mrf.mxu0 }
 0x1c3   : > { %v4578_v23 = vpop.f32.mrf.mxu1  ;;  %v3056_v56 = vadd.f32 %v4566_v44, %v5762_v1 }
 0x1c4   : > { %v3047_v27 = vpop.f32.mrf.mxu0 }
 0x1c5   : > { %v3112_v22 = vpop.f32.mrf.mxu1  ;;  %v3048_v61 = vadd.f32 %v3047_v27, %v5769_v7  ;;  %v3131_v52 = vadd.f32 %v4578_v23, %v3056_v56 }
 0x1c6   : > { %v4585_v50 = vpop.f32.mrf.mxu0 }
 0x1c7   : > { %v4597_v32 = vpop.f32.mrf.mxu1  ;;  %v3199_v41 = vadd.f32 %v4585_v50, %v3126_v21  ;;  %v3130_v50 = vadd.f32 %v4577_v53, %v3053_v29  ;;  %v3128_v21 = vadd.f32 %v3109_v48, %v3045_v46  ;;  %v3129_v44 = vadd.f32 %v3112_v22, %v3048_v61  ;;  %v5800_v22 = vld [vmem:[%s5849_s5] ss:$0 sm:$0xff] }
 0x1c8   : > { %v3166_v55 = vpop.f32.mrf.mxu0 }
 0x1c9   : > { %v3239_v5 = vpop.f32.mrf.mxu1  ;;  %v3197_v30 = vadd.f32 %v3166_v55, %v3124_v33  ;;  %v3272_v47 = vadd.f32 %v4597_v32, %v3199_v41 }
 0x1ca   : > { %v4586_v60 = vpop.f32.mrf.mxu0 }
 0x1cb   : > { %v4598_v42 = vpop.f32.mrf.mxu1  ;;  %v3200_v28 = vadd.f32 %v4586_v60, %v3127_v14  ;;  %v3270_v0 = vadd.f32 %v3239_v5, %v3197_v30 }
 0x1cc   : > { %v3169_v40 = vpop.f32.mrf.mxu0 }
 0x1cd   : > { %v3242_v39 = vpop.f32.mrf.mxu1  ;;  %v3198_v45 = vadd.f32 %v3169_v40, %v3125_v8  ;;  %v3273_v12 = vadd.f32 %v4598_v42, %v3200_v28 }
 0x1ce   : > { %v4589_v13 = vpop.f32.mrf.mxu0 }
 0x1cf   : > { %v4601_v31 = vpop.f32.mrf.mxu1  ;;  %v3203_v32 = vadd.f32 %v4589_v13, %v3130_v50  ;;  %v3271_v26 = vadd.f32 %v3242_v39, %v3198_v45 }
 0x1d0   : > { %v3182_v36 = vpop.f32.mrf.mxu0 }
 0x1d1   : > { %v5781_v57 = vpop.f32.mrf.mxu1  ;;  %v3201_v33 = vadd.f32 %v3182_v36, %v3128_v21  ;;  %v3276_v27 = vadd.f32 %v4601_v31, %v3203_v32 }
 0x1d2   : > { %v4590_v16 = vpop.f32.mrf.mxu0 }
 0x1d3   : > { %v5783_v37 = vpop.f32.mrf.mxu1  ;;  %v3204_v30 = vadd.f32 %v4590_v16, %v3131_v52 }
 0x1d4   : > { %v3185_v49 = vpop.f32.mrf.mxu0 }
 0x1d5   : > { %v5785_v54 = vpop.f32.mrf.mxu1  ;;  %v3202_v58 = vadd.f32 %v3185_v49, %v3129_v44  ;;  %v3277_v39 = vadd.f32 %v5783_v37, %v3204_v30 }
 0x1d6   : > { %v4609_v38 = vpop.f32.mrf.mxu0 }
 0x1d7   : > { %v4621_v25 = vpop.f32.mrf.mxu1  ;;  %v3345_v11 = vadd.f32 %v4609_v38, %v3272_v47 }
 0x1d8   : > { %v3312_v19 = vpop.f32.mrf.mxu0 }
 0x1d9   : > { %v3385_v17 = vpop.f32.mrf.mxu1  ;;  %v3343_v10 = vadd.f32 %v3312_v19, %v3270_v0  ;;  %v3418_v35 = vadd.f32 %v4621_v25, %v3345_v11  ;;  %v3274_v19 = vadd.f32 %v5781_v57, %v3201_v33 }
 0x1da   : > { %v4610_v2 = vpop.f32.mrf.mxu0 }
 0x1db   : > { %v4622_v62 = vpop.f32.mrf.mxu1  ;;  %v3346_v1 = vadd.f32 %v4610_v2, %v3273_v12  ;;  %v3416_v53 = vadd.f32 %v3385_v17, %v3343_v10 }
 0x1dc   : > { %v3315_v34 = vpop.f32.mrf.mxu0 }
 0x1dd   : > { %v3388_v6 = vpop.f32.mrf.mxu1  ;;  %v3344_v38 = vadd.f32 %v3315_v34, %v3271_v26  ;;  %v3419_v48 = vadd.f32 %v4622_v62, %v3346_v1  ;;  %v3275_v62 = vadd.f32 %v5785_v54, %v3202_v58  ;;  %v5913_v58 = vld [vmem:[#allocation4_spill] sm:$0xff] }
 0x1de   : > { %v4613_v15 = vpop.f32.mrf.mxu0 }
 0x1df   : > { %v4625_v9 = vpop.f32.mrf.mxu1  ;;  %v3349_v25 = vadd.f32 %v4613_v15, %v3276_v27  ;;  %v3417_v17 = vadd.f32 %v3388_v6, %v3344_v38 }
 0x1e0   : > { %v3328_v51 = vpop.f32.mrf.mxu0 }
 0x1e1   : > { %v3401_v18 = vpop.f32.mrf.mxu1  ;;  %v3347_v41 = vadd.f32 %v3328_v51, %v3274_v19  ;;  %v3422_v47 = vadd.f32 %v4625_v9, %v3349_v25 }
 0x1e2   : > { %v4614_v55 = vpop.f32.mrf.mxu0 }
 0x1e3   : > { %v4626_v4 = vpop.f32.mrf.mxu1  ;;  %v3350_v34 = vadd.f32 %v4614_v55, %v3277_v39  ;;  %v3420_v45 = vadd.f32 %v3401_v18, %v3347_v41 }
 0x1e4   : > { %v3331_v60 = vpop.f32.mrf.mxu0 }
 0x1e5   : > { %v3404_v24 = vpop.f32.mrf.mxu1  ;;  %v3348_v46 = vadd.f32 %v3331_v60, %v3275_v62  ;;  %v3423_v11 = vadd.f32 %v4626_v4, %v3350_v34 }
 0x1e6   : > { %v4633_v5 = vpop.f32.mrf.mxu0 }
 0x1e7   : > { %v4645_v40 = vpop.f32.mrf.mxu1  ;;  %v3491_v7 = vadd.f32 %v4633_v5, %v3418_v35  ;;  %v3421_v10 = vadd.f32 %v3404_v24, %v3348_v46 }
 0x1e8   : > { %v3458_v28 = vpop.f32.mrf.mxu0 }
 0x1e9   : > { %v3572_v42 = vpop.f32.mrf.mxu1  ;;  %v3605_v23 = vadd.f32 %v4645_v40, %v3491_v7  ;;  %v3489_v13 = vadd.f32 %v3458_v28, %v3416_v53  ;;  %v5912_v53 = vld [vmem:[#allocation3_spill] sm:$0xff] }
 0x1ea   : > { %v4634_v36 = vpop.f32.mrf.mxu0 }
 0x1eb   : > { %v4646_v16 = vpop.f32.mrf.mxu1  ;;  %v3613_v31 = vmax.f32 %v5732_v59, %v3605_v23  ;;  %v3603_v49 = vadd.f32 %v3572_v42, %v3489_v13  ;;  %v3492_v2 = vadd.f32 %v4634_v36, %v3419_v48  ;;  %v5914_v13 = vld [vmem:[#allocation5_spill] sm:$0xff] }
 0x1ec   : > { %v3461_v57 = vpop.f32.mrf.mxu0 }
 0x1ed   : > { %v3575_v37 = vpop.f32.mrf.mxu1  ;;  %v3628_v14 = vadd.f32 %v5800_v22, %v3613_v31  ;;  %v3611_v29 = vmax.f32 %v5739_v43, %v3603_v49  ;;  %v3606_v15 = vadd.f32 %v4646_v16, %v3492_v2  ;;  %v3490_v8 = vadd.f32 %v3461_v57, %v3417_v17 }
 0x1ee   : > { %v4637_v6 = vpop.f32.mrf.mxu0 }
 0x1ef   : > { %v4649_v56 = vpop.f32.mrf.mxu1  ;;  %v3636_v59 = vmax.f32 %v3628_v14, 0.0  ;;  %v3626_v0 = vadd.f32 %v5800_v22, %v3611_v29  ;;  %v3614_v54 = vmax.f32 %v5746_v3, %v3606_v15  ;;  %v3604_v51 = vadd.f32 %v3575_v37, %v3490_v8 }
 0x1f0   : > { %v3495_v43 = vadd.f32 %v4637_v6, %v3422_v47  ;;  %v3474_v9 = vpop.f32.mrf.mxu0 }
 0x1f1   : > { %v3588_v50 = vpop.f32.mrf.mxu1  ;;  %v3997_v61 = vpack.c.bf16 %v3636_v59, %v3636_v59  ;;  %v3634_v55 = vmax.f32 %v3626_v0, 0.0  ;;  %v3629_v12 = vadd.f32 %v5800_v22, %v3614_v54  ;;  %v3612_v3 = vmax.f32 %v5753_v20, %v3604_v51 }
 0x1f2   : > { %v3609_v18 = vadd.f32 %v4649_v56, %v3495_v43  ;;  %v3493_v4 = vadd.f32 %v3474_v9, %v3420_v45  ;;  %v4638_v21 = vpop.f32.mrf.mxu0 }
 0x1f3   : > { %v4650_v52 = vpop.f32.mrf.mxu1  ;;  %3677 = vst.msk [vmem:[%s5812_s22 + $0x8] sm:$0xf] %vm3674_vm7, %v3997_v61  ;;  %v3995_v32 = vpack.c.bf16 %v3634_v55, %v3634_v55  ;;  %v3637_v60 = vmax.f32 %v3629_v12, 0.0  ;;  %v3627_v26 = vadd.f32 %v5800_v22, %v3612_v3  ;;  %v3496_v35 = vadd.f32 %v4638_v21, %v3423_v11 }
 0x1f4   : > { %v3617_v1 = vmax.f32 %v5760_v63, %v3609_v18  ;;  %v3607_v44 = vadd.f32 %v3588_v50, %v3493_v4  ;;  %v3477_v33 = vpop.f32.mrf.mxu0 }
 0x1f5   : > { %3675 = vst.msk [vmem:[%s5812_s22] sm:$0xf] %vm3674_vm7, %v3995_v32  ;;  %v3998_v20 = vpack.c.bf16 %v3637_v60, %v3637_v60  ;;  %v3635_v24 = vmax.f32 %v3627_v26, 0.0  ;;  %v3610_v30 = vadd.f32 %v4650_v52, %v3496_v35  ;;  %v3494_v5 = vadd.f32 %v3477_v33, %v3421_v10  ;;  %v3591_v7 = vpop.f32.mrf.mxu1 }
 0x1f6   : > { %v3632_v40 = vadd.f32 %v5800_v22, %v3617_v1  ;;  %v3615_v38 = vmax.f32 %v5912_v53, %v3607_v44 }
 0x1f7   : > { %3678 = vst.msk [vmem:[%s5812_s22 + $0xc] sm:$0xf] %vm3674_vm7, %v3998_v20  ;;  %v3996_v27 = vpack.c.bf16 %v3635_v24, %v3635_v24  ;;  %v3618_v63 = vmax.f32 %v5913_v58, %v3610_v30  ;;  %v3608_v28 = vadd.f32 %v3591_v7, %v3494_v5 }
 0x1f8   : > { %v3640_v42 = vmax.f32 %v3632_v40, 0.0  ;;  %v3630_v48 = vadd.f32 %v5800_v22, %v3615_v38 }
 0x1f9   : > { %3676 = vst.msk [vmem:[%s5812_s22 + $0x4] sm:$0xf] %vm3674_vm7, %v3996_v27  ;;  %v3633_v23 = vadd.f32 %v5800_v22, %v3618_v63  ;;  %v3616_v19 = vmax.f32 %v5914_v13, %v3608_v28 }
 0x1fa   : > { %v4001_v39 = vpack.c.bf16 %v3640_v42, %v3640_v42  ;;  %v3638_v25 = vmax.f32 %v3630_v48, 0.0 }
 0x1fb   : > { %v3641_v36 = vmax.f32 %v3633_v23, 0.0  ;;  %v3631_v16 = vadd.f32 %v5800_v22, %v3616_v19 }
 0x1fc   : > { %3681 = vst.msk [vmem:[%s5812_s22 + $0x18] sm:$0xf] %vm3674_vm7, %v4001_v39  ;;  %v3999_v17 = vpack.c.bf16 %v3638_v25, %v3638_v25 }
 0x1fd   : > { %v4002_v31 = vpack.c.bf16 %v3641_v36, %v3641_v36  ;;  %v3639_v49 = vmax.f32 %v3631_v16, 0.0 }
 0x1fe   : > { %3679 = vst.msk [vmem:[%s5812_s22 + $0x10] sm:$0xf] %vm3674_vm7, %v3999_v17 }
 0x1ff   : > { %3682 = vst.msk [vmem:[%s5812_s22 + $0x1c] sm:$0xf] %vm3674_vm7, %v4002_v31  ;;  %v4000_v2 = vpack.c.bf16 %v3639_v49, %v3639_v49 }
 0x201   : > { %3680 = vst.msk [vmem:[%s5812_s22 + $0x14] sm:$0xf] %vm3674_vm7, %v4000_v2 }
 0x202 PF: > { %s16_s21 = sadd.s32 1, %s4721_s21  }
 0x203   : > { %p13_p4 = scmp.ge.s32.totalorder %s16_s21, 4  }
 0x205   :  { %15 = sbr.rel (!%p13_p4) target bundleno = 1 (0x1), region = 83 }

// kernel: cnn_forward.5
= control target key start
LH: loop header
LB: loop body
LE: loop exit
PB: predicated region body
PF: predicated region fallthrough
CT: control target
= control target key end

     0   :  { %v553_v28 = vlaneseq  ;;  %v4022_v36 = vmov 1966171168   ;;  %s4915_s0 = inlined_call_operand.vmem [shape: bf16[2,4096], index: 0, kind: input, shape index: {}]   ;;  %s4916_s1 = inlined_call_operand.vmem [shape: bf16[4096,128], index: 1, kind: input, shape index: {}]   ;;  %s4917_s2 = inlined_call_operand.vmem [shape: f32[1,128], index: 2, kind: input, shape index: {}]   ;;  %s4918_s3 = inlined_call_operand.vmem [shape: bf16[128,128], index: 3, kind: input, shape index: {}]   ;;  %s4919_s4 = inlined_call_operand.vmem [shape: f32[1,128], index: 4, kind: input, shape index: {}]   ;;  %s4920_s5 = inlined_call_operand.hbm [shape: f32[2,128], index: 5, kind: output, shape index: {}]  }
   0x1   :  { %v3732_v0 = vld [vmem:[%s4916_s1 + $0x78] sm:$0xff]   ;;  %v3736_v4 = vld [vmem:[%s4916_s1 + $0x70] sm:$0xff]   ;;  %v3740_v8 = vld [vmem:[%s4916_s1 + $0x68] sm:$0xff]   ;;  %v551_v37 = vunpack.c.l.s4 %v4022_v36 }
   0x2   :  { %v3733_v1 = vld [vmem:[%s4916_s1 + $0xf8] sm:$0xff]   ;;  %3347 = vmatprep.subr.bf16.mxu0 %v3732_v0  ;;  %v3737_v5 = vld [vmem:[%s4916_s1 + $0xf0] sm:$0xff]   ;;  %v3741_v9 = vld [vmem:[%s4916_s1 + $0xe8] sm:$0xff]   ;;  %v554_v33 = vshrl.u32 %v553_v28, 7 }
   0x3   :  { %v3734_v2 = vld [vmem:[%s4916_s1 + $0x38] sm:$0xff]   ;;  %3369 = vmatprep.subr.bf16.mxu1 %v3733_v1  ;;  %v3738_v6 = vld [vmem:[%s4916_s1 + $0x30] sm:$0xff]   ;;  %v3742_v10 = vld [vmem:[%s4916_s1 + $0x28] sm:$0xff]   ;;  %v552_v40 = vunpack.c.0.s8 %v551_v37 }
   0x4   :  { %v3735_v3 = vld [vmem:[%s4916_s1 + $0xb8] sm:$0xff]   ;;  %3348 = vmatpush3.bf16.msra.mxu0 %v3734_v2  ;;  %v3739_v7 = vld [vmem:[%s4916_s1 + $0xb0] sm:$0xff]   ;;  %v3743_v11 = vld [vmem:[%s4916_s1 + $0xa8] sm:$0xff]  }
   0x5   :  { %3370 = vmatpush3.bf16.msra.mxu1 %v3735_v3  ;;  %3349 = vmatprep.subr.bf16.mxu0 %v3736_v4  ;;  %v3744_v12 = vld [vmem:[%s4916_s1 + $0x60] sm:$0xff]   ;;  %v3748_v16 = vld [vmem:[%s4916_s1 + $0x58] sm:$0xff]   ;;  %v3752_v20 = vld [vmem:[%s4916_s1 + $0x50] sm:$0xff]   ;;  %v4161_v41 = vsub.s32 %v552_v40, %v554_v33 }
   0x6   :  { %3371 = vmatprep.subr.bf16.mxu1 %v3737_v5  ;;  %v3745_v13 = vld [vmem:[%s4916_s1 + $0xe0] sm:$0xff]   ;;  %v3749_v17 = vld [vmem:[%s4916_s1 + $0xd8] sm:$0xff]   ;;  %v3753_v21 = vld [vmem:[%s4916_s1 + $0xd0] sm:$0xff]  }
   0x7   :  { %v3746_v14 = vld [vmem:[%s4916_s1 + $0x20] sm:$0xff]   ;;  %v3750_v18 = vld [vmem:[%s4916_s1 + $0x18] sm:$0xff]   ;;  %v3754_v22 = vld [vmem:[%s4916_s1 + $0x10] sm:$0xff]  }
   0x8   :  { %3350 = vmatpush3.bf16.msra.mxu0 %v3738_v6  ;;  %v3747_v15 = vld [vmem:[%s4916_s1 + $0xa0] sm:$0xff]   ;;  %v3751_v19 = vld [vmem:[%s4916_s1 + $0x98] sm:$0xff]   ;;  %v3755_v23 = vld [vmem:[%s4916_s1 + $0x90] sm:$0xff]  }
   0x9   :  { %3372 = vmatpush3.bf16.msra.mxu1 %v3739_v7  ;;  %3351 = vmatprep.subr.bf16.mxu0 %v3740_v8  ;;  %v3756_v24 = vld [vmem:[%s4916_s1 + $0x48] sm:$0xff]   ;;  %v3760_v29 = vld [vmem:[%s4916_s1 + $0x40] sm:$0xff]   ;;  %v3765_v35 = vld [vmem:[%s4916_s1 + $0x178] sm:$0xff]  }
   0xa   :  { %3373 = vmatprep.subr.bf16.mxu1 %v3741_v9  ;;  %v3757_v25 = vld [vmem:[%s4916_s1 + $0xc8] sm:$0xff]   ;;  %v3761_v30 = vld [vmem:[%s4916_s1 + $0xc0] sm:$0xff]   ;;  %v3766_v38 = vld [vmem:[%s4916_s1 + $0x1f8] sm:$0xff]  }
   0xb   :  { %v3758_v26 = vld [vmem:[%s4916_s1 + $0x8] sm:$0xff]   ;;  %v3762_v31 = vld [vmem:[%s4916_s1] sm:$0xff]   ;;  %v3767_v47 = vld [vmem:[%s4916_s1 + $0x138] sm:$0xff]  }
   0xc   :  { %3352 = vmatpush3.bf16.msra.mxu0 %v3742_v10  ;;  %v3759_v27 = vld [vmem:[%s4916_s1 + $0x88] sm:$0xff]   ;;  %v3763_v32 = vld [vmem:[%s4916_s1 + $0x80] sm:$0xff]   ;;  %v3768_v49 = vld [vmem:[%s4916_s1 + $0x1b8] sm:$0xff]  }
   0xd   :  { %3374 = vmatpush3.bf16.msra.mxu1 %v3743_v11  ;;  %3353 = vmatprep.subr.bf16.mxu0 %v3744_v12  ;;  %v22_v34 = vld [vmem:[%s4915_s0] sm:$0xff]  ;;  %v3769_v52 = vld [vmem:[%s4916_s1 + $0x170] sm:$0xff]   ;;  %v3773_v58 = vld [vmem:[%s4916_s1 + $0x168] sm:$0xff]  }
   0xe   :  { %3375 = vmatprep.subr.bf16.mxu1 %v3745_v13  ;;  %v549_v39 = vcombine.high %v22_v34, %v22_v34  ;;  %v556_v42 = vrot.slane %v22_v34, %v4161_v41  ;;  %v3770_v54 = vld [vmem:[%s4916_s1 + $0x1f0] sm:$0xff]   ;;  %v3774_v59 = vld [vmem:[%s4916_s1 + $0x1e8] sm:$0xff]   ;;  %v3777_v62 = vld [vmem:[%s4916_s1 + $0x160] sm:$0xff]  }
   0xf   :  { %v3771_v55 = vld [vmem:[%s4916_s1 + $0x130] sm:$0xff]   ;;  %v3775_v60 = vld [vmem:[%s4916_s1 + $0x128] sm:$0xff]   ;;  %v3778_v63 = vld [vmem:[%s4916_s1 + $0x1e0] sm:$0xff]  }
  0x10   :  { %3354 = vmatpush3.bf16.msra.mxu0 %v3746_v14  ;;  %v4165_v43 = vrot.slane %v549_v39, %v4161_v41  ;;  %v564_v44 = vcombine.high %v556_v42, %v556_v42  ;;  %v572_v45 = vrot.slane %v556_v42, %v4161_v41  ;;  %v3772_v57 = vld [vmem:[%s4916_s1 + $0x1b0] sm:$0xff]   ;;  %v3776_v61 = vld [vmem:[%s4916_s1 + $0x1a8] sm:$0xff]   ;;  %v3779_v0 = vld [vmem:[%s4916_s1 + $0x120] sm:$0xff]  }
  0x11   :  { %3376 = vmatpush3.bf16.msra.mxu1 %v3747_v15  ;;  %3355 = vmatprep.subr.bf16.mxu0 %v3748_v16  ;;  %v3780_v1 = vld [vmem:[%s4916_s1 + $0x1a0] sm:$0xff]   ;;  %v3781_v2 = vld [vmem:[%s4916_s1 + $0x158] sm:$0xff]   ;;  %v3785_v6 = vld [vmem:[%s4916_s1 + $0x150] sm:$0xff]  }
  0x12   :  { %3377 = vmatprep.subr.bf16.mxu1 %v3749_v17  ;;  %v565_v46 = vcombine.high %v4165_v43, %v4165_v43  ;;  %v586_v48 = vrot.slane %v564_v44, %v4161_v41  ;;  %v594_v51 = vcombine.high %v572_v45, %v572_v45  ;;  %v3782_v3 = vld [vmem:[%s4916_s1 + $0x1d8] sm:$0xff]   ;;  %v3786_v7 = vld [vmem:[%s4916_s1 + $0x1d0] sm:$0xff]   ;;  %v3789_v10 = vld [vmem:[%s4916_s1 + $0x148] sm:$0xff]  }
  0x13   :  { %v3783_v4 = vld [vmem:[%s4916_s1 + $0x118] sm:$0xff]   ;;  %v3787_v8 = vld [vmem:[%s4916_s1 + $0x110] sm:$0xff]   ;;  %v3790_v11 = vld [vmem:[%s4916_s1 + $0x1c8] sm:$0xff]  }
  0x14   :  { %3356 = vmatpush3.bf16.msra.mxu0 %v3750_v18  ;;  %v593_v50 = vrot.slane %v565_v46, %v4161_v41  ;;  %2345 = vmatprep.mubr.bf16.mxu0 %v586_v48  ;;  %v596_v53 = vcombine.high %v586_v48, %v586_v48  ;;  %v3784_v5 = vld [vmem:[%s4916_s1 + $0x198] sm:$0xff]   ;;  %v3788_v9 = vld [vmem:[%s4916_s1 + $0x190] sm:$0xff]   ;;  %v3791_v12 = vld [vmem:[%s4916_s1 + $0x108] sm:$0xff]   ;;  %v579_v18 = vrot.slane %v4165_v43, %v4161_v41 }
  0x15   :  { %3378 = vmatpush3.bf16.msra.mxu1 %v3751_v19  ;;  %3357 = vmatprep.subr.bf16.mxu0 %v3752_v20  ;;  %v3792_v13 = vld [vmem:[%s4916_s1 + $0x188] sm:$0xff]   ;;  %v3793_v14 = vld [vmem:[%s4916_s1 + $0x140] sm:$0xff]   ;;  %v3797_v19 = vld [vmem:[%s4916_s1 + $0x278] sm:$0xff]  }
  0x16   :  { %3379 = vmatprep.subr.bf16.mxu1 %v3753_v21  ;;  %v597_v56 = vcombine.high %v593_v50, %v593_v50  ;;  %2385 = vmatprep.mubr.bf16.mxu1 %v596_v53  ;;  %v3794_v15 = vld [vmem:[%s4916_s1 + $0x1c0] sm:$0xff]   ;;  %v3798_v20 = vld [vmem:[%s4916_s1 + $0x2f8] sm:$0xff]   ;;  %v3805_v28 = vld [vmem:[%s4916_s1 + $0x268] sm:$0xff]  }
  0x17   :  { %v3795_v16 = vld [vmem:[%s4916_s1 + $0x100] sm:$0xff]   ;;  %v3799_v21 = vld [vmem:[%s4916_s1 + $0x238] sm:$0xff]   ;;  %v3817_v40 = vld [vmem:[%s4916_s1 + $0x250] sm:$0xff]  }
  0x18   :  { %3358 = vmatpush3.bf16.msra.mxu0 %v3754_v22  ;;  %v3796_v17 = vld [vmem:[%s4916_s1 + $0x180] sm:$0xff]   ;;  %v3800_v22 = vld [vmem:[%s4916_s1 + $0x2b8] sm:$0xff]   ;;  %v3818_v42 = vld [vmem:[%s4916_s1 + $0x2d0] sm:$0xff]  }
  0x19   :  { %3380 = vmatpush3.bf16.msra.mxu1 %v3755_v23  ;;  %3359 = vmatprep.subr.bf16.mxu0 %v3756_v24  ;;  %v595_v23 = vcombine.high %v579_v18, %v579_v18  ;;  %v3801_v24 = vld [vmem:[%s4916_s1 + $0x270] sm:$0xff]   ;;  %v3810_v33 = vld [vmem:[%s4916_s1 + $0x2e0] sm:$0xff]   ;;  %v3813_v36 = vld [vmem:[%s4916_s1 + $0x258] sm:$0xff]  }
  0x1a   :  { %3381 = vmatprep.subr.bf16.mxu1 %v3757_v25  ;;  %v3802_v25 = vld [vmem:[%s4916_s1 + $0x2f0] sm:$0xff]   ;;  %v3811_v34 = vld [vmem:[%s4916_s1 + $0x220] sm:$0xff]   ;;  %v3814_v37 = vld [vmem:[%s4916_s1 + $0x2d8] sm:$0xff]  }
  0x1b   :  { %v3816_v39 = vld [vmem:[%s4916_s1 + $0x298] sm:$0xff]   ;;  %v3819_v43 = vld [vmem:[%s4916_s1 + $0x210] sm:$0xff]   ;;  %v23_v46 = vld [vmem:[%s4915_s0 + $0x8] sm:$0xff] }
  0x1c   :  { %3360 = vmatpush3.bf16.msra.mxu0 %v3758_v26  ;;  %v3803_v26 = vld [vmem:[%s4916_s1 + $0x230] sm:$0xff]   ;;  %v605_v48 = vrot.slane %v23_v46, %v4161_v41 }
  0x1d   :  { %3382 = vmatpush3.bf16.msra.mxu1 %v3759_v27  ;;  %3361 = vmatprep.subr.bf16.mxu0 %v3760_v29  ;;  %v3804_v27 = vld [vmem:[%s4916_s1 + $0x2b0] sm:$0xff]   ;;  %v3806_v29 = vld [vmem:[%s4916_s1 + $0x2e8] sm:$0xff]  }
  0x1e   :  { %3383 = vmatprep.subr.bf16.mxu1 %v3761_v30  ;;  %v3807_v30 = vld [vmem:[%s4916_s1 + $0x228] sm:$0xff]   ;;  %v3820_v44 = vld [vmem:[%s4916_s1 + $0x290] sm:$0xff]  }
  0x20   :  { %3362 = vmatpush3.bf16.msra.mxu0 %v3762_v31  ;;  %v3808_v31 = vld [vmem:[%s4916_s1 + $0x2a8] sm:$0xff]  }
  0x21   :  { %3384 = vmatpush3.bf16.msra.mxu1 %v3763_v32  ;;  %3391 = vmatprep.subr.bf16.mxu0 %v3765_v35  ;;  %v3809_v32 = vld [vmem:[%s4916_s1 + $0x260] sm:$0xff]  }
  0x22   :  { %3413 = vmatprep.subr.bf16.mxu1 %v3766_v38  ;;  %v3812_v35 = vld [vmem:[%s4916_s1 + $0x2a0] sm:$0xff]   ;;  %v3815_v38 = vld [vmem:[%s4916_s1 + $0x218] sm:$0xff]  }
  0x23   :  { %2346 = vmatmul.mubr.bf16.vlgmr.msra.gmra.mxu0 %v572_v45  ;;  %v3821_v45 = vld [vmem:[%s4916_s1 + $0x248] sm:$0xff]  }
  0x24   :  { %3392 = vmatpush3.bf16.msra.mxu0 %v3767_v47  ;;  %2386 = vmatmul.mubr.bf16.vlgmr.msra.gmra.mxu1 %v594_v51  ;;  %v3822_v47 = vld [vmem:[%s4916_s1 + $0x2c8] sm:$0xff]  }
  0x25   :  { %3393 = vmatprep.subr.bf16.mxu0 %v3769_v52  ;;  %3414 = vmatpush3.bf16.msra.mxu1 %v3768_v49  ;;  %v598_v49 = vcombine.high %v23_v46, %v23_v46  ;;  %v3824_v51 = vld [vmem:[%s4916_s1 + $0x288] sm:$0xff]   ;;  %v613_v52 = vcombine.high %v605_v48, %v605_v48 }
  0x26   :  { %2425 = vmatprep.mubr.bf16.mxu0 %v593_v50  ;;  %3415 = vmatprep.subr.bf16.mxu1 %v3770_v54  ;;  %v3823_v50 = vld [vmem:[%s4916_s1 + $0x208] sm:$0xff]   ;;  %v3825_v54 = vld [vmem:[%s4916_s1 + $0x240] sm:$0xff]  }
  0x27   :  { %2465 = vmatprep.mubr.bf16.mxu1 %v597_v56  ;;  %v4353_v53 = vrot.slane %v598_v49, %v4161_v41  ;;  %v635_v56 = vrot.slane %v613_v52, %v4161_v41  ;;  %v3872_v46 = vld [vmem:[%s4916_s1 + $0x428] sm:$0xff]   ;;  %v3875_v49 = vld [vmem:[%s4916_s1 + $0x4e0] sm:$0xff]   ;;  %v3878_v52 = vld [vmem:[%s4916_s1 + $0x458] sm:$0xff]  }
  0x28   :  { %3394 = vmatpush3.bf16.msra.mxu0 %v3771_v55  ;;  %v3826_v55 = vld [vmem:[%s4916_s1 + $0x2c0] sm:$0xff]  }
  0x29   :  { %3395 = vmatprep.subr.bf16.mxu0 %v3773_v58  ;;  %3416 = vmatpush3.bf16.msra.mxu1 %v3772_v57  ;;  %v614_v57 = vcombine.high %v4353_v53, %v4353_v53  ;;  %v3827_v58 = vld [vmem:[%s4916_s1 + $0x200] sm:$0xff]  }
  0x2a   :  { %3417 = vmatprep.subr.bf16.mxu1 %v3774_v59  ;;  %v3828_v59 = vld [vmem:[%s4916_s1 + $0x280] sm:$0xff]  }
  0x2c   :  { %3396 = vmatpush3.bf16.msra.mxu0 %v3775_v60  ;;  %v645_v60 = vcombine.high %v635_v56, %v635_v56 }
  0x2d   :  { %3397 = vmatprep.subr.bf16.mxu0 %v3777_v62  ;;  %3418 = vmatpush3.bf16.msra.mxu1 %v3776_v61  ;;  %v621_v61 = vrot.slane %v605_v48, %v4161_v41  ;;  %v3829_v62 = vld [vmem:[%s4916_s1 + $0x378] sm:$0xff]   ;;  %v3874_v48 = vld [vmem:[%s4916_s1 + $0x460] sm:$0xff]  }
  0x2e   :  { %3419 = vmatprep.subr.bf16.mxu1 %v3778_v63  ;;  %v3830_v63 = vld [vmem:[%s4916_s1 + $0x3f8] sm:$0xff]  }
  0x30   :  { %3398 = vmatpush3.bf16.msra.mxu0 %v3779_v0  ;;  %v642_v0 = vrot.slane %v614_v57, %v4161_v41  ;;  %v3883_v57 = vld [vmem:[%s4916_s1 + $0x4d0] sm:$0xff]  }
  0x31   :  { %3399 = vmatprep.subr.bf16.mxu0 %v3781_v2  ;;  %3420 = vmatpush3.bf16.msra.mxu1 %v3780_v1  ;;  %v3831_v1 = vld [vmem:[%s4916_s1 + $0x338] sm:$0xff]  }
  0x32   :  { %3421 = vmatprep.subr.bf16.mxu1 %v3782_v3  ;;  %v3832_v2 = vld [vmem:[%s4916_s1 + $0x3b8] sm:$0xff]   ;;  %v643_v3 = vcombine.high %v621_v61, %v621_v61 }
  0x34   :  { %3400 = vmatpush3.bf16.msra.mxu0 %v3783_v4  ;;  %v3833_v4 = vld [vmem:[%s4916_s1 + $0x370] sm:$0xff]  }
  0x35   :  { %3401 = vmatprep.subr.bf16.mxu0 %v3785_v6  ;;  %3422 = vmatpush3.bf16.msra.mxu1 %v3784_v5  ;;  %v3834_v5 = vld [vmem:[%s4916_s1 + $0x3f0] sm:$0xff]   ;;  %v646_v6 = vcombine.high %v642_v0, %v642_v0 }
  0x36   :  { %3423 = vmatprep.subr.bf16.mxu1 %v3786_v7  ;;  %v3835_v7 = vld [vmem:[%s4916_s1 + $0x330] sm:$0xff]  }
  0x38   :  { %3402 = vmatpush3.bf16.msra.mxu0 %v3787_v8  ;;  %v3836_v8 = vld [vmem:[%s4916_s1 + $0x3b0] sm:$0xff]  }
  0x39   :  { %3403 = vmatprep.subr.bf16.mxu0 %v3789_v10  ;;  %3424 = vmatpush3.bf16.msra.mxu1 %v3788_v9  ;;  %v3837_v9 = vld [vmem:[%s4916_s1 + $0x368] sm:$0xff]  }
  0x3a   :  { %3425 = vmatprep.subr.bf16.mxu1 %v3790_v11  ;;  %v3838_v10 = vld [vmem:[%s4916_s1 + $0x3e8] sm:$0xff]  }
  0x3b   :  { %v3839_v11 = vld [vmem:[%s4916_s1 + $0x328] sm:$0xff]  }
  0x3c   :  { %3404 = vmatpush3.bf16.msra.mxu0 %v3791_v12  ;;  %v3840_v12 = vld [vmem:[%s4916_s1 + $0x3a8] sm:$0xff]  }
  0x3d   :  { %3405 = vmatprep.subr.bf16.mxu0 %v3793_v14  ;;  %3426 = vmatpush3.bf16.msra.mxu1 %v3792_v13  ;;  %v3841_v13 = vld [vmem:[%s4916_s1 + $0x360] sm:$0xff]  }
  0x3e   :  { %3427 = vmatprep.subr.bf16.mxu1 %v3794_v15  ;;  %v3842_v14 = vld [vmem:[%s4916_s1 + $0x3e0] sm:$0xff]  }
  0x3f   :  { %v3843_v15 = vld [vmem:[%s4916_s1 + $0x320] sm:$0xff]  }
  0x40   :  { %3406 = vmatpush3.bf16.msra.mxu0 %v3795_v16  ;;  %v3844_v16 = vld [vmem:[%s4916_s1 + $0x3a0] sm:$0xff]  }
  0x41   :  { %3435 = vmatprep.subr.bf16.mxu0 %v3797_v19  ;;  %3428 = vmatpush3.bf16.msra.mxu1 %v3796_v17  ;;  %v3845_v17 = vld [vmem:[%s4916_s1 + $0x358] sm:$0xff]  }
  0x42   :  { %3457 = vmatprep.subr.bf16.mxu1 %v3798_v20  ;;  %v3847_v19 = vld [vmem:[%s4916_s1 + $0x318] sm:$0xff]  }
  0x43   :  { %2426 = vmatmul.mubr.bf16.vlgmr.msra.gmra.mxu0 %v579_v18  ;;  %v3846_v18 = vld [vmem:[%s4916_s1 + $0x3d8] sm:$0xff]  }
  0x44   :  { %3436 = vmatpush3.bf16.msra.mxu0 %v3799_v21  ;;  %2466 = vmatmul.mubr.bf16.vlgmr.msra.gmra.mxu1 %v595_v23  ;;  %v3848_v20 = vld [vmem:[%s4916_s1 + $0x398] sm:$0xff]   ;;  %v3849_v21 = vld [vmem:[%s4916_s1 + $0x350] sm:$0xff]  }
  0x45   :  { %3437 = vmatprep.subr.bf16.mxu0 %v3801_v24  ;;  %3458 = vmatpush3.bf16.msra.mxu1 %v3800_v22  ;;  %v3850_v22 = vld [vmem:[%s4916_s1 + $0x3d0] sm:$0xff]  }
  0x46   :  { %3459 = vmatprep.subr.bf16.mxu1 %v3802_v25  ;;  %2505 = vmatprep.mubr.bf16.mxu0 %v635_v56  ;;  %v3851_v23 = vld [vmem:[%s4916_s1 + $0x310] sm:$0xff]   ;;  %v3853_v25 = vld [vmem:[%s4916_s1 + $0x348] sm:$0xff]  }
  0x47   :  { %2545 = vmatprep.mubr.bf16.mxu1 %v645_v60  ;;  %v3852_v24 = vld [vmem:[%s4916_s1 + $0x390] sm:$0xff]   ;;  %v3886_v60 = vld [vmem:[%s4916_s1 + $0x448] sm:$0xff]  }
  0x48   :  { %3438 = vmatpush3.bf16.msra.mxu0 %v3803_v26  ;;  %v3854_v26 = vld [vmem:[%s4916_s1 + $0x3c8] sm:$0xff]   ;;  %v3882_v56 = vld [vmem:[%s4916_s1 + $0x450] sm:$0xff]  }
  0x49   :  { %3439 = vmatprep.subr.bf16.mxu0 %v3805_v28  ;;  %3460 = vmatpush3.bf16.msra.mxu1 %v3804_v27  ;;  %v3855_v27 = vld [vmem:[%s4916_s1 + $0x308] sm:$0xff]  }
  0x4a   :  { %3461 = vmatprep.subr.bf16.mxu1 %v3806_v29  ;;  %v3856_v28 = vld [vmem:[%s4916_s1 + $0x388] sm:$0xff]   ;;  %v3857_v29 = vld [vmem:[%s4916_s1 + $0x340] sm:$0xff]  }
  0x4c   :  { %3440 = vmatpush3.bf16.msra.mxu0 %v3807_v30  ;;  %v3858_v30 = vld [vmem:[%s4916_s1 + $0x3c0] sm:$0xff]  }
  0x4d   :  { %3441 = vmatprep.subr.bf16.mxu0 %v3809_v32  ;;  %3462 = vmatpush3.bf16.msra.mxu1 %v3808_v31  ;;  %v3859_v31 = vld [vmem:[%s4916_s1 + $0x300] sm:$0xff]  }
  0x4e   :  { %3463 = vmatprep.subr.bf16.mxu1 %v3810_v33  ;;  %v3860_v32 = vld [vmem:[%s4916_s1 + $0x380] sm:$0xff]   ;;  %v628_v33 = vrot.slane %v4353_v53, %v4161_v41  ;;  %v3879_v53 = vld [vmem:[%s4916_s1 + $0x4d8] sm:$0xff]  }
  0x50   :  { %3442 = vmatpush3.bf16.msra.mxu0 %v3811_v34  ;;  %v3862_v34 = vld [vmem:[%s4916_s1 + $0x478] sm:$0xff]  }
  0x51   :  { %3443 = vmatprep.subr.bf16.mxu0 %v3813_v36  ;;  %3464 = vmatpush3.bf16.msra.mxu1 %v3812_v35  ;;  %v3863_v35 = vld [vmem:[%s4916_s1 + $0x4f8] sm:$0xff]  }
  0x52   :  { %3465 = vmatprep.subr.bf16.mxu1 %v3814_v37  ;;  %v3864_v36 = vld [vmem:[%s4916_s1 + $0x438] sm:$0xff]  }
  0x53   :  { %v3865_v37 = vld [vmem:[%s4916_s1 + $0x4b8] sm:$0xff]  }
  0x54   :  { %3444 = vmatpush3.bf16.msra.mxu0 %v3815_v38  ;;  %v644_v38 = vcombine.high %v628_v33, %v628_v33 }
  0x55   :  { %3445 = vmatprep.subr.bf16.mxu0 %v3817_v40  ;;  %3466 = vmatpush3.bf16.msra.mxu1 %v3816_v39  ;;  %v3866_v39 = vld [vmem:[%s4916_s1 + $0x470] sm:$0xff]  }
  0x56   :  { %3467 = vmatprep.subr.bf16.mxu1 %v3818_v42  ;;  %v3867_v40 = vld [vmem:[%s4916_s1 + $0x4f0] sm:$0xff]  }
  0x57   :  { %v3868_v42 = vld [vmem:[%s4916_s1 + $0x430] sm:$0xff]  }
  0x58   :  { %3446 = vmatpush3.bf16.msra.mxu0 %v3819_v43  ;;  %v3869_v43 = vld [vmem:[%s4916_s1 + $0x4b0] sm:$0xff]  }
  0x59   :  { %3447 = vmatprep.subr.bf16.mxu0 %v3821_v45  ;;  %3468 = vmatpush3.bf16.msra.mxu1 %v3820_v44  ;;  %v3870_v44 = vld [vmem:[%s4916_s1 + $0x468] sm:$0xff]  }
  0x5a   :  { %3469 = vmatprep.subr.bf16.mxu1 %v3822_v47  ;;  %v3871_v45 = vld [vmem:[%s4916_s1 + $0x4e8] sm:$0xff]  }
  0x5b   :  { %v3873_v47 = vld [vmem:[%s4916_s1 + $0x4a8] sm:$0xff]  }
  0x5c   :  { %3448 = vmatpush3.bf16.msra.mxu0 %v3823_v50  ;;  %v3876_v50 = vld [vmem:[%s4916_s1 + $0x420] sm:$0xff]  }
  0x5d   :  { %3449 = vmatprep.subr.bf16.mxu0 %v3825_v54  ;;  %3470 = vmatpush3.bf16.msra.mxu1 %v3824_v51  ;;  %v3877_v51 = vld [vmem:[%s4916_s1 + $0x4a0] sm:$0xff]   ;;  %v3880_v54 = vld [vmem:[%s4916_s1 + $0x418] sm:$0xff]  }
  0x5e   :  { %3471 = vmatprep.subr.bf16.mxu1 %v3826_v55  ;;  %v3881_v55 = vld [vmem:[%s4916_s1 + $0x498] sm:$0xff]  }
  0x60   :  { %3450 = vmatpush3.bf16.msra.mxu0 %v3827_v58  ;;  %v3884_v58 = vld [vmem:[%s4916_s1 + $0x410] sm:$0xff]  }
  0x61   :  { %3479 = vmatprep.subr.bf16.mxu0 %v3829_v62  ;;  %3472 = vmatpush3.bf16.msra.mxu1 %v3828_v59  ;;  %v3885_v59 = vld [vmem:[%s4916_s1 + $0x490] sm:$0xff]   ;;  %v3887_v62 = vld [vmem:[%s4916_s1 + $0x4c8] sm:$0xff]  }
  0x62   :  { %3501 = vmatprep.subr.bf16.mxu1 %v3830_v63 }
  0x63   :  { %2506 = vmatmul.mubr.bf16.vlgmr.msra.gmra.mxu0 %v621_v61  ;;  %v24_v61 = vld [vmem:[%s4915_s0 + $0x10] sm:$0xff] }
  0x64   :  { %3480 = vmatpush3.bf16.msra.mxu0 %v3831_v1  ;;  %2585 = vmatprep.mubr.bf16.mxu0 %v642_v0  ;;  %v654_v63 = vrot.slane %v24_v61, %v4161_v41  ;;  %v647_v0 = vcombine.high %v24_v61, %v24_v61  ;;  %v3888_v1 = vld [vmem:[%s4916_s1 + $0x408] sm:$0xff]  }
  0x65   :  { %2546 = vmatmul.mubr.bf16.vlgmr.msra.gmra.mxu1 %v643_v3  ;;  %3481 = vmatprep.subr.bf16.mxu0 %v3833_v4  ;;  %v3937_v61 = vld [vmem:[%s4916_s1 + $0x628] sm:$0xff]  }
  0x66   :  { %3502 = vmatpush3.bf16.msra.mxu1 %v3832_v2  ;;  %2625 = vmatprep.mubr.bf16.mxu1 %v646_v6  ;;  %v3889_v2 = vld [vmem:[%s4916_s1 + $0x488] sm:$0xff]   ;;  %v662_v3 = vcombine.high %v654_v63, %v654_v63  ;;  %v4559_v4 = vrot.slane %v647_v0, %v4161_v41  ;;  %v3891_v6 = vld [vmem:[%s4916_s1 + $0x4c0] sm:$0xff]  }
  0x67   :  { %3503 = vmatprep.subr.bf16.mxu1 %v3834_v5  ;;  %v3890_v5 = vld [vmem:[%s4916_s1 + $0x440] sm:$0xff]  }
  0x68   :  { %3482 = vmatpush3.bf16.msra.mxu0 %v3835_v7  ;;  %v684_v7 = vrot.slane %v662_v3, %v4161_v41  ;;  %v3940_v0 = vld [vmem:[%s4916_s1 + $0x6e0] sm:$0xff]   ;;  %v3943_v3 = vld [vmem:[%s4916_s1 + $0x658] sm:$0xff]  }
  0x69   :  { %3483 = vmatprep.subr.bf16.mxu0 %v3837_v9  ;;  %v3892_v9 = vld [vmem:[%s4916_s1 + $0x400] sm:$0xff]  }
  0x6a   :  { %3504 = vmatpush3.bf16.msra.mxu1 %v3836_v8  ;;  %v663_v8 = vcombine.high %v4559_v4, %v4559_v4 }
  0x6b   :  { %3505 = vmatprep.subr.bf16.mxu1 %v3838_v10  ;;  %v3893_v10 = vld [vmem:[%s4916_s1 + $0x480] sm:$0xff]  }
  0x6c   :  { %3484 = vmatpush3.bf16.msra.mxu0 %v3839_v11  ;;  %v694_v11 = vcombine.high %v684_v7, %v684_v7 }
  0x6d   :  { %3485 = vmatprep.subr.bf16.mxu0 %v3841_v13  ;;  %v3894_v13 = vld [vmem:[%s4916_s1 + $0x578] sm:$0xff]  }
  0x6e   :  { %3506 = vmatpush3.bf16.msra.mxu1 %v3840_v12  ;;  %v670_v12 = vrot.slane %v654_v63, %v4161_v41  ;;  %v3939_v63 = vld [vmem:[%s4916_s1 + $0x660] sm:$0xff]  }
  0x6f   :  { %3507 = vmatprep.subr.bf16.mxu1 %v3842_v14  ;;  %v3895_v14 = vld [vmem:[%s4916_s1 + $0x5f8] sm:$0xff]  }
  0x70   :  { %3486 = vmatpush3.bf16.msra.mxu0 %v3843_v15  ;;  %v691_v15 = vrot.slane %v663_v8, %v4161_v41  ;;  %v3948_v8 = vld [vmem:[%s4916_s1 + $0x6d0] sm:$0xff]  }
  0x71   :  { %3487 = vmatprep.subr.bf16.mxu0 %v3845_v17  ;;  %v3897_v17 = vld [vmem:[%s4916_s1 + $0x5b8] sm:$0xff]  }
  0x72   :  { %3508 = vmatpush3.bf16.msra.mxu1 %v3844_v16  ;;  %v3896_v16 = vld [vmem:[%s4916_s1 + $0x538] sm:$0xff]  }
  0x73   :  { %3509 = vmatprep.subr.bf16.mxu1 %v3846_v18  ;;  %v692_v18 = vcombine.high %v670_v12, %v670_v12 }
  0x74   :  { %3488 = vmatpush3.bf16.msra.mxu0 %v3847_v19  ;;  %v3898_v19 = vld [vmem:[%s4916_s1 + $0x570] sm:$0xff]  }
  0x75   :  { %3489 = vmatprep.subr.bf16.mxu0 %v3849_v21  ;;  %v695_v21 = vcombine.high %v691_v15, %v691_v15 }
  0x76   :  { %3510 = vmatpush3.bf16.msra.mxu1 %v3848_v20  ;;  %v3899_v20 = vld [vmem:[%s4916_s1 + $0x5f0] sm:$0xff]  }
  0x77   :  { %3511 = vmatprep.subr.bf16.mxu1 %v3850_v22  ;;  %v3900_v22 = vld [vmem:[%s4916_s1 + $0x530] sm:$0xff]  }
  0x78   :  { %3490 = vmatpush3.bf16.msra.mxu0 %v3851_v23  ;;  %v3901_v23 = vld [vmem:[%s4916_s1 + $0x5b0] sm:$0xff]  }
  0x79   :  { %3491 = vmatprep.subr.bf16.mxu0 %v3853_v25  ;;  %v3903_v25 = vld [vmem:[%s4916_s1 + $0x5e8] sm:$0xff]  }
  0x7a   :  { %3512 = vmatpush3.bf16.msra.mxu1 %v3852_v24  ;;  %v3902_v24 = vld [vmem:[%s4916_s1 + $0x568] sm:$0xff]  }
  0x7b   :  { %3513 = vmatprep.subr.bf16.mxu1 %v3854_v26  ;;  %v3904_v26 = vld [vmem:[%s4916_s1 + $0x528] sm:$0xff]  }
  0x7c   :  { %3492 = vmatpush3.bf16.msra.mxu0 %v3855_v27  ;;  %v3905_v27 = vld [vmem:[%s4916_s1 + $0x5a8] sm:$0xff]  }
  0x7d   :  { %3493 = vmatprep.subr.bf16.mxu0 %v3857_v29  ;;  %v3907_v29 = vld [vmem:[%s4916_s1 + $0x5e0] sm:$0xff]  }
  0x7e   :  { %3514 = vmatpush3.bf16.msra.mxu1 %v3856_v28  ;;  %v3906_v28 = vld [vmem:[%s4916_s1 + $0x560] sm:$0xff]  }
  0x7f   :  { %3515 = vmatprep.subr.bf16.mxu1 %v3858_v30  ;;  %v3908_v30 = vld [vmem:[%s4916_s1 + $0x520] sm:$0xff]  }
  0x80   :  { %3494 = vmatpush3.bf16.msra.mxu0 %v3859_v31  ;;  %v3909_v31 = vld [vmem:[%s4916_s1 + $0x5a0] sm:$0xff]  }
  0x81   :  { %3523 = vmatprep.subr.bf16.mxu0 %v3862_v34  ;;  %v3912_v34 = vld [vmem:[%s4916_s1 + $0x518] sm:$0xff]  }
  0x82   :  { %3516 = vmatpush3.bf16.msra.mxu1 %v3860_v32  ;;  %v3910_v32 = vld [vmem:[%s4916_s1 + $0x558] sm:$0xff]  }
  0x83   :  { %2586 = vmatmul.mubr.bf16.vlgmr.msra.gmra.mxu0 %v628_v33  ;;  %3545 = vmatprep.subr.bf16.mxu1 %v3863_v35  ;;  %v3911_v33 = vld [vmem:[%s4916_s1 + $0x5d8] sm:$0xff]  }
  0x84   :  { %3524 = vmatpush3.bf16.msra.mxu0 %v3864_v36  ;;  %2665 = vmatprep.mubr.bf16.mxu0 %v684_v7  ;;  %v3913_v35 = vld [vmem:[%s4916_s1 + $0x598] sm:$0xff]   ;;  %v3914_v36 = vld [vmem:[%s4916_s1 + $0x550] sm:$0xff]  }
  0x85   :  { %2626 = vmatmul.mubr.bf16.vlgmr.msra.gmra.mxu1 %v644_v38  ;;  %3525 = vmatprep.subr.bf16.mxu0 %v3866_v39  ;;  %v3916_v38 = vld [vmem:[%s4916_s1 + $0x510] sm:$0xff]  }
  0x86   :  { %3546 = vmatpush3.bf16.msra.mxu1 %v3865_v37  ;;  %2705 = vmatprep.mubr.bf16.mxu1 %v694_v11  ;;  %v3915_v37 = vld [vmem:[%s4916_s1 + $0x5d0] sm:$0xff]   ;;  %v3951_v11 = vld [vmem:[%s4916_s1 + $0x648] sm:$0xff]  }
  0x87   :  { %3547 = vmatprep.subr.bf16.mxu1 %v3867_v40  ;;  %v3917_v39 = vld [vmem:[%s4916_s1 + $0x590] sm:$0xff]   ;;  %v3918_v40 = vld [vmem:[%s4916_s1 + $0x548] sm:$0xff]  }
  0x88   :  { %3526 = vmatpush3.bf16.msra.mxu0 %v3868_v42  ;;  %v3919_v42 = vld [vmem:[%s4916_s1 + $0x5c8] sm:$0xff]   ;;  %v3947_v7 = vld [vmem:[%s4916_s1 + $0x650] sm:$0xff]  }
  0x89   :  { %3527 = vmatprep.subr.bf16.mxu0 %v3870_v44  ;;  %v3921_v44 = vld [vmem:[%s4916_s1 + $0x588] sm:$0xff]  }
  0x8a   :  { %3548 = vmatpush3.bf16.msra.mxu1 %v3869_v43  ;;  %v3920_v43 = vld [vmem:[%s4916_s1 + $0x508] sm:$0xff]  }
  0x8b   :  { %3549 = vmatprep.subr.bf16.mxu1 %v3871_v45  ;;  %v3922_v45 = vld [vmem:[%s4916_s1 + $0x540] sm:$0xff]  }
  0x8c   :  { %3528 = vmatpush3.bf16.msra.mxu0 %v3872_v46  ;;  %v3923_v46 = vld [vmem:[%s4916_s1 + $0x5c0] sm:$0xff]  }
  0x8d   :  { %3529 = vmatprep.subr.bf16.mxu0 %v3874_v48  ;;  %v3925_v48 = vld [vmem:[%s4916_s1 + $0x580] sm:$0xff]  }
  0x8e   :  { %3550 = vmatpush3.bf16.msra.mxu1 %v3873_v47  ;;  %v3924_v47 = vld [vmem:[%s4916_s1 + $0x500] sm:$0xff]  }
  0x8f   :  { %3551 = vmatprep.subr.bf16.mxu1 %v3875_v49  ;;  %v677_v49 = vrot.slane %v4559_v4, %v4161_v41  ;;  %v3944_v4 = vld [vmem:[%s4916_s1 + $0x6d8] sm:$0xff]  }
  0x90   :  { %3530 = vmatpush3.bf16.msra.mxu0 %v3876_v50  ;;  %v3927_v50 = vld [vmem:[%s4916_s1 + $0x678] sm:$0xff]  }
  0x91   :  { %3531 = vmatprep.subr.bf16.mxu0 %v3878_v52  ;;  %v3929_v52 = vld [vmem:[%s4916_s1 + $0x638] sm:$0xff]  }
  0x92   :  { %3552 = vmatpush3.bf16.msra.mxu1 %v3877_v51  ;;  %v3928_v51 = vld [vmem:[%s4916_s1 + $0x6f8] sm:$0xff]  }
  0x93   :  { %3553 = vmatprep.subr.bf16.mxu1 %v3879_v53  ;;  %v3930_v53 = vld [vmem:[%s4916_s1 + $0x6b8] sm:$0xff]  }
  0x94   :  { %3532 = vmatpush3.bf16.msra.mxu0 %v3880_v54  ;;  %v693_v54 = vcombine.high %v677_v49, %v677_v49 }
  0x95   :  { %3533 = vmatprep.subr.bf16.mxu0 %v3882_v56  ;;  %v3932_v56 = vld [vmem:[%s4916_s1 + $0x6f0] sm:$0xff]  }
  0x96   :  { %3554 = vmatpush3.bf16.msra.mxu1 %v3881_v55  ;;  %v3931_v55 = vld [vmem:[%s4916_s1 + $0x670] sm:$0xff]  }
  0x97   :  { %3555 = vmatprep.subr.bf16.mxu1 %v3883_v57  ;;  %v3933_v57 = vld [vmem:[%s4916_s1 + $0x630] sm:$0xff]  }
  0x98   :  { %3534 = vmatpush3.bf16.msra.mxu0 %v3884_v58  ;;  %v3934_v58 = vld [vmem:[%s4916_s1 + $0x6b0] sm:$0xff]  }
  0x99   :  { %3535 = vmatprep.subr.bf16.mxu0 %v3886_v60  ;;  %v3936_v60 = vld [vmem:[%s4916_s1 + $0x6e8] sm:$0xff]  }
  0x9a   :  { %3556 = vmatpush3.bf16.msra.mxu1 %v3885_v59  ;;  %v3935_v59 = vld [vmem:[%s4916_s1 + $0x668] sm:$0xff]  }
  0x9b   :  { %3557 = vmatprep.subr.bf16.mxu1 %v3887_v62  ;;  %v3938_v62 = vld [vmem:[%s4916_s1 + $0x6a8] sm:$0xff]  }
  0x9c   :  { %3536 = vmatpush3.bf16.msra.mxu0 %v3888_v1  ;;  %v3941_v1 = vld [vmem:[%s4916_s1 + $0x620] sm:$0xff]  }
  0x9d   :  { %3537 = vmatprep.subr.bf16.mxu0 %v3890_v5  ;;  %v3945_v5 = vld [vmem:[%s4916_s1 + $0x618] sm:$0xff]  }
  0x9e   :  { %3558 = vmatpush3.bf16.msra.mxu1 %v3889_v2  ;;  %v3942_v2 = vld [vmem:[%s4916_s1 + $0x6a0] sm:$0xff]  }
  0x9f   :  { %3559 = vmatprep.subr.bf16.mxu1 %v3891_v6  ;;  %v3946_v6 = vld [vmem:[%s4916_s1 + $0x698] sm:$0xff]  }
  0xa0   :  { %3538 = vmatpush3.bf16.msra.mxu0 %v3892_v9  ;;  %v3949_v9 = vld [vmem:[%s4916_s1 + $0x610] sm:$0xff]  }
  0xa1   :  { %3567 = vmatprep.subr.bf16.mxu0 %v3894_v13  ;;  %v3952_v13 = vld [vmem:[%s4916_s1 + $0x6c8] sm:$0xff]  }
  0xa2   :  { %3560 = vmatpush3.bf16.msra.mxu1 %v3893_v10  ;;  %v3950_v10 = vld [vmem:[%s4916_s1 + $0x690] sm:$0xff]  }
  0xa3   :  { %2666 = vmatmul.mubr.bf16.vlgmr.msra.gmra.mxu0 %v670_v12  ;;  %3589 = vmatprep.subr.bf16.mxu1 %v3895_v14  ;;  %v25_v12 = vld [vmem:[%s4915_s0 + $0x18] sm:$0xff] }
  0xa4   :  { %3568 = vmatpush3.bf16.msra.mxu0 %v3896_v16  ;;  %2745 = vmatprep.mubr.bf16.mxu0 %v691_v15  ;;  %v703_v14 = vrot.slane %v25_v12, %v4161_v41  ;;  %v696_v15 = vcombine.high %v25_v12, %v25_v12  ;;  %v3953_v16 = vld [vmem:[%s4916_s1 + $0x608] sm:$0xff]  }
  0xa5   :  { %2706 = vmatmul.mubr.bf16.vlgmr.msra.gmra.mxu1 %v692_v18  ;;  %3569 = vmatprep.subr.bf16.mxu0 %v3898_v19 }
  0xa6   :  { %3590 = vmatpush3.bf16.msra.mxu1 %v3897_v17  ;;  %2785 = vmatprep.mubr.bf16.mxu1 %v695_v21  ;;  %v3955_v17 = vld [vmem:[%s4916_s1 + $0x640] sm:$0xff]   ;;  %v711_v18 = vcombine.high %v703_v14, %v703_v14  ;;  %v4765_v19 = vrot.slane %v696_v15, %v4161_v41 }
  0xa7   :  { %3591 = vmatprep.subr.bf16.mxu1 %v3899_v20  ;;  %v3954_v20 = vld [vmem:[%s4916_s1 + $0x688] sm:$0xff]   ;;  %v3956_v21 = vld [vmem:[%s4916_s1 + $0x6c0] sm:$0xff]  }
  0xa8   :  { %3570 = vmatpush3.bf16.msra.mxu0 %v3900_v22  ;;  %v3957_v22 = vld [vmem:[%s4916_s1 + $0x600] sm:$0xff]  }
  0xa9   :  { %3571 = vmatprep.subr.bf16.mxu0 %v3902_v24  ;;  %v712_v24 = vcombine.high %v4765_v19, %v4765_v19 }
  0xaa   :  { %3592 = vmatpush3.bf16.msra.mxu1 %v3901_v23  ;;  %v733_v23 = vrot.slane %v711_v18, %v4161_v41 }
  0xab   :  { %3593 = vmatprep.subr.bf16.mxu1 %v3903_v25  ;;  %v3958_v25 = vld [vmem:[%s4916_s1 + $0x680] sm:$0xff]  }
  0xac   :  { %3572 = vmatpush3.bf16.msra.mxu0 %v3904_v26  ;;  %v743_v26 = vcombine.high %v733_v23, %v733_v23 }
  0xad   :  { %3573 = vmatprep.subr.bf16.mxu0 %v3906_v28  ;;  %v3959_v28 = vld [vmem:[%s4916_s1 + $0x778] sm:$0xff]  }
  0xae   :  { %3594 = vmatpush3.bf16.msra.mxu1 %v3905_v27  ;;  %v719_v27 = vrot.slane %v703_v14, %v4161_v41 }
  0xaf   :  { %3595 = vmatprep.subr.bf16.mxu1 %v3907_v29  ;;  %v3960_v29 = vld [vmem:[%s4916_s1 + $0x7f8] sm:$0xff]  }
  0xb0   :  { %3574 = vmatpush3.bf16.msra.mxu0 %v3908_v30  ;;  %v740_v30 = vrot.slane %v712_v24, %v4161_v41 }
  0xb1   :  { %3575 = vmatprep.subr.bf16.mxu0 %v3910_v32  ;;  %v3962_v32 = vld [vmem:[%s4916_s1 + $0x7b8] sm:$0xff]  }
  0xb2   :  { %3596 = vmatpush3.bf16.msra.mxu1 %v3909_v31  ;;  %v3961_v31 = vld [vmem:[%s4916_s1 + $0x738] sm:$0xff]  }
  0xb3   :  { %3597 = vmatprep.subr.bf16.mxu1 %v3911_v33  ;;  %v741_v33 = vcombine.high %v719_v27, %v719_v27 }
  0xb4   :  { %3576 = vmatpush3.bf16.msra.mxu0 %v3912_v34  ;;  %v3963_v34 = vld [vmem:[%s4916_s1 + $0x770] sm:$0xff]  }
  0xb5   :  { %3577 = vmatprep.subr.bf16.mxu0 %v3914_v36  ;;  %v744_v36 = vcombine.high %v740_v30, %v740_v30 }
  0xb6   :  { %3598 = vmatpush3.bf16.msra.mxu1 %v3913_v35  ;;  %v3964_v35 = vld [vmem:[%s4916_s1 + $0x7f0] sm:$0xff]  }
  0xb7   :  { %3599 = vmatprep.subr.bf16.mxu1 %v3915_v37 }
  0xb8   :  { %3578 = vmatpush3.bf16.msra.mxu0 %v3916_v38  ;;  %v3081_v38 = vld [vmem:[%s4917_s2] ss:$0 sm:$0xff] }
  0xb9   :  { %3579 = vmatprep.subr.bf16.mxu0 %v3918_v40  ;;  %v3966_v40 = vld [vmem:[%s4916_s1 + $0x7b0] sm:$0xff]  }
  0xba   :  { %3600 = vmatpush3.bf16.msra.mxu1 %v3917_v39  ;;  %v3965_v39 = vld [vmem:[%s4916_s1 + $0x730] sm:$0xff]  }
  0xbb   :  { %3601 = vmatprep.subr.bf16.mxu1 %v3919_v42 }
  0xbc   :  { %3580 = vmatpush3.bf16.msra.mxu0 %v3920_v43 }
  0xbd   :  { %3581 = vmatprep.subr.bf16.mxu0 %v3922_v45 }
  0xbe   :  { %3602 = vmatpush3.bf16.msra.mxu1 %v3921_v44  ;;  %v3967_v44 = vld [vmem:[%s4916_s1 + $0x768] sm:$0xff]  }
  0xbf   :  { %3603 = vmatprep.subr.bf16.mxu1 %v3923_v46  ;;  %v3968_v46 = vld [vmem:[%s4916_s1 + $0x7e8] sm:$0xff]  }
  0xc0   :  { %3582 = vmatpush3.bf16.msra.mxu0 %v3924_v47 }
  0xc1   :  { %3611 = vmatprep.subr.bf16.mxu0 %v3927_v50 }
  0xc2   :  { %3604 = vmatpush3.bf16.msra.mxu1 %v3925_v48 }
  0xc3   :  { %2746 = vmatmul.mubr.bf16.vlgmr.msra.gmra.mxu0 %v677_v49  ;;  %3633 = vmatprep.subr.bf16.mxu1 %v3928_v51  ;;  %v3969_v49 = vld [vmem:[%s4916_s1 + $0x728] sm:$0xff]  }
  0xc4   :  { %3612 = vmatpush3.bf16.msra.mxu0 %v3929_v52  ;;  %2825 = vmatprep.mubr.bf16.mxu0 %v733_v23  ;;  %v3970_v52 = vld [vmem:[%s4916_s1 + $0x7a8] sm:$0xff]  }
  0xc5   :  { %2786 = vmatmul.mubr.bf16.vlgmr.msra.gmra.mxu1 %v693_v54  ;;  %3613 = vmatprep.subr.bf16.mxu0 %v3931_v55  ;;  %v3971_v55 = vld [vmem:[%s4916_s1 + $0x760] sm:$0xff]  }
  0xc6   :  { %3634 = vmatpush3.bf16.msra.mxu1 %v3930_v53  ;;  %2865 = vmatprep.mubr.bf16.mxu1 %v743_v26 }
  0xc7   :  { %3635 = vmatprep.subr.bf16.mxu1 %v3932_v56 }
  0xc8   :  { %3614 = vmatpush3.bf16.msra.mxu0 %v3933_v57  ;;  %v3972_v57 = vld [vmem:[%s4916_s1 + $0x7e0] sm:$0xff]  }
  0xc9   :  { %3615 = vmatprep.subr.bf16.mxu0 %v3935_v59  ;;  %v3973_v59 = vld [vmem:[%s4916_s1 + $0x720] sm:$0xff]  }
  0xca   :  { %3636 = vmatpush3.bf16.msra.mxu1 %v3934_v58 }
  0xcb   :  { %3637 = vmatprep.subr.bf16.mxu1 %v3936_v60  ;;  %v3974_v60 = vld [vmem:[%s4916_s1 + $0x7a0] sm:$0xff]  }
  0xcc   :  { %3616 = vmatpush3.bf16.msra.mxu0 %v3937_v61  ;;  %v3975_v61 = vld [vmem:[%s4916_s1 + $0x758] sm:$0xff]  }
  0xcd   :  { %3617 = vmatprep.subr.bf16.mxu0 %v3939_v63  ;;  %v3977_v63 = vld [vmem:[%s4916_s1 + $0x718] sm:$0xff]  }
  0xce   :  { %3638 = vmatpush3.bf16.msra.mxu1 %v3938_v62  ;;  %v3976_v62 = vld [vmem:[%s4916_s1 + $0x7d8] sm:$0xff]  }
  0xcf   :  { %3639 = vmatprep.subr.bf16.mxu1 %v3940_v0  ;;  %v3978_v0 = vld [vmem:[%s4916_s1 + $0x798] sm:$0xff]  }
  0xd0   :  { %3618 = vmatpush3.bf16.msra.mxu0 %v3941_v1  ;;  %v3979_v1 = vld [vmem:[%s4916_s1 + $0x750] sm:$0xff]  }
  0xd1   :  { %3619 = vmatprep.subr.bf16.mxu0 %v3943_v3  ;;  %v3981_v3 = vld [vmem:[%s4916_s1 + $0x710] sm:$0xff]  }
  0xd2   :  { %3640 = vmatpush3.bf16.msra.mxu1 %v3942_v2  ;;  %v3980_v2 = vld [vmem:[%s4916_s1 + $0x7d0] sm:$0xff]  }
  0xd3   :  { %3641 = vmatprep.subr.bf16.mxu1 %v3944_v4  ;;  %v3982_v4 = vld [vmem:[%s4916_s1 + $0x790] sm:$0xff]  }
  0xd4   :  { %3620 = vmatpush3.bf16.msra.mxu0 %v3945_v5  ;;  %v3983_v5 = vld [vmem:[%s4916_s1 + $0x748] sm:$0xff]  }
  0xd5   :  { %3621 = vmatprep.subr.bf16.mxu0 %v3947_v7  ;;  %v3985_v7 = vld [vmem:[%s4916_s1 + $0x708] sm:$0xff]  }
  0xd6   :  { %3642 = vmatpush3.bf16.msra.mxu1 %v3946_v6  ;;  %v3984_v6 = vld [vmem:[%s4916_s1 + $0x7c8] sm:$0xff]  }
  0xd7   :  { %3643 = vmatprep.subr.bf16.mxu1 %v3948_v8  ;;  %v3987_v8 = vld [vmem:[%s4916_s1 + $0x740] sm:$0xff]  }
  0xd8   :  { %3622 = vmatpush3.bf16.msra.mxu0 %v3949_v9  ;;  %v3986_v9 = vld [vmem:[%s4916_s1 + $0x788] sm:$0xff]  }
  0xd9   :  { %3623 = vmatprep.subr.bf16.mxu0 %v3951_v11  ;;  %v3989_v11 = vld [vmem:[%s4916_s1 + $0x700] sm:$0xff]  }
  0xda   :  { %3644 = vmatpush3.bf16.msra.mxu1 %v3950_v10  ;;  %v3988_v10 = vld [vmem:[%s4916_s1 + $0x7c0] sm:$0xff]  }
  0xdb   :  { %3645 = vmatprep.subr.bf16.mxu1 %v3952_v13 }
  0xdc   :  { %3624 = vmatpush3.bf16.msra.mxu0 %v3953_v16 }
  0xdd   :  { %3625 = vmatprep.subr.bf16.mxu0 %v3955_v17 }
  0xde   :  { %3646 = vmatpush3.bf16.msra.mxu1 %v3954_v20 }
  0xdf   :  { %3647 = vmatprep.subr.bf16.mxu1 %v3956_v21 }
  0xe0   :  { %3626 = vmatpush3.bf16.msra.mxu0 %v3957_v22 }
  0xe1   :  { %3655 = vmatprep.subr.bf16.mxu0 %v3959_v28 }
  0xe2   :  { %3648 = vmatpush3.bf16.msra.mxu1 %v3958_v25 }
  0xe3   :  { %v3363_v37 = vpop.f32.mrf.mxu0  ;;  %2826 = vmatmul.mubr.bf16.vlgmr.msra.gmra.mxu0 %v719_v27  ;;  %3677 = vmatprep.subr.bf16.mxu1 %v3960_v29 }
  0xe4   :  { %3656 = vmatpush3.bf16.msra.mxu0 %v3961_v31  ;;  %2905 = vmatprep.mubr.bf16.mxu0 %v740_v30  ;;  %v3385_v42 = vpop.f32.mrf.mxu1 }
  0xe5   :  { %2866 = vmatmul.mubr.bf16.vlgmr.msra.gmra.mxu1 %v741_v33  ;;  %v3364_v43 = vpop.f32.mrf.mxu0  ;;  %3657 = vmatprep.subr.bf16.mxu0 %v3963_v34 }
  0xe6   :  { %3678 = vmatpush3.bf16.msra.mxu1 %v3962_v32  ;;  %v3365_v45 = vadd.f32 %v3364_v43, %v3363_v37  ;;  %2945 = vmatprep.mubr.bf16.mxu1 %v744_v36  ;;  %v3386_v47 = vpop.f32.mrf.mxu1 }
  0xe7   :  { %v3366_v48 = vpop.f32.mrf.mxu0  ;;  %3679 = vmatprep.subr.bf16.mxu1 %v3964_v35  ;;  %v3387_v51 = vadd.f32 %v3386_v47, %v3385_v42 }
  0xe8   :  { %v2348_v50 = vadd.f32 %v3365_v45, %v3081_v38  ;;  %3658 = vmatpush3.bf16.msra.mxu0 %v3965_v39  ;;  %v3388_v53 = vpop.f32.mrf.mxu1 }
  0xe9   :  { %v3367_v54 = vpop.f32.mrf.mxu0  ;;  %3659 = vmatprep.subr.bf16.mxu0 %v3967_v44 }
  0xea   :  { %v2388_v56 = vadd.f32 %v3387_v51, %v2348_v50  ;;  %3680 = vmatpush3.bf16.msra.mxu1 %v3966_v40  ;;  %v3389_v58 = vpop.f32.mrf.mxu1 }
  0xeb   :  { %3681 = vmatprep.subr.bf16.mxu1 %v3968_v46 }
  0xec   :  { %3660 = vmatpush3.bf16.msra.mxu0 %v3969_v49 }
  0xed   :  { %3661 = vmatprep.subr.bf16.mxu0 %v3971_v55 }
  0xee   :  { %3682 = vmatpush3.bf16.msra.mxu1 %v3970_v52 }
  0xef   :  { %3683 = vmatprep.subr.bf16.mxu1 %v3972_v57 }
  0xf0   :  { %3662 = vmatpush3.bf16.msra.mxu0 %v3973_v59 }
  0xf1   :  { %3663 = vmatprep.subr.bf16.mxu0 %v3975_v61 }
  0xf2   :  { %3684 = vmatpush3.bf16.msra.mxu1 %v3974_v60 }
  0xf3   :  { %3685 = vmatprep.subr.bf16.mxu1 %v3976_v62 }
  0xf4   :  { %3664 = vmatpush3.bf16.msra.mxu0 %v3977_v63 }
  0xf5   :  { %3665 = vmatprep.subr.bf16.mxu0 %v3979_v1 }
  0xf6   :  { %3686 = vmatpush3.bf16.msra.mxu1 %v3978_v0 }
  0xf7   :  { %3687 = vmatprep.subr.bf16.mxu1 %v3980_v2 }
  0xf8   :  { %3666 = vmatpush3.bf16.msra.mxu0 %v3981_v3 }
  0xf9   :  { %3667 = vmatprep.subr.bf16.mxu0 %v3983_v5 }
  0xfa   :  { %3688 = vmatpush3.bf16.msra.mxu1 %v3982_v4 }
  0xfb   :  { %3689 = vmatprep.subr.bf16.mxu1 %v3984_v6 }
  0xfc   :  { %3668 = vmatpush3.bf16.msra.mxu0 %v3985_v7 }
  0xfd   :  { %10 = vsyncpa [#allocation3], 0  ;;  %3669 = vmatprep.subr.bf16.mxu0 %v3987_v8  ;;  %v726_v12 = vrot.slane %v4765_v19, %v4161_v41  ;;  %v3990_v13 = vld [vmem:[%s4916_s1 + $0x780] sm:$0xff]   ;;  %v3992_v38 = vld [vmem:[%s4918_s3 + $0x38] sm:$0xff]   ;;  %v4023_v39 = vmov 0.0   ;;  %vm4024_vm0 = vmmov 0  }
  0xfe   :  { %3690 = vmatpush3.bf16.msra.mxu1 %v3986_v9  ;;  %v3993_v40 = vld [vmem:[%s4918_s3 + $0x30] sm:$0xff]   ;;  %v3994_v42 = vld [vmem:[%s4918_s3 + $0x28] sm:$0xff]   ;;  %v3995_v43 = vld [vmem:[%s4918_s3 + $0x20] sm:$0xff]   ;;  %s4025_s24 = smov [#allocation2]  }
  0xff   :  { %3691 = vmatprep.subr.bf16.mxu1 %v3988_v10  ;;  %v742_v14 = vcombine.high %v726_v12, %v726_v12  ;;  %v3996_v44 = vld [vmem:[%s4918_s3 + $0x18] sm:$0xff]   ;;  %v3997_v48 = vld [vmem:[%s4918_s3 + $0x10] sm:$0xff]   ;;  %v3999_v59 = vld [vmem:[%s4918_s3] sm:$0xff]   ;;  %s3073_s25 = sshll.u32 %s4025_s24, 4  ;;  %s3074_s25 = int_to_ptr.vmem [resolvable:$true] %s3073_s25 }
 0x100   :  { %3670 = vmatpush3.bf16.msra.mxu0 %v3989_v11  ;;  %s4000_s26 = scalar_lea.vmem %s3074_s25, 32  ;;  %p4005_p1 = scmp.lt.s32.totalorder %s3074_s25, %s3074_s25 }
 0x101   :  { %3708 = vmatprep.subr.bf16.mxu0 %v4023_v39  ;;  %p4001_p0 = scmp.ne.s32.totalorder %s3074_s25, %s4000_s26  ;;  %p4006_p2 = scmp.lt.s32.totalorder %s4000_s26, %s4000_s26 }
 0x102   :  { %3692 = vmatpush3.bf16.msra.mxu1 %v3990_v13 }
 0x103   :  { %v3407_v15 = vpop.f32.mrf.mxu0  ;;  %2906 = vmatmul.mubr.bf16.vlgmr.msra.gmra.mxu0 %v726_v12  ;;  %p4007_p3 = por %p4006_p2, %p4005_p1 }
 0x104   :  { %v3429_v16 = vpop.f32.mrf.mxu1  ;;  %3709 = vmatpush3.bf16.msra.mxu0 %v3992_v38  ;;  %3724 = vmatprep.mubr.msk.bf16.mxu0 %vm4024_vm0, %v4023_v39 }
 0x105   :  { %2946 = vmatmul.mubr.bf16.vlgmr.msra.gmra.mxu1 %v742_v14  ;;  %v3408_v17 = vpop.f32.mrf.mxu0  ;;  %3710 = vmatprep.subr.bf16.mxu0 %v4023_v39  ;;  %p4008_p4 = pnand %p4007_p3, %p4001_p0 }
 0x106   :  { %v3409_v18 = vadd.f32 %v3408_v17, %v3407_v15  ;;  %v3430_v20 = vpop.f32.mrf.mxu1 }
 0x107   :  { %v3410_v21 = vpop.f32.mrf.mxu0  ;;  %v3431_v23 = vadd.f32 %v3430_v20, %v3429_v16 }
 0x108   :  { %v2428_v22 = vadd.f32 %v3409_v18, %v2388_v56  ;;  %v3432_v41 = vpop.f32.mrf.mxu1  ;;  %3711 = vmatpush3.bf16.msra.mxu0 %v3993_v40  ;;  %v3998_v56 = vld [vmem:[%s4918_s3 + $0x8] sm:$0xff]  }
 0x109   :  { %v3411_v19 = vpop.f32.mrf.mxu0  ;;  %3712 = vmatprep.subr.bf16.mxu0 %v4023_v39 }
 0x10a   :  { %v2468_v24 = vadd.f32 %v3431_v23, %v2428_v22  ;;  %v3433_v25 = vpop.f32.mrf.mxu1 }
 0x10c   :  { %3713 = vmatpush3.bf16.msra.mxu0 %v3994_v42 }
 0x10d   :  { %3714 = vmatprep.subr.bf16.mxu0 %v4023_v39 }
 0x110   :  { %3715 = vmatpush3.bf16.msra.mxu0 %v3995_v43 }
 0x111   :  { %3716 = vmatprep.subr.bf16.mxu0 %v4023_v39 }
 0x114   :  { %3717 = vmatpush3.bf16.msra.mxu0 %v3996_v44 }
 0x115   :  { %3718 = vmatprep.subr.bf16.mxu0 %v4023_v39 }
 0x118   :  { %3719 = vmatpush3.bf16.msra.mxu0 %v3997_v48 }
 0x119   :  { %3720 = vmatprep.subr.bf16.mxu0 %v4023_v39 }
 0x11c   :  { %3721 = vmatpush3.bf16.msra.mxu0 %v3998_v56 }
 0x11d   :  { %3722 = vmatprep.subr.bf16.mxu0 %v4023_v39 }
 0x120   :  { %3723 = vmatpush3.bf16.msra.mxu0 %v3999_v59 }
 0x123   :  { %v3451_v26 = vpop.f32.mrf.mxu0 }
 0x125   :  { %v3473_v27 = vpop.f32.mrf.mxu1  ;;  %v3452_v28 = vpop.f32.mrf.mxu0 }
 0x126   :  { %v3453_v29 = vadd.f32 %v3452_v28, %v3451_v26 }
 0x127   :  { %v3474_v30 = vpop.f32.mrf.mxu1  ;;  %v3454_v31 = vpop.f32.mrf.mxu0 }
 0x128   :  { %v2508_v32 = vadd.f32 %v3453_v29, %v2468_v24  ;;  %v3475_v33 = vadd.f32 %v3474_v30, %v3473_v27 }
 0x129   :  { %v3476_v34 = vpop.f32.mrf.mxu1  ;;  %v3455_v35 = vpop.f32.mrf.mxu0 }
 0x12a   :  { %v2548_v36 = vadd.f32 %v3475_v33, %v2508_v32 }
 0x12b   :  { %v3477_v37 = vpop.f32.mrf.mxu1 }
 0x143   :  { %v3495_v45 = vpop.f32.mrf.mxu0 }
 0x145   :  { %v3517_v46 = vpop.f32.mrf.mxu1  ;;  %v3496_v47 = vpop.f32.mrf.mxu0 }
 0x146   :  { %v3497_v49 = vadd.f32 %v3496_v47, %v3495_v45 }
 0x147   :  { %v3518_v50 = vpop.f32.mrf.mxu1  ;;  %v3498_v51 = vpop.f32.mrf.mxu0 }
 0x148   :  { %v2588_v52 = vadd.f32 %v3497_v49, %v2548_v36  ;;  %v3519_v53 = vadd.f32 %v3518_v50, %v3517_v46  ;;  %v3338_v46 = vld [vmem:[%s4919_s4] ss:$0 sm:$0xff] }
 0x149   :  { %v3520_v54 = vpop.f32.mrf.mxu1  ;;  %v3499_v55 = vpop.f32.mrf.mxu0 }
 0x14a   :  { %v2628_v57 = vadd.f32 %v3519_v53, %v2588_v52 }
 0x14b   :  { %v3521_v58 = vpop.f32.mrf.mxu1 }
 0x163   :  { %v3539_v60 = vpop.f32.mrf.mxu0 }
 0x165   :  { %v3561_v61 = vpop.f32.mrf.mxu1  ;;  %v3540_v62 = vpop.f32.mrf.mxu0 }
 0x166   :  { %v3541_v63 = vadd.f32 %v3540_v62, %v3539_v60 }
 0x167   :  { %v3562_v0 = vpop.f32.mrf.mxu1  ;;  %v3542_v1 = vpop.f32.mrf.mxu0 }
 0x168   :  { %v2668_v2 = vadd.f32 %v3541_v63, %v2628_v57  ;;  %v3563_v3 = vadd.f32 %v3562_v0, %v3561_v61 }
 0x169   :  { %v3564_v4 = vpop.f32.mrf.mxu1  ;;  %v3543_v5 = vpop.f32.mrf.mxu0 }
 0x16a   :  { %v2708_v6 = vadd.f32 %v3563_v3, %v2668_v2 }
 0x16b   :  { %v3565_v7 = vpop.f32.mrf.mxu1 }
 0x183   :  { %v3583_v8 = vpop.f32.mrf.mxu0 }
 0x185   :  { %v3605_v9 = vpop.f32.mrf.mxu1  ;;  %v3584_v10 = vpop.f32.mrf.mxu0 }
 0x186   :  { %v3585_v19 = vadd.f32 %v3584_v10, %v3583_v8 }
 0x187   :  { %v3606_v11 = vpop.f32.mrf.mxu1  ;;  %v3586_v12 = vpop.f32.mrf.mxu0 }
 0x188   :  { %v2748_v24 = vadd.f32 %v3585_v19, %v2708_v6  ;;  %v3607_v25 = vadd.f32 %v3606_v11, %v3605_v9 }
 0x189   :  { %v3608_v13 = vpop.f32.mrf.mxu1  ;;  %v3587_v14 = vpop.f32.mrf.mxu0 }
 0x18a   :  { %v2788_v27 = vadd.f32 %v3607_v25, %v2748_v24 }
 0x18b   :  { %v3609_v15 = vpop.f32.mrf.mxu1 }
 0x1a3   :  { %v3627_v16 = vpop.f32.mrf.mxu0 }
 0x1a5   :  { %v3649_v17 = vpop.f32.mrf.mxu1  ;;  %v3628_v18 = vpop.f32.mrf.mxu0 }
 0x1a6   :  { %v3629_v26 = vadd.f32 %v3628_v18, %v3627_v16 }
 0x1a7   :  { %v3650_v20 = vpop.f32.mrf.mxu1  ;;  %v3630_v21 = vpop.f32.mrf.mxu0 }
 0x1a8   :  { %v2828_v28 = vadd.f32 %v3629_v26, %v2788_v27  ;;  %v3651_v29 = vadd.f32 %v3650_v20, %v3649_v17 }
 0x1a9   :  { %v3652_v22 = vpop.f32.mrf.mxu1  ;;  %v3631_v23 = vpop.f32.mrf.mxu0 }
 0x1aa   :  { %v2868_v33 = vadd.f32 %v3651_v29, %v2828_v28 }
 0x1ab   :  { %v3653_v41 = vpop.f32.mrf.mxu1 }
 0x1c3   :  { %v3671_v30 = vpop.f32.mrf.mxu0 }
 0x1c5   :  { %v3693_v31 = vpop.f32.mrf.mxu1  ;;  %v3672_v32 = vpop.f32.mrf.mxu0 }
 0x1c6   :  { %v3673_v34 = vadd.f32 %v3672_v32, %v3671_v30 }
 0x1c7   :  { %v3694_v35 = vpop.f32.mrf.mxu1  ;;  %v3674_v36 = vpop.f32.mrf.mxu0 }
 0x1c8   :  { %v2908_v37 = vadd.f32 %v3673_v34, %v2868_v33  ;;  %v3695_v38 = vadd.f32 %v3694_v35, %v3693_v31 }
 0x1c9   :  { %v3696_v39 = vpop.f32.mrf.mxu1  ;;  %v3675_v40 = vpop.f32.mrf.mxu0 }
 0x1ca   :  { %v2948_v42 = vadd.f32 %v3695_v38, %v2908_v37 }
 0x1cb   :  { %v3697_v43 = vpop.f32.mrf.mxu1 }
 0x1cc   :  { %v2953_v44 = vmax.f32 %v2948_v42, 0.0 }
 0x1ce   :  { %v2954_v45 = vpack.c.bf16 %v2953_v44, %v2953_v44 }
 0x1d0   :  { %3725 = vmatmul.mubr.bf16.vlgmr.msra.gmra.mxu0 %v2954_v45 }
 0x290   :  { %v3060_v47 = vpop.f32.mrf.mxu0 }
 0x291   :  { %v3061_v48 = vadd.f32 %v3338_v46, %v3060_v47 }
 0x292   :  { %v3726_v49 = vpop.f32.mrf.mxu0 }
 0x293   :  { %3066 = vst [vmem:[#allocation2] sm:$0x3] %v3061_v48 }
 0x294   :  { %v3063_v50 = vpop.f32.mrf.mxu0 }
 0x295   :  { %4011 = shalt.err (!%p4008_p4)
}
 0x296   :  { %3076 = dma.vmem_to_hbm [thread:$0]  %s3074_s25, 32, %s4920_s5, [#allocation3]   ;;  %v3727_v51 = vpop.f32.mrf.mxu0 }
 0x297   :  { %4020 = dma.done.wait [#allocation3], 32  }
 0x298   :  { %4021 = vsyncadd [#allocation3], 4294967264 }
 0x299   :  { %3080 = vsyncpa [#allocation3], 1 }

</bundles_post_ra>
